<compile_context>
chip_gen: v7x
topology: tpu7x:2x2x1
jax: 0.10.0
libtpu: 0.0.40
codegen_flags: <defaults>
</compile_context>

<pallas_src>
import functools

import jax
import jax.numpy as jnp
from jax import lax
from jax.experimental import pallas as pl
from jax.experimental.pallas import tpu as pltpu


def _round_up(x, m):
    return ((x + m - 1) // m) * m


def _mxu_supports_int8():
    """int8 MXU exists on v5e/v5p/v6e; v7x (and older gens, conservatively) use bf16."""
    try:
        kind = jax.devices()[0].device_kind.lower()
    except Exception:
        return False
    return ("v5" in kind) or ("v6" in kind)


def _pick_tm(M):
    # Largest row tile while keeping >= 2 M-steps whenever the point count allows
    # it, so dimension_semantics=("parallel","parallel") can shard across v7x's
    # two TensorCores.  Minimum 32 keeps int8 sublane packing happy.
    for t in (1024, 512, 256, 128, 64, 32):
        if M >= 2 * t:
            return t
    return 32


def _conv1x1_requant_kernel(x_ref, w_ref, sb_ref, o_ref, *, shift_n, relu, int8_mxu):
    # x_ref:  (TM, IC)  int8          feature tile (points on sublanes, IC on lanes)
    # w_ref:  (IC, TN)  int8|bf16     1x1 weights  (IC on sublanes, OC on lanes)
    # sb_ref: (2,  TN)  int32         row 0 = scale, row 1 = bias*scale + 2**(shift_n-1)
    # o_ref:  (TM, TN)  int8          requantized layer output
    if int8_mxu:
        # v5e / v6e: native int8 MXU, exact int32 accumulation, no cast traffic.
        psum = lax.dot_general(
            x_ref[...], w_ref[...],
            dimension_numbers=(((1,), (0,)), ((), ())),
            preferred_element_type=jnp.int32)
    else:
        # v7x (no int MXU): int8 values are exact in bf16 and the f32 accumulator
        # keeps the sum exact for IC*127*127 < 2**24 (IC <= 1040).  Weights were
        # pre-cast to bf16 in the wrapper; only the feature tile is cast here.
        x = x_ref[...].astype(jnp.bfloat16)
        psum = jnp.dot(x, w_ref[...],
                       preferred_element_type=jnp.float32).astype(jnp.int32)

    sb = sb_ref[...]
    # Folded requant: (psum + bias)*scale + round == psum*scale + (bias*scale + round).
    acc = psum * sb[0:1, :] + sb[1:2, :]
    shifted = lax.shift_right_arithmetic(acc, jnp.int32(shift_n))
    out = jnp.clip(shifted, -127, 127)                      # clamp in int32
    if relu:
        out = jnp.maximum(out, 0)
    o_ref[...] = out.astype(jnp.int8)


def tb_module_1x1_forward(features, weight, bias, scale, *, shift_n=8, relu=True):
    """Dense equivalent of tb_module_1x1.forward.

    features: (M, IC)  int8-valued point features (M = all active coordinates)
    weight:   (IC, OC) int8-valued 1x1 conv weights
    bias:     (OC,)    int32 per-channel bias
    scale:    (OC,)    int32 per-channel scale
    Returns (M, OC) int8.  Values equal the module's float output exactly
    (cast to float32 on the consumer side if a FloatTensor is required).
    """
    M, IC = features.shape
    IC2, OC = weight.shape
    assert IC == IC2, "weight/feature IC mismatch"

    int8_mxu = _mxu_supports_int8()
    if not int8_mxu:
        # Exactness bound for the bf16/f32 MXU path: IC*127*127 <= 2**24 (IC <= 1040).
        # TODO(synk): for IC > 1024 on chips without an int8 MXU, add a K grid
        # axis ("arbitrary") with a pl.when-initialized int32 accumulator.
        assert IC <= 1024, "IC too large for exact single-pass bf16/f32 accumulation"

    # Tiling: points on sublanes, output channels on lanes (lane-dense stores).
    tm = _pick_tm(M)
    Mp = _round_up(M, tm)
    OCp = _round_up(OC, 128)
    tn = 256 if (OCp % 256 == 0 and OCp > 256) else OCp
    grid = (Mp // tm, OCp // tn)

    x = features.astype(jnp.int8)
    if Mp != M:
        x = jnp.pad(x, ((0, Mp - M), (0, 0)))
    w = weight.astype(jnp.int8)
    b = bias.astype(jnp.int32)
    s = scale.astype(jnp.int32)
    if OCp != OC:
        w = jnp.pad(w, ((0, 0), (0, OCp - OC)))
        b = jnp.pad(b, (0, OCp - OC))
        s = jnp.pad(s, (0, OCp - OC))
    if not int8_mxu:
        w = w.astype(jnp.bfloat16)  # one-time host cast; kernel only casts feature tiles

    # Fold requant constants (single (2, OCp) input -> one small DMA per step).
    # TODO(synk): like the PyTorch module (which widens to int64), this assumes
    # (psum + bias)*scale fits in int32; true for the module's value ranges
    # (|psum| ~ IC*127^2, |bias| <= ~1e3, scale < 256 at IC <= 128).
    sb = jnp.stack([s, s * b + jnp.int32(1 << (shift_n - 1))], axis=0)

    kernel = functools.partial(_conv1x1_requant_kernel,
                               shift_n=shift_n, relu=relu, int8_mxu=int8_mxu)

    out = pl.pallas_call(
        kernel,
        out_shape=jax.ShapeDtypeStruct((Mp, OCp), jnp.int8),
        grid_spec=pltpu.PrefetchScalarGridSpec(
            num_scalar_prefetch=0,
            grid=grid,
            in_specs=[
                pl.BlockSpec((tm, IC), lambda i, j: (i, 0)),   # features
                pl.BlockSpec((IC, tn), lambda i, j: (0, j)),   # weights
                pl.BlockSpec((2, tn), lambda i, j: (0, j)),    # folded scale/bias
            ],
            out_specs=pl.BlockSpec((tm, tn), lambda i, j: (i, j)),
        ),
        compiler_params=pltpu.CompilerParams(
            dimension_semantics=("parallel", "parallel"),
            vmem_limit_bytes=32 * 1024 * 1024,
        ),
        cost_estimate=pl.CostEstimate(
            flops=2 * Mp * IC * OCp,
            transcendentals=0,
            bytes_accessed=Mp * IC + IC * OCp + Mp * OCp + 2 * 4 * OCp,
        ),
    )(x, w, sb)

    if Mp != M or OCp != OC:
        out = out[:M, :OC]
    return out


def _reference(features, weight, bias, scale, *, shift_n=8, relu=True):
    """Pure-JAX reference (exact int semantics for the tested value ranges)."""
    # f32 matmul of int8-valued inputs is exact here (HIGHEST precision, |psum| < 2^24).
    psum = lax.dot_general(features.astype(jnp.float32), weight.astype(jnp.float32),
                           dimension_numbers=(((1,), (0,)), ((), ())),
                           precision=lax.Precision.HIGHEST).astype(jnp.int32)
    acc = (psum + bias.astype(jnp.int32)[None, :]) * scale.astype(jnp.int32)[None, :]
    acc = acc + (1 << (shift_n - 1))
    shifted = lax.shift_right_arithmetic(acc, jnp.int32(shift_n))
    out = jnp.clip(shifted, -127, 127)
    if relu:
        out = jnp.maximum(out, 0)
    return out.astype(jnp.int8)


if __name__ == "__main__":
    key = jax.random.PRNGKey(0)
    k1, k2, k3, k4 = jax.random.split(key, 4)

    # Small synthetic shapes consistent with the module (MobileNet-style 1x1 block):
    # 2 frames of 32x32 active sites -> M = 2048 points, IC = OC = 128 channels.
    N, H, W = 2, 32, 32
    IC, OC = 128, 128
    M = N * H * W

    features = jax.random.randint(k1, (M, IC), -128, 128, dtype=jnp.int32).astype(jnp.int8)
    int_weight = jax.random.randint(k2, (IC, OC), -128, 128, dtype=jnp.int32).astype(jnp.int8)
    int_bias = jax.random.randint(k3, (OC,), -1000, 1000, dtype=jnp.int32)
    int_scale = jax.random.randint(k4, (OC,), 1, 256, dtype=jnp.int32)

    out = tb_module_1x1_forward(features, int_weight, int_bias, int_scale,
                                shift_n=8, relu=True)
    out = jax.block_until_ready(out)

    ref = _reference(features, int_weight, int_bias, int_scale, shift_n=8, relu=True)
    assert out.shape == (M, OC)
    assert out.dtype == jnp.int8
    assert jnp.array_equal(out, ref), "mismatch vs reference"

    print("KERNEL_OK")
</pallas_src>

<mosaic_0001>
module attributes {stable_mosaic.version = 11 : i64} {
  func.func @_conv1x1_requant_kernel(%arg0: i32, %arg1: i32, %arg2: memref<1024x128xi8, #tpu.memory_space<vmem>>, %arg3: memref<128x128xbf16, #tpu.memory_space<vmem>>, %arg4: memref<2x128xi32, #tpu.memory_space<vmem>>, %arg5: memref<1024x128xi8, #tpu.memory_space<vmem>>) attributes {dimension_semantics = [#tpu.dimension_semantics<parallel>, #tpu.dimension_semantics<parallel>], iteration_bounds = array<i64: 2, 1>, scalar_prefetch = 0 : i64, scratch_operands = 0 : i64, tpu.core_type = #tpu.core_type<tc>, window_params = [{transform_indices = @transform_0, window_bounds = array<i64: 1024, 128>}, {transform_indices = @transform_1, window_bounds = array<i64: 128, 128>}, {transform_indices = @transform_2, window_bounds = array<i64: 2, 128>}, {transform_indices = @transform_3, window_bounds = array<i64: 1024, 128>}]} {
    %c0 = arith.constant 0 : index
    %c0_0 = arith.constant 0 : index
    %0 = vector.load %arg2[%c0, %c0_0] : memref<1024x128xi8, #tpu.memory_space<vmem>>, vector<1024x128xi8>
    %1 = arith.sitofp %0 : vector<1024x128xi8> to vector<1024x128xbf16>
    %c0_1 = arith.constant 0 : index
    %c0_2 = arith.constant 0 : index
    %2 = vector.load %arg3[%c0_1, %c0_2] : memref<128x128xbf16, #tpu.memory_space<vmem>>, vector<128x128xbf16>
    %cst = arith.constant dense<0.000000e+00> : vector<1024x128xf32>
    %3 = tpu.matmul %1, %2, %cst {dimension_numbers = #tpu.dot_dimension_numbers<[1], [0], [0], [1], [0, 0, 1, 1], [], []>} : vector<1024x128xbf16>, vector<128x128xbf16>, vector<1024x128xf32> -> vector<1024x128xf32>
    %4 = arith.fptosi %3 : vector<1024x128xf32> to vector<1024x128xi32>
    %c0_3 = arith.constant 0 : index
    %c0_4 = arith.constant 0 : index
    %5 = vector.load %arg4[%c0_3, %c0_4] : memref<2x128xi32, #tpu.memory_space<vmem>>, vector<2x128xi32>
    %6 = vector.extract_strided_slice %5 {offsets = [0, 0], sizes = [1, 128], strides = [1, 1]} : vector<2x128xi32> to vector<1x128xi32>
    %7 = vector.broadcast %6 : vector<1x128xi32> to vector<1024x128xi32>
    %8 = arith.muli %4, %7 : vector<1024x128xi32>
    %9 = vector.extract_strided_slice %5 {offsets = [1, 0], sizes = [1, 128], strides = [1, 1]} : vector<2x128xi32> to vector<1x128xi32>
    %10 = vector.broadcast %9 : vector<1x128xi32> to vector<1024x128xi32>
    %11 = arith.addi %8, %10 : vector<1024x128xi32>
    %c8_i32 = arith.constant 8 : i32
    %12 = vector.broadcast %c8_i32 : i32 to vector<1024x128xi32>
    %13 = arith.shrsi %11, %12 : vector<1024x128xi32>
    %c-127_i32 = arith.constant -127 : i32
    %c127_i32 = arith.constant 127 : i32
    %14 = vector.broadcast %c-127_i32 : i32 to vector<1024x128xi32>
    %15 = arith.maxsi %14, %13 : vector<1024x128xi32>
    %16 = vector.broadcast %c127_i32 : i32 to vector<1024x128xi32>
    %17 = arith.minsi %16, %15 : vector<1024x128xi32>
    %c0_i32 = arith.constant 0 : i32
    %18 = vector.broadcast %c0_i32 : i32 to vector<1024x128xi32>
    %19 = arith.maxsi %17, %18 : vector<1024x128xi32>
    %20 = arith.trunci %19 : vector<1024x128xi32> to vector<1024x128xi8>
    %c0_5 = arith.constant 0 : index
    %c0_6 = arith.constant 0 : index
    %21 = vector.load %arg5[%c0_5, %c0_6] : memref<1024x128xi8, #tpu.memory_space<vmem>>, vector<1024x128xi8>
    tpu.vector_store %arg5[%c0_5, %c0_6], %20 {strides = array<i32>} : memref<1024x128xi8, #tpu.memory_space<vmem>>, vector<1024x128xi8>,
    return
  }
  func.func @transform_0(%arg0: i32, %arg1: i32) -> (i32, i32) {
    %c0_i32 = arith.constant 0 : i32
    %c0_i32_0 = arith.constant 0 : i32
    return %arg0, %c0_i32 : i32, i32
  }
  func.func @transform_1(%arg0: i32, %arg1: i32) -> (i32, i32) {
    %c0_i32 = arith.constant 0 : i32
    %c0_i32_0 = arith.constant 0 : i32
    return %c0_i32, %arg1 : i32, i32
  }
  func.func @transform_2(%arg0: i32, %arg1: i32) -> (i32, i32) {
    %c0_i32 = arith.constant 0 : i32
    %c0_i32_0 = arith.constant 0 : i32
    return %c0_i32, %arg1 : i32, i32
  }
  func.func @transform_3(%arg0: i32, %arg1: i32) -> (i32, i32) {
    %c0_i32 = arith.constant 0 : i32
    return %arg0, %arg1 : i32, i32
  }
}

</mosaic_0001>

<bundles_post_ra>
// kernel: tpu_custom_call.1
= control target key start
LH: loop header
LB: loop body
LE: loop exit
PB: predicated region body
PF: predicated region fallthrough
CT: control target
= control target key end

     0   :  { %8 = vsyncpa [#allocation3], 0  ;;  %s4325_s0 = inlined_call_operand.hbm [shape: s8[2048,128], index: 0, kind: input, shape index: {}]   ;;  %s4326_s1 = inlined_call_operand.hbm [shape: bf16[128,128], index: 1, kind: input, shape index: {}]   ;;  %s4327_s2 = inlined_call_operand.vmem [shape: s32[2,128], index: 2, kind: input, shape index: {}]   ;;  %s4328_s3 = inlined_call_operand.hbm [shape: s8[2048,128], index: 3, kind: output, shape index: {}]  }
   0x1   :  { %10 = vsyncpa [#allocation3 + $0x1], 0 }
   0x2   :  { %11 = vsyncpa [#allocation6], 0 }
   0x3   :  { %12 = vsyncpa [#allocation4], 0 }
   0x4   :  { %14 = vsyncpa [#allocation4 + $0x1], 0  ;;  %s3270_s12 = smov 0   ;;  %s3272_s13 = smov 0  }
   0x5   :  { %s3274_s14 = smov 0   ;;  %s3276_s15 = smov 0  }
   0x6   :  { %s3278_s16 = smov 0   ;;  %s3280_s17 = smov 0  }
   0x7 LB: > { %s2492_s18 = sadd.s32 4294967295, %s3239_s17   ;;  %s2493_s19 = sadd.s32 4294967294, %s3239_s17   ;;  %s3239_s17 = sphi %s3280_s17, %s20_s17   ;;  %s3235_s16 = sphi %s3278_s16, %s4372_s16   ;;  %s3231_s15 = sphi %s3276_s15, %s4371_s15   ;;  %s3227_s14 = sphi %s3274_s14, %s4370_s14   ;;  %s3223_s13 = sphi %s3272_s13, %s4369_s13   ;;  %s3219_s12 = sphi %s3270_s12, %s4368_s12  }
   0x8   : > { %p52_p0 = scmp.ne.s32.totalorder %s3223_s13, %s3219_s12  ;;  %p3304_p1 = scmp.eq.s32.totalorder %s2492_s18, 0 }
   0x9   : > { %p3308_p2 = scmp.eq.s32.totalorder %s2492_s18, 1  ;;  %p136_p3 = scmp.eq.s32.totalorder %s2493_s19, 1 }
   0xa   : > { %s4333_s20 = scalar_select %p3304_p1, 1, 0 }
   0xb   : > { %s4334_s21 = scalar_select %p3308_p2, 1, 0 }
   0xc   : > { %p3314_p4 = por %p3304_p1, %p52_p0  ;;  %p2494_p5 = scmp.ge.s32.totalorder %s3239_s17, 1 }
   0xd   : > { %p3319_p6 = por %p136_p3, %p52_p0  ;;  %p143_p7 = scmp.lt.s32.totalorder %s3239_s17, 3 }
   0xe   : > { %s4335_s22 = scalar_select %p3314_p4, 1, 0 }
   0xf   : > { %s4336_s23 = scalar_select %p3319_p6, 1, 0 }
  0x10   : > { %p3324_p8 = pnand %p2494_p5, %p143_p7  ;;  %s3241_s25 = smov [#allocation5]  }
  0x11   : > { %s157_s26 = sshll.u32 %s3241_s25, 4  ;;  %s32_s28 = sadd.s32 1, %s3235_s16  ;;  %s158_s26 = int_to_ptr.vmem [resolvable:$true] %s157_s26 }
  0x12   : > { %s4337_s24 = scalar_select %p3324_p8, 1, 0 }
  0x13   : > { %p3016_p9 = pneg %p3324_p8  ;;  %s3095_s4 = scalar_lea.hbm %s4326_s1, 1024 }
  0x14   : > { %p3096_p12 = scmp.ne.s32.totalorder %s4326_s1, %s3095_s4  ;;  %p3102_p5 = scmp.lt.u32.totalorder %s3095_s4, %s4326_s1 }
  0x15   : > { %p3333_p11 = pnand %p3016_p9, %p3304_p1 }
  0x17   : > { %p3097_p13 = pneg %p3333_p11 }
  0x19   : > { %p3098_p0 = pnand %p3097_p13, %p3096_p12 }
  0x1b   : > { %p3099_p3 = pneg %p3098_p0 }
  0x1d   : > { %p3104_p7 = pnand %p3102_p5, %p3099_p3 }
  0x1f   : > { %3107 = shalt.err (!%p3104_p7)
}
  0x20   : > { %s3108_s9 = scalar_lea.vmem %s158_s26, 1024  ;;  %p3116_p1 = scmp.lt.s32.totalorder %s158_s26, %s158_s26 }
  0x21   : > { %p3109_p9 = scmp.ne.s32.totalorder %s158_s26, %s3108_s9  ;;  %p3117_p4 = scmp.lt.s32.totalorder %s3108_s9, %s3108_s9 }
  0x23   : > { %p3111_p10 = pnand %p3109_p9, %p3097_p13  ;;  %p3118_p8 = por %p3117_p4, %p3116_p1 }
  0x25   : > { %p3112_p6 = pneg %p3111_p10 }
  0x27   : > { %p3119_p2 = pnand %p3118_p8, %p3112_p6 }
  0x29   : > { %3122 = shalt.err (!%p3119_p2)
}
  0x2a   : > { %s3242_s10 = smov 64   ;;  %s3243_s11 = smov 4  }
  0x2b   : > { %3019 = dma.hbm_to_vmem [thread:$0]  (!%p3333_p11), %s4326_s1, 1024, %s158_s26, [#allocation6], %s3242_s10, %s3242_s10, %s3243_s11  }
  0x2c   : > { %p34_p1 = scmp.ge.s32.totalorder %s32_s28, 2  ;;  %s39_s25 = sadd.s32 1, %s3227_s14 }
  0x2d   : > { %p46_p2 = scmp.ne.s32.totalorder %s3227_s14, %s3223_s13  ;;  %p47_p4 = scmp.eq.s32.totalorder %s3239_s17, 0 }
  0x2e   : > { %s4374_s28 = smov (%p34_p1, %s32_s28), 0  ;;  %p4340_p8 = scmp.ne.s32.totalorder %s4334_s21, 0 }
  0x2f   : > { %p3360_p6 = por %p47_p4, %p46_p2  ;;  %s36_s27 = ssub.s32 %s3235_s16, %s4374_s28 }
  0x30   : > { %p3366_p10 = por %p4340_p8, %p46_p2  ;;  %p3029_p12 = scmp.lt.s32.totalorder %s3239_s17, 2 }
  0x31   : > { %p37_p11 = scmp.eq.s32.totalorder %s36_s27, 0  ;;  %s178_s26 = sand.u32 1, %s3227_s14  }
  0x32   : > { %s2498_s4 = sshll.u32 %s178_s26, 8  ;;  %s2518_s6 = sshll.u32 %s3235_s16, 12 }
  0x33   : > { %s3375_s5 = scalar_select %p37_p11, %s3227_s14, %s39_s25  }
  0x34   : > { %s3381_s9 = scalar_lea.hbm %s4325_s0, %s2518_s6  ;;  %s182_s21 = scalar_lea.vmem [#allocation2], %s2498_s4 }
  0x35   : > { %s189_s10 = sshll.u32 %s182_s21, 4  ;;  %p3387_p13 = pnand %p3029_p12, %p3360_p6  ;;  %s3383_s10 = int_to_ptr.vmem [resolvable:$true] %s189_s10 }
  0x36   : > { %s3391_s18 = scalar_lea.sflag [#allocation3], %s178_s26  ;;  %s3123_s19 = scalar_lea.hbm %s3381_s9, 4096 }
  0x37   : > { %p3124_p0 = scmp.ne.s32.totalorder %s3381_s9, %s3123_s19  ;;  %p3125_p3 = pneg %p3387_p13 }
  0x38   : > { %s3128_s29 = scalar_lea.hbm %s4325_s0, 8192  ;;  %p3129_p9 = scmp.lt.u32.totalorder %s3381_s9, %s4325_s0 }
  0x39   : > { %p3126_p5 = pnand %p3125_p3, %p3124_p0  ;;  %p3130_p1 = scmp.lt.u32.totalorder %s3128_s29, %s3123_s19 }
  0x3a   : > { %p3132_p4 = scmp.lt.u32.totalorder %s3123_s19, %s3381_s9 }
  0x3b   : > { %p3127_p7 = pneg %p3126_p5  ;;  %p3131_p2 = por %p3130_p1, %p3129_p9 }
  0x3d   : > { %p3133_p6 = por %p3132_p4, %p3131_p2 }
  0x3f   : > { %p3134_p8 = pnand %p3133_p6, %p3127_p7 }
  0x41   : > { %3137 = shalt.err (!%p3134_p8)
}
  0x42   : > { %s3138_s26 = scalar_lea.vmem %s3383_s10, 4096  ;;  %s3244_s7 = smov [#allocation2]  }
  0x43   : > { %p3139_p12 = scmp.ne.s32.totalorder %s3383_s10, %s3138_s26  ;;  %s3143_s8 = sshll.u32 %s3244_s7, 4  ;;  %s3144_s8 = int_to_ptr.vmem [resolvable:$false] %s3143_s8 }
  0x44   : > { %s3145_s21 = scalar_lea.vmem %s3144_s8, 8192  ;;  %p3146_p5 = scmp.lt.s32.totalorder %s3383_s10, %s3144_s8 }
  0x45   : > { %p3141_p11 = pnand %p3139_p12, %p3125_p3  ;;  %p3147_p9 = scmp.lt.s32.totalorder %s3145_s21, %s3138_s26 }
  0x47   : > { %p3142_p0 = pneg %p3141_p11  ;;  %p3148_p1 = por %p3147_p9, %p3146_p5 }
  0x49   : > { %p3149_p2 = pnand %p3148_p1, %p3142_p0 }
  0x4b   : > { %3152 = shalt.err (!%p3149_p2)
}
  0x4c   : > { %s3245_s19 = smov 128   ;;  %s3246_s25 = smov 8  }
  0x4d   : > { %3023 = dma.hbm_to_vmem [thread:$0]  (!%p3387_p13), %s3381_s9, 4096, %s3383_s10, %s3391_s18, %s3245_s19, %s3245_s19, %s3246_s25  }
  0x4e   : > { %p4343_p3 = scmp.ne.s32.totalorder %s4337_s24, 0 }
  0x50   : > { %201 = sbr.rel (%p4343_p3) target bundleno = 736 (0x2e0), region = 32 }
  0x57   : > { %s3422_s27 = sand.u32 1, %s3223_s13   ;;  %p4344_p7 = scmp.ne.s32.totalorder %s4335_s22, 0 }
  0x58   : > { %s2502_s29 = sshll.u32 %s3422_s27, 8  ;;  %s204_s4 = scalar_lea.sflag [#allocation3], %s3422_s27 }
  0x59   : > { %s3428_s6 = scalar_lea.vmem [#allocation2], %s2502_s29 }
  0x5a   : > { %3206 = dma.done.wait (%p4344_p7), %s204_s4, 4096  }
  0x5b   : > { %3208 = vsyncadd (%p4344_p7), %s204_s4, 4294963200  ;;  %p4345_p13 = scmp.ne.s32.totalorder %s4333_s20, 0 }
  0x5d   : > { %3210 = dma.done.wait (%p4345_p13), [#allocation6], 1024  }
  0x5e   : > { %3212 = vsyncadd (%p4345_p13), [#allocation6], 4294966272  ;;  %v3087_v0 = vld [vmem:[#allocation5] sm:$0xff]   ;;  %v3088_v1 = vld [vmem:[#allocation5 + $0x8] sm:$0xff]   ;;  %s3561_s24 = scalar_lea.vmem [#allocation7], %s2502_s29  ;;  %s2519_s9 = sshll.u32 %s3231_s15, 12 }
  0x5f   : > { %2592 = vmatprep.subr.bf16.mxu0 %v3087_v0  ;;  %2736 = vmatprep.subr.bf16.mxu1 %v3087_v0  ;;  %v3089_v2 = vld [vmem:[#allocation5 + $0x10] sm:$0xff]   ;;  %v3090_v3 = vld [vmem:[#allocation5 + $0x18] sm:$0xff]   ;;  %v245_v4 = vld [vmem:[%s3428_s6] sm:$0xff]  ;;  %s2382_s10 = sshll.u32 %s3561_s24, 4  ;;  %s4272_s26 = scalar_lea.hbm %s4328_s3, %s2519_s9  ;;  %s4274_s10 = int_to_ptr.vmem [resolvable:$true] %s2382_s10 }
  0x60   : > { %2593 = vmatpush3.bf16.msra.mxu0 %v3087_v0  ;;  %2744 = vmatpush3.bf16.msra.mxu1 %v3087_v0  ;;  %v261_v5 = vld [vmem:[%s3428_s6 + $0x80] sm:$0xff]  ;;  %v277_v6 = vunpack.c.l.s8.bf16 %v245_v4  ;;  %v3092_v9 = vld [vmem:[#allocation5 + $0x28] sm:$0xff]   ;;  %v3093_v10 = vld [vmem:[#allocation5 + $0x30] sm:$0xff]   ;;  %v278_v14 = vunpack.c.h.s8.bf16 %v245_v4  ;;  %s2368_s15 = scalar_lea.sflag [#allocation4], %s3422_s27  ;;  %s3153_s7 = scalar_lea.vmem %s4274_s10, 4096 }
  0x61   : > { %2594 = vmatprep.subr.bf16.mxu0 %v3088_v1  ;;  %2737 = vmatprep.subr.bf16.mxu1 %v3088_v1  ;;  %v309_v7 = vunpack.c.l.s8.bf16 %v261_v5  ;;  %v3091_v8 = vld [vmem:[#allocation5 + $0x20] sm:$0xff]   ;;  %v3094_v11 = vld [vmem:[#allocation5 + $0x38] sm:$0xff]   ;;  %v246_v12 = vld [vmem:[%s3428_s6 + $0x8] sm:$0xff]  ;;  %v310_v15 = vunpack.c.h.s8.bf16 %v261_v5  ;;  %p3154_p4 = scmp.ne.s32.totalorder %s4274_s10, %s3153_s7  ;;  %s3247_s8 = smov [#allocation7]  }
  0x62   : > { %2608 = vmatprep.mubr.bf16.mxu0 %v277_v6  ;;  %v262_v13 = vld [vmem:[%s3428_s6 + $0x88] sm:$0xff]  ;;  %v279_v16 = vunpack.c.l.s8.bf16 %v246_v12  ;;  %v247_v18 = vld [vmem:[%s3428_s6 + $0x10] sm:$0xff]  ;;  %v280_v20 = vunpack.c.h.s8.bf16 %v246_v12  ;;  %v248_v24 = vld [vmem:[%s3428_s6 + $0x18] sm:$0xff]  ;;  %s3157_s21 = sshll.u32 %s3247_s8, 4  ;;  %s3158_s21 = int_to_ptr.vmem [resolvable:$false] %s3157_s21 }
  0x63   : > { %2672 = vmatprep.mubr.bf16.mxu1 %v309_v7  ;;  %v311_v17 = vunpack.c.l.s8.bf16 %v262_v13  ;;  %v263_v19 = vld [vmem:[%s3428_s6 + $0x90] sm:$0xff]  ;;  %v312_v21 = vunpack.c.h.s8.bf16 %v262_v13  ;;  %v281_v22 = vunpack.c.l.s8.bf16 %v247_v18  ;;  %v264_v25 = vld [vmem:[%s3428_s6 + $0x98] sm:$0xff]  ;;  %v282_v26 = vunpack.c.h.s8.bf16 %v247_v18  ;;  %v249_v30 = vld [vmem:[%s3428_s6 + $0x20] sm:$0xff]  ;;  %p3155_p6 = pnand %p3154_p4, %p3366_p10  ;;  %s3159_s19 = scalar_lea.vmem %s3158_s21, 8192 }
  0x64   : > { %2595 = vmatpush3.bf16.msra.mxu0 %v3088_v1  ;;  %2745 = vmatpush3.bf16.msra.mxu1 %v3088_v1  ;;  %v313_v23 = vunpack.c.l.s8.bf16 %v263_v19  ;;  %v314_v27 = vunpack.c.h.s8.bf16 %v263_v19  ;;  %v283_v28 = vunpack.c.l.s8.bf16 %v248_v24  ;;  %v315_v29 = vunpack.c.l.s8.bf16 %v264_v25  ;;  %v265_v31 = vld [vmem:[%s3428_s6 + $0xa0] sm:$0xff]  ;;  %v250_v36 = vld [vmem:[%s3428_s6 + $0x28] sm:$0xff]  ;;  %v251_v42 = vld [vmem:[%s3428_s6 + $0x30] sm:$0xff]  ;;  %p3160_p12 = scmp.lt.s32.totalorder %s4274_s10, %s3158_s21  ;;  %p3161_p11 = scmp.lt.s32.totalorder %s3159_s19, %s3153_s7 }
  0x65   : > { %2596 = vmatprep.subr.bf16.mxu0 %v3089_v2  ;;  %2738 = vmatprep.subr.bf16.mxu1 %v3089_v2  ;;  %v284_v32 = vunpack.c.h.s8.bf16 %v248_v24  ;;  %v316_v33 = vunpack.c.h.s8.bf16 %v264_v25  ;;  %v285_v34 = vunpack.c.l.s8.bf16 %v249_v30  ;;  %v317_v35 = vunpack.c.l.s8.bf16 %v265_v31  ;;  %v266_v37 = vld [vmem:[%s3428_s6 + $0xa8] sm:$0xff]  ;;  %v267_v43 = vld [vmem:[%s3428_s6 + $0xb0] sm:$0xff]  ;;  %v252_v48 = vld [vmem:[%s3428_s6 + $0x38] sm:$0xff]  ;;  %p3156_p8 = pneg %p3155_p6 }
  0x66   : > { %v286_v38 = vunpack.c.h.s8.bf16 %v249_v30  ;;  %v318_v39 = vunpack.c.h.s8.bf16 %v265_v31  ;;  %v287_v40 = vunpack.c.l.s8.bf16 %v250_v36  ;;  %v319_v41 = vunpack.c.l.s8.bf16 %v266_v37  ;;  %v268_v49 = vld [vmem:[%s3428_s6 + $0xb8] sm:$0xff]  ;;  %v253_v54 = vld [vmem:[%s3428_s6 + $0x40] sm:$0xff]  ;;  %v254_v60 = vld [vmem:[%s3428_s6 + $0x48] sm:$0xff]  ;;  %p3162_p0 = por %p3161_p11, %p3160_p12 }
  0x67   : > { %v288_v44 = vunpack.c.h.s8.bf16 %v250_v36  ;;  %v320_v45 = vunpack.c.h.s8.bf16 %v266_v37  ;;  %v289_v46 = vunpack.c.l.s8.bf16 %v251_v42  ;;  %v321_v47 = vunpack.c.l.s8.bf16 %v267_v43  ;;  %v269_v55 = vld [vmem:[%s3428_s6 + $0xc0] sm:$0xff]  ;;  %v270_v61 = vld [vmem:[%s3428_s6 + $0xc8] sm:$0xff] }
  0x68   : > { %2597 = vmatpush3.bf16.msra.mxu0 %v3089_v2  ;;  %2746 = vmatpush3.bf16.msra.mxu1 %v3089_v2  ;;  %v290_v50 = vunpack.c.h.s8.bf16 %v251_v42  ;;  %v322_v51 = vunpack.c.h.s8.bf16 %v267_v43  ;;  %v291_v52 = vunpack.c.l.s8.bf16 %v252_v48  ;;  %v323_v53 = vunpack.c.l.s8.bf16 %v268_v49  ;;  %v255_v2 = vld [vmem:[%s3428_s6 + $0x50] sm:$0xff]  ;;  %v1078_v43 = vld [vmem:[%s4327_s2] sm:$0x3]  ;;  %p3163_p5 = pnand %p3162_p0, %p3156_p8 }
  0x69   : > { %2598 = vmatprep.subr.bf16.mxu0 %v3090_v3  ;;  %2739 = vmatprep.subr.bf16.mxu1 %v3090_v3  ;;  %v292_v56 = vunpack.c.h.s8.bf16 %v252_v48  ;;  %v324_v57 = vunpack.c.h.s8.bf16 %v268_v49  ;;  %v293_v58 = vunpack.c.l.s8.bf16 %v253_v54  ;;  %v325_v59 = vunpack.c.l.s8.bf16 %v269_v55 }
  0x6a   : > { %v294_v62 = vunpack.c.h.s8.bf16 %v253_v54  ;;  %v326_v63 = vunpack.c.h.s8.bf16 %v269_v55  ;;  %v295_v0 = vunpack.c.l.s8.bf16 %v254_v60  ;;  %v327_v1 = vunpack.c.l.s8.bf16 %v270_v61 }
  0x6b   : > { %v296_v4 = vunpack.c.h.s8.bf16 %v254_v60  ;;  %v328_v5 = vunpack.c.h.s8.bf16 %v270_v61  ;;  %v297_v6 = vunpack.c.l.s8.bf16 %v255_v2 }
  0x6c   : > { %2599 = vmatpush3.bf16.msra.mxu0 %v3090_v3  ;;  %2747 = vmatpush3.bf16.msra.mxu1 %v3090_v3  ;;  %v271_v3 = vld [vmem:[%s3428_s6 + $0xd0] sm:$0xff] }
  0x6d   : > { %2600 = vmatprep.subr.bf16.mxu0 %v3091_v8  ;;  %2740 = vmatprep.subr.bf16.mxu1 %v3091_v8  ;;  %v329_v7 = vunpack.c.l.s8.bf16 %v271_v3 }
  0x70   : > { %2601 = vmatpush3.bf16.msra.mxu0 %v3091_v8  ;;  %2748 = vmatpush3.bf16.msra.mxu1 %v3091_v8  ;;  %v256_v8 = vld [vmem:[%s3428_s6 + $0x58] sm:$0xff] }
  0x71   : > { %2602 = vmatprep.subr.bf16.mxu0 %v3092_v9  ;;  %2741 = vmatprep.subr.bf16.mxu1 %v3092_v9  ;;  %v299_v12 = vunpack.c.l.s8.bf16 %v256_v8 }
  0x74   : > { %2603 = vmatpush3.bf16.msra.mxu0 %v3092_v9  ;;  %2749 = vmatpush3.bf16.msra.mxu1 %v3092_v9  ;;  %v272_v9 = vld [vmem:[%s3428_s6 + $0xd8] sm:$0xff] }
  0x75   : > { %2604 = vmatprep.subr.bf16.mxu0 %v3093_v10  ;;  %2742 = vmatprep.subr.bf16.mxu1 %v3093_v10  ;;  %v331_v13 = vunpack.c.l.s8.bf16 %v272_v9 }
  0x78   : > { %2605 = vmatpush3.bf16.msra.mxu0 %v3093_v10  ;;  %2750 = vmatpush3.bf16.msra.mxu1 %v3093_v10  ;;  %v298_v10 = vunpack.c.h.s8.bf16 %v255_v2 }
  0x79   : > { %2606 = vmatprep.subr.bf16.mxu0 %v3094_v11  ;;  %2743 = vmatprep.subr.bf16.mxu1 %v3094_v11 }
  0x7c   : > { %2607 = vmatpush3.bf16.msra.mxu0 %v3094_v11  ;;  %2751 = vmatpush3.bf16.msra.mxu1 %v3094_v11  ;;  %v330_v11 = vunpack.c.h.s8.bf16 %v271_v3 }
  0x7f   : > { %2609 = vmatmul.mubr.bf16.vlgmr.msra.gmra.mrb[0].mxu0 %v278_v14  ;;  %2673 = vmatmul.mubr.bf16.vlgmr.msra.gmra.mrb[0].mxu1 %v310_v15  ;;  %v257_v14 = vld [vmem:[%s3428_s6 + $0x60] sm:$0xff] }
  0x80   : > { %2612 = vmatprep.mubr.bf16.mxu0 %v279_v16  ;;  %2676 = vmatprep.mubr.bf16.mxu1 %v311_v17  ;;  %v273_v15 = vld [vmem:[%s3428_s6 + $0xe0] sm:$0xff]  ;;  %v300_v16 = vunpack.c.h.s8.bf16 %v256_v8  ;;  %v332_v17 = vunpack.c.h.s8.bf16 %v272_v9  ;;  %v301_v18 = vunpack.c.l.s8.bf16 %v257_v14 }
  0x81   : > { %v333_v19 = vunpack.c.l.s8.bf16 %v273_v15 }
  0x87   : > { %2613 = vmatmul.mubr.bf16.gmra.mrb[4].mxu0 %v280_v20  ;;  %2677 = vmatmul.mubr.bf16.gmra.mrb[4].mxu1 %v312_v21  ;;  %v258_v20 = vld [vmem:[%s3428_s6 + $0x68] sm:$0xff] }
  0x88   : > { %2616 = vmatprep.mubr.bf16.mxu0 %v281_v22  ;;  %2680 = vmatprep.mubr.bf16.mxu1 %v313_v23  ;;  %v274_v21 = vld [vmem:[%s3428_s6 + $0xe8] sm:$0xff]  ;;  %v302_v22 = vunpack.c.h.s8.bf16 %v257_v14  ;;  %v334_v23 = vunpack.c.h.s8.bf16 %v273_v15  ;;  %v303_v24 = vunpack.c.l.s8.bf16 %v258_v20 }
  0x89   : > { %v335_v25 = vunpack.c.l.s8.bf16 %v274_v21 }
  0x8f   : > { %2617 = vmatmul.mubr.bf16.gmra.mrb[8].mxu0 %v282_v26  ;;  %2681 = vmatmul.mubr.bf16.gmra.mrb[8].mxu1 %v314_v27  ;;  %v259_v26 = vld [vmem:[%s3428_s6 + $0x70] sm:$0xff] }
  0x90   : > { %2620 = vmatprep.mubr.bf16.mxu0 %v283_v28  ;;  %2684 = vmatprep.mubr.bf16.mxu1 %v315_v29  ;;  %v275_v27 = vld [vmem:[%s3428_s6 + $0xf0] sm:$0xff]  ;;  %v304_v28 = vunpack.c.h.s8.bf16 %v258_v20  ;;  %v336_v29 = vunpack.c.h.s8.bf16 %v274_v21  ;;  %v305_v30 = vunpack.c.l.s8.bf16 %v259_v26 }
  0x91   : > { %v337_v31 = vunpack.c.l.s8.bf16 %v275_v27 }
  0x97   : > { %2621 = vmatmul.mubr.bf16.gmra.mrb[12].mxu0 %v284_v32  ;;  %2685 = vmatmul.mubr.bf16.gmra.mrb[12].mxu1 %v316_v33  ;;  %v260_v32 = vld [vmem:[%s3428_s6 + $0x78] sm:$0xff] }
  0x98   : > { %2624 = vmatprep.mubr.bf16.mxu0 %v285_v34  ;;  %2688 = vmatprep.mubr.bf16.mxu1 %v317_v35  ;;  %v276_v33 = vld [vmem:[%s3428_s6 + $0xf8] sm:$0xff]  ;;  %v306_v34 = vunpack.c.h.s8.bf16 %v259_v26  ;;  %v338_v35 = vunpack.c.h.s8.bf16 %v275_v27  ;;  %v307_v36 = vunpack.c.l.s8.bf16 %v260_v32 }
  0x99   : > { %v339_v37 = vunpack.c.l.s8.bf16 %v276_v33 }
  0x9f   : > { %2625 = vmatmul.mubr.bf16.gmra.mrb[16].mxu0 %v286_v38  ;;  %2689 = vmatmul.mubr.bf16.gmra.mrb[16].mxu1 %v318_v39  ;;  %v308_v38 = vunpack.c.h.s8.bf16 %v260_v32  ;;  %v340_v39 = vunpack.c.h.s8.bf16 %v276_v33 }
  0xa0   : > { %2628 = vmatprep.mubr.bf16.mxu0 %v287_v40  ;;  %2692 = vmatprep.mubr.bf16.mxu1 %v319_v41  ;;  %v1079_v40 = vlaneseq }
  0xa2   : > { %v1080_v41 = vshrl.u32 %v1079_v40, 7 }
  0xa4   : > { %v1081_v42 = vsub.s32 0, %v1080_v41 }
  0xa6   : > { %v3473_v48 = vrot.slane %v1078_v43, %v1081_v42 }
  0xa7   : > { %2629 = vmatmul.mubr.bf16.gmra.mrb[20].mxu0 %v288_v44  ;;  %2693 = vmatmul.mubr.bf16.gmra.mrb[20].mxu1 %v320_v45  ;;  %v1213_v44 = vsub.s32 1, %v1080_v41 }
  0xa8   : > { %2632 = vmatprep.mubr.bf16.mxu0 %v289_v46  ;;  %2696 = vmatprep.mubr.bf16.mxu1 %v321_v47 }
  0xaf   : > { %2633 = vmatmul.mubr.bf16.gmra.mrb[24].mxu0 %v290_v50  ;;  %2697 = vmatmul.mubr.bf16.gmra.mrb[24].mxu1 %v322_v51 }
  0xb0   : > { %2636 = vmatprep.mubr.bf16.mxu0 %v291_v52  ;;  %2700 = vmatprep.mubr.bf16.mxu1 %v323_v53  ;;  %v3475_v52 = vrot.slane %v1078_v43, %v1213_v44 }
  0xb7   : > { %2637 = vmatmul.mubr.bf16.gmra.mrb[28].mxu0 %v292_v56  ;;  %2701 = vmatmul.mubr.bf16.gmra.mrb[28].mxu1 %v324_v57 }
  0xb8   : > { %2640 = vmatprep.mubr.bf16.mxu0 %v293_v58  ;;  %2704 = vmatprep.mubr.bf16.mxu1 %v325_v59 }
  0xbf   : > { %2641 = vmatmul.mubr.bf16.gmra.mrb[32].mxu0 %v294_v62  ;;  %2705 = vmatmul.mubr.bf16.gmra.mrb[32].mxu1 %v326_v63 }
  0xc0   : > { %2644 = vmatprep.mubr.bf16.mxu0 %v295_v0  ;;  %2708 = vmatprep.mubr.bf16.mxu1 %v327_v1 }
  0xc7   : > { %2645 = vmatmul.mubr.bf16.gmra.mrb[36].mxu0 %v296_v4  ;;  %2709 = vmatmul.mubr.bf16.gmra.mrb[36].mxu1 %v328_v5 }
  0xc8   : > { %2648 = vmatprep.mubr.bf16.mxu0 %v297_v6  ;;  %2712 = vmatprep.mubr.bf16.mxu1 %v329_v7 }
  0xcf   : > { %2649 = vmatmul.mubr.bf16.gmra.mrb[40].mxu0 %v298_v10  ;;  %2713 = vmatmul.mubr.bf16.gmra.mrb[40].mxu1 %v330_v11 }
  0xd0   : > { %2652 = vmatprep.mubr.bf16.mxu0 %v299_v12  ;;  %2716 = vmatprep.mubr.bf16.mxu1 %v331_v13 }
  0xd7   : > { %2653 = vmatmul.mubr.bf16.gmra.mrb[44].mxu0 %v300_v16  ;;  %2717 = vmatmul.mubr.bf16.gmra.mrb[44].mxu1 %v332_v17 }
  0xd8   : > { %2656 = vmatprep.mubr.bf16.mxu0 %v301_v18  ;;  %2720 = vmatprep.mubr.bf16.mxu1 %v333_v19 }
  0xdf   : > { %2657 = vmatmul.mubr.bf16.gmra.mrb[48].mxu0 %v302_v22  ;;  %2721 = vmatmul.mubr.bf16.gmra.mrb[48].mxu1 %v334_v23 }
  0xe0   : > { %2660 = vmatprep.mubr.bf16.mxu0 %v303_v24  ;;  %2724 = vmatprep.mubr.bf16.mxu1 %v335_v25 }
  0xe7   : > { %2661 = vmatmul.mubr.bf16.gmra.mrb[52].mxu0 %v304_v28  ;;  %2725 = vmatmul.mubr.bf16.gmra.mrb[52].mxu1 %v336_v29 }
  0xe8   : > { %2664 = vmatprep.mubr.bf16.mxu0 %v305_v30  ;;  %2728 = vmatprep.mubr.bf16.mxu1 %v337_v31 }
  0xef   : > { %2665 = vmatmul.mubr.bf16.gmra.mrb[56].mxu0 %v306_v34  ;;  %2729 = vmatmul.mubr.bf16.gmra.mrb[56].mxu1 %v338_v35 }
  0xf0   : > { %2668 = vmatprep.mubr.bf16.mxu0 %v307_v36  ;;  %2732 = vmatprep.mubr.bf16.mxu1 %v339_v37 }
  0xf7   : > { %2669 = vmatmul.mubr.bf16.gmra.mrb[60].mxu0 %v308_v38  ;;  %2733 = vmatmul.mubr.bf16.gmra.mrb[60].mxu1 %v340_v39 }
 0x152   : > { %v2610_v45 = vpop.f32.mrb[0].mxu0  ;;  %v2674_v46 = vpop.f32.mrb[0].mxu1 }
 0x153   : > { %v2756_v47 = vtrunc.f32 %v2610_v45  ;;  %v2884_v49 = vtrunc.f32 %v2674_v46  ;;  %v439_v50 = vpop.f32.mrb[1].mxu0  ;;  %v695_v51 = vpop.f32.mrb[1].mxu1 }
 0x154   : > { %v2752_v53 = vtrunc.f32 %v439_v50  ;;  %v2880_v54 = vtrunc.f32 %v695_v51  ;;  %v2611_v55 = vpop.f32.mrb[2].mxu0  ;;  %v2675_v56 = vpop.f32.mrb[2].mxu1 }
 0x155   : > { %v2757_v57 = vcvt.f32.s32 %v2756_v47  ;;  %v2885_v58 = vcvt.f32.s32 %v2884_v49  ;;  %v2758_v59 = vtrunc.f32 %v2611_v55  ;;  %v2886_v60 = vtrunc.f32 %v2675_v56  ;;  %v442_v61 = vpop.f32.mrb[3].mxu0  ;;  %v698_v62 = vpop.f32.mrb[3].mxu1 }
 0x156   : > { %v2753_v63 = vcvt.f32.s32 %v2752_v53  ;;  %v2881_v0 = vcvt.f32.s32 %v2880_v54  ;;  %v2754_v1 = vtrunc.f32 %v442_v61  ;;  %v2882_v2 = vtrunc.f32 %v698_v62 }
 0x157   : > { %v1085_v3 = vmul.u32 %v2757_v57, %v3473_v48  ;;  %v1149_v4 = vmul.u32 %v2885_v58, %v3473_v48  ;;  %v2759_v5 = vcvt.f32.s32 %v2758_v59  ;;  %v2887_v6 = vcvt.f32.s32 %v2886_v60 }
 0x158   : > { %v1083_v7 = vmul.u32 %v2753_v63, %v3473_v48  ;;  %v1147_v8 = vmul.u32 %v2881_v0, %v3473_v48  ;;  %v2755_v9 = vcvt.f32.s32 %v2754_v1  ;;  %v2883_v10 = vcvt.f32.s32 %v2882_v2 }
 0x159   : > { %v1217_v11 = vadd.s32 %v3475_v52, %v1085_v3  ;;  %v1281_v12 = vadd.s32 %v3475_v52, %v1149_v4  ;;  %v1086_v13 = vmul.u32 %v2759_v5, %v3473_v48  ;;  %v1150_v14 = vmul.u32 %v2887_v6, %v3473_v48 }
 0x15a   : > { %v1215_v15 = vadd.s32 %v3475_v52, %v1083_v7  ;;  %v1279_v16 = vadd.s32 %v3475_v52, %v1147_v8  ;;  %v1084_v17 = vmul.u32 %v2755_v9, %v3473_v48  ;;  %v1148_v18 = vmul.u32 %v2883_v10, %v3473_v48  ;;  %v3489_v19 = vpop.f32.mrb[4].mxu0  ;;  %v3491_v20 = vpop.f32.mrb[4].mxu1 }
 0x15b   : > { %v1345_v21 = vshra.s32 %v1217_v11, 8  ;;  %v1409_v22 = vshra.s32 %v1281_v12, 8  ;;  %v1218_v23 = vadd.s32 %v3475_v52, %v1086_v13  ;;  %v1282_v24 = vadd.s32 %v3475_v52, %v1150_v14  ;;  %v3495_v25 = vpop.f32.mrb[5].mxu0  ;;  %v3497_v26 = vpop.f32.mrb[5].mxu1 }
 0x15c   : > { %v1343_v27 = vshra.s32 %v1215_v15, 8  ;;  %v1407_v28 = vshra.s32 %v1279_v16, 8  ;;  %v1216_v29 = vadd.s32 %v3475_v52, %v1084_v17  ;;  %v1280_v30 = vadd.s32 %v3475_v52, %v1148_v18  ;;  %v3501_v31 = vpop.f32.mrb[6].mxu0  ;;  %v3503_v32 = vpop.f32.mrb[6].mxu1 }
 0x15d   : > { %vm1475_vm0 = vcmp.gt.s32.totalorder %v1345_v21, 4294967169  ;;  %vm1603_vm1 = vcmp.gt.s32.totalorder %v1409_v22, 4294967169  ;;  %v1346_v33 = vshra.s32 %v1218_v23, 8  ;;  %v1410_v34 = vshra.s32 %v1282_v24, 8  ;;  %v3505_v35 = vpop.f32.mrb[7].mxu0  ;;  %v3507_v36 = vpop.f32.mrb[7].mxu1 }
 0x15e   : > { %v1476_v37 = vsel %vm1475_vm0, %v1345_v21, 4294967169  ;;  %v1604_v38 = vsel %vm1603_vm1, %v1409_v22, 4294967169  ;;  %vm1471_vm2 = vcmp.gt.s32.totalorder %v1343_v27, 4294967169  ;;  %vm1599_vm3 = vcmp.gt.s32.totalorder %v1407_v28, 4294967169 }
 0x15f   : > { %vm1731_vm4 = vcmp.lt.s32.totalorder %v1476_v37, 127  ;;  %vm1859_vm5 = vcmp.lt.s32.totalorder %v1604_v38, 127  ;;  %v1472_v39 = vsel %vm1471_vm2, %v1343_v27, 4294967169  ;;  %v1600_v40 = vsel %vm1599_vm3, %v1407_v28, 4294967169 }
 0x160   : > { %v1732_v41 = vsel %vm1731_vm4, %v1476_v37, 127  ;;  %v1860_v42 = vsel %vm1859_vm5, %v1604_v38, 127  ;;  %vm1727_vm6 = vcmp.lt.s32.totalorder %v1472_v39, 127  ;;  %vm1855_vm7 = vcmp.lt.s32.totalorder %v1600_v40, 127 }
 0x161   : > { %vm1987_vm8 = vcmp.gt.s32.totalorder %v1732_v41, 0  ;;  %vm2115_vm9 = vcmp.gt.s32.totalorder %v1860_v42, 0  ;;  %v1728_v43 = vsel %vm1727_vm6, %v1472_v39, 127  ;;  %v1856_v44 = vsel %vm1855_vm7, %v1600_v40, 127 }
 0x162   : > { %v3509_v45 = vsel %vm1987_vm8, %v1732_v41, 0  ;;  %v3511_v46 = vsel %vm2115_vm9, %v1860_v42, 0  ;;  %vm1983_vm10 = vcmp.gt.s32.totalorder %v1728_v43, 0  ;;  %vm2111_vm11 = vcmp.gt.s32.totalorder %v1856_v44, 0  ;;  %v3513_v47 = vpop.f32.mrb[8].mxu0  ;;  %v3515_v49 = vpop.f32.mrb[8].mxu1 }
 0x163   : > { %v1984_v50 = vsel %vm1983_vm10, %v1728_v43, 0  ;;  %v2112_v51 = vsel %vm2111_vm11, %v1856_v44, 0  ;;  %vm1477_vm12 = vcmp.gt.s32.totalorder %v1346_v33, 4294967169  ;;  %vm1605_vm13 = vcmp.gt.s32.totalorder %v1410_v34, 4294967169  ;;  %v3517_v53 = vpop.f32.mrb[9].mxu0  ;;  %v3519_v54 = vpop.f32.mrb[9].mxu1 }
 0x164   : > { %v1478_v55 = vsel %vm1477_vm12, %v1346_v33, 4294967169  ;;  %v1606_v56 = vsel %vm1605_vm13, %v1410_v34, 4294967169  ;;  %v1344_v57 = vshra.s32 %v1216_v29, 8  ;;  %v1408_v58 = vshra.s32 %v1280_v30, 8  ;;  %v3521_v59 = vpop.f32.mrb[10].mxu0  ;;  %v3523_v60 = vpop.f32.mrb[10].mxu1 }
 0x165   : > { %vm1733_vm14 = vcmp.lt.s32.totalorder %v1478_v55, 127  ;;  %vm1861_vm15 = vcmp.lt.s32.totalorder %v1606_v56, 127  ;;  %v2764_v61 = vtrunc.f32 %v3489_v19  ;;  %v2892_v62 = vtrunc.f32 %v3491_v20  ;;  %v3527_v63 = vpop.f32.mrb[11].mxu0  ;;  %v3529_v0 = vpop.f32.mrb[11].mxu1 }
 0x166   : > { %v1734_v1 = vsel %vm1733_vm14, %v1478_v55, 127  ;;  %v1862_v2 = vsel %vm1861_vm15, %v1606_v56, 127  ;;  %vm1473_vm0 = vcmp.gt.s32.totalorder %v1344_v57, 4294967169  ;;  %vm1601_vm1 = vcmp.gt.s32.totalorder %v1408_v58, 4294967169 }
 0x167   : > { %vm1989_vm2 = vcmp.gt.s32.totalorder %v1734_v1, 0  ;;  %vm2117_vm3 = vcmp.gt.s32.totalorder %v1862_v2, 0  ;;  %v1474_v3 = vsel %vm1473_vm0, %v1344_v57, 4294967169  ;;  %v1602_v4 = vsel %vm1601_vm1, %v1408_v58, 4294967169 }
 0x168   : > { %v1990_v5 = vsel %vm1989_vm2, %v1734_v1, 0  ;;  %v2118_v6 = vsel %vm2117_vm3, %v1862_v2, 0  ;;  %vm1729_vm4 = vcmp.lt.s32.totalorder %v1474_v3, 127  ;;  %vm1857_vm5 = vcmp.lt.s32.totalorder %v1602_v4, 127 }
 0x169   : > { %v2240_v7 = vpack.c.b16 %v1990_v5, %v3509_v45  ;;  %v2288_v8 = vpack.c.b16 %v2118_v6, %v3511_v46  ;;  %v1730_v9 = vsel %vm1729_vm4, %v1474_v3, 127  ;;  %v1858_v10 = vsel %vm1857_vm5, %v1602_v4, 127 }
 0x16a   : > { %vm1985_vm6 = vcmp.gt.s32.totalorder %v1730_v9, 0  ;;  %vm2113_vm7 = vcmp.gt.s32.totalorder %v1858_v10, 0  ;;  %v2765_v11 = vcvt.f32.s32 %v2764_v61  ;;  %v2893_v12 = vcvt.f32.s32 %v2892_v62  ;;  %v3533_v13 = vpop.f32.mrb[12].mxu0  ;;  %v3535_v14 = vpop.f32.mrb[12].mxu1 }
 0x16b   : > { %v1986_v15 = vsel %vm1985_vm6, %v1730_v9, 0  ;;  %v2114_v16 = vsel %vm2113_vm7, %v1858_v10, 0  ;;  %v2760_v17 = vtrunc.f32 %v3495_v25  ;;  %v2888_v18 = vtrunc.f32 %v3497_v26  ;;  %v3539_v19 = vpop.f32.mrb[13].mxu0  ;;  %v3541_v20 = vpop.f32.mrb[13].mxu1 }
 0x16c   : > { %v2239_v21 = vpack.c.b16 %v1986_v15, %v1984_v50  ;;  %v2287_v22 = vpack.c.b16 %v2114_v16, %v2112_v51  ;;  %v1089_v23 = vmul.u32 %v2765_v11, %v3473_v48  ;;  %v1153_v24 = vmul.u32 %v2893_v12, %v3473_v48  ;;  %v3545_v27 = vpop.f32.mrb[14].mxu0  ;;  %v3547_v28 = vpop.f32.mrb[14].mxu1 }
 0x16d   : > { %v2761_v29 = vcvt.f32.s32 %v2760_v17  ;;  %v2889_v30 = vcvt.f32.s32 %v2888_v18  ;;  %v2766_v25 = vtrunc.f32 %v3501_v31  ;;  %v2894_v26 = vtrunc.f32 %v3503_v32  ;;  %v3551_v33 = vpop.f32.mrb[15].mxu0  ;;  %v3553_v34 = vpop.f32.mrb[15].mxu1 }
 0x16e   : > { %v2241_v37 = vpack.c.b8 %v2240_v7, %v2239_v21  ;;  %v2289_v38 = vpack.c.b8 %v2288_v8, %v2287_v22  ;;  %v1221_v39 = vadd.s32 %v3475_v52, %v1089_v23  ;;  %v1285_v40 = vadd.s32 %v3475_v52, %v1153_v24 }
 0x16f   : > { %v1087_v41 = vmul.u32 %v2761_v29, %v3473_v48  ;;  %v1151_v42 = vmul.u32 %v2889_v30, %v3473_v48  ;;  %v2767_v43 = vcvt.f32.s32 %v2766_v25  ;;  %v2895_v44 = vcvt.f32.s32 %v2894_v26 }
 0x170   : > { %2335 = vst [vmem:[%s3561_s24] sm:$0xff] %v2241_v37  ;;  %2351 = vst [vmem:[%s3561_s24 + $0x80] sm:$0xff] %v2289_v38  ;;  %v1349_v31 = vshra.s32 %v1221_v39, 8  ;;  %v1413_v32 = vshra.s32 %v1285_v40, 8  ;;  %v2762_v45 = vtrunc.f32 %v3505_v35  ;;  %v2890_v46 = vtrunc.f32 %v3507_v36 }
 0x171   : > { %v1219_v50 = vadd.s32 %v3475_v52, %v1087_v41  ;;  %v1283_v51 = vadd.s32 %v3475_v52, %v1151_v42  ;;  %v1090_v55 = vmul.u32 %v2767_v43, %v3473_v48  ;;  %v1154_v56 = vmul.u32 %v2895_v44, %v3473_v48 }
 0x172   : > { %vm1483_vm8 = vcmp.gt.s32.totalorder %v1349_v31, 4294967169  ;;  %vm1611_vm9 = vcmp.gt.s32.totalorder %v1413_v32, 4294967169  ;;  %v2763_v57 = vcvt.f32.s32 %v2762_v45  ;;  %v2891_v58 = vcvt.f32.s32 %v2890_v46  ;;  %v3571_v61 = vpop.f32.mrb[16].mxu0  ;;  %v3573_v62 = vpop.f32.mrb[16].mxu1 }
 0x173   : > { %v1484_v1 = vsel %vm1483_vm8, %v1349_v31, 4294967169  ;;  %v1612_v35 = vsel %vm1611_vm9, %v1413_v32, 4294967169  ;;  %v1347_v2 = vshra.s32 %v1219_v50, 8  ;;  %v1411_v36 = vshra.s32 %v1283_v51, 8  ;;  %v3575_v3 = vpop.f32.mrb[17].mxu0  ;;  %v3577_v4 = vpop.f32.mrb[17].mxu1 }
 0x174   : > { %vm1739_vm10 = vcmp.lt.s32.totalorder %v1484_v1, 127  ;;  %vm1867_vm11 = vcmp.lt.s32.totalorder %v1612_v35, 127  ;;  %v1222_v5 = vadd.s32 %v3475_v52, %v1090_v55  ;;  %v1286_v6 = vadd.s32 %v3475_v52, %v1154_v56  ;;  %v3581_v7 = vpop.f32.mrb[18].mxu0  ;;  %v3583_v8 = vpop.f32.mrb[18].mxu1 }
 0x175   : > { %v1740_v9 = vsel %vm1739_vm10, %v1484_v1, 127  ;;  %v1868_v10 = vsel %vm1867_vm11, %v1612_v35, 127  ;;  %vm1479_vm12 = vcmp.gt.s32.totalorder %v1347_v2, 4294967169  ;;  %vm1607_vm13 = vcmp.gt.s32.totalorder %v1411_v36, 4294967169  ;;  %v3585_v11 = vpop.f32.mrb[19].mxu0  ;;  %v3587_v12 = vpop.f32.mrb[19].mxu1 }
 0x176   : > { %vm1995_vm14 = vcmp.gt.s32.totalorder %v1740_v9, 0  ;;  %vm2123_vm15 = vcmp.gt.s32.totalorder %v1868_v10, 0  ;;  %v1480_v15 = vsel %vm1479_vm12, %v1347_v2, 4294967169  ;;  %v1608_v16 = vsel %vm1607_vm13, %v1411_v36, 4294967169 }
 0x177   : > { %v3589_v17 = vsel %vm1995_vm14, %v1740_v9, 0  ;;  %v3591_v18 = vsel %vm2123_vm15, %v1868_v10, 0  ;;  %vm1735_vm0 = vcmp.lt.s32.totalorder %v1480_v15, 127  ;;  %vm1863_vm1 = vcmp.lt.s32.totalorder %v1608_v16, 127 }
 0x178   : > { %v1736_v21 = vsel %vm1735_vm0, %v1480_v15, 127  ;;  %v1864_v22 = vsel %vm1863_vm1, %v1608_v16, 127  ;;  %v1350_v23 = vshra.s32 %v1222_v5, 8  ;;  %v1414_v24 = vshra.s32 %v1286_v6, 8 }
 0x179   : > { %vm1991_vm2 = vcmp.gt.s32.totalorder %v1736_v21, 0  ;;  %vm2119_vm3 = vcmp.gt.s32.totalorder %v1864_v22, 0  ;;  %v1088_v29 = vmul.u32 %v2763_v57, %v3473_v48  ;;  %v1152_v30 = vmul.u32 %v2891_v58, %v3473_v48 }
 0x17a   : > { %v3595_v25 = vsel %vm1991_vm2, %v1736_v21, 0  ;;  %v3597_v26 = vsel %vm2119_vm3, %v1864_v22, 0  ;;  %vm1485_vm4 = vcmp.gt.s32.totalorder %v1350_v23, 4294967169  ;;  %vm1613_vm5 = vcmp.gt.s32.totalorder %v1414_v24, 4294967169  ;;  %v3599_v37 = vpop.f32.mrb[20].mxu0  ;;  %v3601_v38 = vpop.f32.mrb[20].mxu1 }
 0x17b   : > { %v1486_v39 = vsel %vm1485_vm4, %v1350_v23, 4294967169  ;;  %v1614_v40 = vsel %vm1613_vm5, %v1414_v24, 4294967169  ;;  %v1220_v41 = vadd.s32 %v3475_v52, %v1088_v29  ;;  %v1284_v42 = vadd.s32 %v3475_v52, %v1152_v30  ;;  %v3605_v43 = vpop.f32.mrb[21].mxu0  ;;  %v3607_v44 = vpop.f32.mrb[21].mxu1 }
 0x17c   : > { %vm1741_vm6 = vcmp.lt.s32.totalorder %v1486_v39, 127  ;;  %vm1869_vm7 = vcmp.lt.s32.totalorder %v1614_v40, 127  ;;  %v2772_v31 = vtrunc.f32 %v3513_v47  ;;  %v2900_v32 = vtrunc.f32 %v3515_v49  ;;  %v3611_v45 = vpop.f32.mrb[22].mxu0  ;;  %v3613_v46 = vpop.f32.mrb[22].mxu1 }
 0x17d   : > { %v1742_v50 = vsel %vm1741_vm6, %v1486_v39, 127  ;;  %v1870_v51 = vsel %vm1869_vm7, %v1614_v40, 127  ;;  %v1348_v55 = vshra.s32 %v1220_v41, 8  ;;  %v1412_v56 = vshra.s32 %v1284_v42, 8  ;;  %v3615_v57 = vpop.f32.mrb[23].mxu0  ;;  %v3617_v58 = vpop.f32.mrb[23].mxu1 }
 0x17e   : > { %vm1997_vm8 = vcmp.gt.s32.totalorder %v1742_v50, 0  ;;  %vm2125_vm9 = vcmp.gt.s32.totalorder %v1870_v51, 0  ;;  %v2773_v1 = vcvt.f32.s32 %v2772_v31  ;;  %v2901_v35 = vcvt.f32.s32 %v2900_v32 }
 0x17f   : > { %v1998_v2 = vsel %vm1997_vm8, %v1742_v50, 0  ;;  %v2126_v47 = vsel %vm2125_vm9, %v1870_v51, 0  ;;  %vm1481_vm10 = vcmp.gt.s32.totalorder %v1348_v55, 4294967169  ;;  %vm1609_vm11 = vcmp.gt.s32.totalorder %v1412_v56, 4294967169 }
 0x180   : > { %v2243_v49 = vpack.c.b16 %v1998_v2, %v3589_v17  ;;  %v2291_v36 = vpack.c.b16 %v2126_v47, %v3591_v18  ;;  %v1482_v5 = vsel %vm1481_vm10, %v1348_v55, 4294967169  ;;  %v1610_v6 = vsel %vm1609_vm11, %v1412_v56, 4294967169 }
 0x181   : > { %vm1737_vm12 = vcmp.lt.s32.totalorder %v1482_v5, 127  ;;  %vm1865_vm13 = vcmp.lt.s32.totalorder %v1610_v6, 127  ;;  %v1093_v9 = vmul.u32 %v2773_v1, %v3473_v48  ;;  %v1157_v10 = vmul.u32 %v2901_v35, %v3473_v48 }
 0x182   : > { %v1738_v15 = vsel %vm1737_vm12, %v1482_v5, 127  ;;  %v1866_v16 = vsel %vm1865_vm13, %v1610_v6, 127  ;;  %v2768_v21 = vtrunc.f32 %v3517_v53  ;;  %v2896_v22 = vtrunc.f32 %v3519_v54  ;;  %v3625_v23 = vpop.f32.mrb[24].mxu0  ;;  %v3627_v24 = vpop.f32.mrb[24].mxu1 }
 0x183   : > { %vm1993_vm14 = vcmp.gt.s32.totalorder %v1738_v15, 0  ;;  %vm2121_vm15 = vcmp.gt.s32.totalorder %v1866_v16, 0  ;;  %v1225_v17 = vadd.s32 %v3475_v52, %v1093_v9  ;;  %v1289_v18 = vadd.s32 %v3475_v52, %v1157_v10  ;;  %v3631_v29 = vpop.f32.mrb[25].mxu0  ;;  %v3633_v30 = vpop.f32.mrb[25].mxu1 }
 0x184   : > { %v1994_v39 = vsel %vm1993_vm14, %v1738_v15, 0  ;;  %v2122_v40 = vsel %vm2121_vm15, %v1866_v16, 0  ;;  %v2769_v41 = vcvt.f32.s32 %v2768_v21  ;;  %v2897_v53 = vcvt.f32.s32 %v2896_v22  ;;  %v3635_v42 = vpop.f32.mrb[26].mxu0  ;;  %v3637_v54 = vpop.f32.mrb[26].mxu1 }
 0x185   : > { %v2242_v31 = vpack.c.b16 %v1994_v39, %v3595_v25  ;;  %v2290_v32 = vpack.c.b16 %v2122_v40, %v3597_v26  ;;  %v1353_v50 = vshra.s32 %v1225_v17, 8  ;;  %v1417_v51 = vshra.s32 %v1289_v18, 8  ;;  %v3641_v55 = vpop.f32.mrb[27].mxu0  ;;  %v3643_v56 = vpop.f32.mrb[27].mxu1 }
 0x186   : > { %v1091_v1 = vmul.u32 %v2769_v41, %v3473_v48  ;;  %v1155_v35 = vmul.u32 %v2897_v53, %v3473_v48  ;;  %v2774_v2 = vtrunc.f32 %v3521_v59  ;;  %v2902_v47 = vtrunc.f32 %v3523_v60 }
 0x187   : > { %v2244_v5 = vpack.c.b8 %v2243_v49, %v2242_v31  ;;  %v2292_v25 = vpack.c.b8 %v2291_v36, %v2290_v32  ;;  %vm1491_vm0 = vcmp.gt.s32.totalorder %v1353_v50, 4294967169  ;;  %vm1619_vm1 = vcmp.gt.s32.totalorder %v1417_v51, 4294967169 }
 0x188   : > { %v1492_v26 = vsel %vm1491_vm0, %v1353_v50, 4294967169  ;;  %v1620_v6 = vsel %vm1619_vm1, %v1417_v51, 4294967169  ;;  %v1223_v9 = vadd.s32 %v3475_v52, %v1091_v1  ;;  %v1287_v10 = vadd.s32 %v3475_v52, %v1155_v35 }
 0x189   : > { %2336 = vst [vmem:[%s3561_s24 + $0x8] sm:$0xff] %v2244_v5  ;;  %2352 = vst [vmem:[%s3561_s24 + $0x88] sm:$0xff] %v2292_v25  ;;  %vm1747_vm2 = vcmp.lt.s32.totalorder %v1492_v26, 127  ;;  %vm1875_vm3 = vcmp.lt.s32.totalorder %v1620_v6, 127  ;;  %v2775_v15 = vcvt.f32.s32 %v2774_v2  ;;  %v2903_v16 = vcvt.f32.s32 %v2902_v47 }
 0x18a   : > { %v1748_v21 = vsel %vm1747_vm2, %v1492_v26, 127  ;;  %v1876_v59 = vsel %vm1875_vm3, %v1620_v6, 127  ;;  %v1351_v22 = vshra.s32 %v1223_v9, 8  ;;  %v1415_v60 = vshra.s32 %v1287_v10, 8  ;;  %v3653_v49 = vpop.f32.mrb[28].mxu0  ;;  %v3655_v36 = vpop.f32.mrb[28].mxu1 }
 0x18b   : > { %vm2003_vm4 = vcmp.gt.s32.totalorder %v1748_v21, 0  ;;  %vm2131_vm5 = vcmp.gt.s32.totalorder %v1876_v59, 0  ;;  %v1094_v17 = vmul.u32 %v2775_v15, %v3473_v48  ;;  %v1158_v18 = vmul.u32 %v2903_v16, %v3473_v48  ;;  %v3659_v39 = vpop.f32.mrb[29].mxu0  ;;  %v3661_v40 = vpop.f32.mrb[29].mxu1 }
 0x18c   : > { %v3663_v41 = vsel %vm2003_vm4, %v1748_v21, 0  ;;  %v3665_v53 = vsel %vm2131_vm5, %v1876_v59, 0  ;;  %vm1487_vm6 = vcmp.gt.s32.totalorder %v1351_v22, 4294967169  ;;  %vm1615_vm7 = vcmp.gt.s32.totalorder %v1415_v60, 4294967169  ;;  %v3667_v31 = vpop.f32.mrb[30].mxu0  ;;  %v3669_v32 = vpop.f32.mrb[30].mxu1 }
 0x18d   : > { %v1488_v50 = vsel %vm1487_vm6, %v1351_v22, 4294967169  ;;  %v1616_v51 = vsel %vm1615_vm7, %v1415_v60, 4294967169  ;;  %v1226_v1 = vadd.s32 %v3475_v52, %v1094_v17  ;;  %v1290_v35 = vadd.s32 %v3475_v52, %v1158_v18  ;;  %v3673_v2 = vpop.f32.mrb[31].mxu0  ;;  %v3675_v47 = vpop.f32.mrb[31].mxu1 }
 0x18e   : > { %vm1743_vm8 = vcmp.lt.s32.totalorder %v1488_v50, 127  ;;  %vm1871_vm9 = vcmp.lt.s32.totalorder %v1616_v51, 127  ;;  %v2770_v5 = vtrunc.f32 %v3527_v63  ;;  %v2898_v25 = vtrunc.f32 %v3529_v0 }
 0x18f   : > { %v1744_v26 = vsel %vm1743_vm8, %v1488_v50, 127  ;;  %v1872_v6 = vsel %vm1871_vm9, %v1616_v51, 127  ;;  %v1354_v9 = vshra.s32 %v1226_v1, 8  ;;  %v1418_v10 = vshra.s32 %v1290_v35, 8 }
 0x190   : > { %vm1999_vm10 = vcmp.gt.s32.totalorder %v1744_v26, 0  ;;  %vm2127_vm11 = vcmp.gt.s32.totalorder %v1872_v6, 0  ;;  %v2771_v15 = vcvt.f32.s32 %v2770_v5  ;;  %v2899_v16 = vcvt.f32.s32 %v2898_v25 }
 0x191   : > { %v3679_v21 = vsel %vm1999_vm10, %v1744_v26, 0  ;;  %v3681_v59 = vsel %vm2127_vm11, %v1872_v6, 0  ;;  %vm1493_vm12 = vcmp.gt.s32.totalorder %v1354_v9, 4294967169  ;;  %vm1621_vm13 = vcmp.gt.s32.totalorder %v1418_v10, 4294967169 }
 0x192   : > { %v1494_v22 = vsel %vm1493_vm12, %v1354_v9, 4294967169  ;;  %v1622_v60 = vsel %vm1621_vm13, %v1418_v10, 4294967169  ;;  %v1092_v63 = vmul.u32 %v2771_v15, %v3473_v48  ;;  %v1156_v0 = vmul.u32 %v2899_v16, %v3473_v48  ;;  %v3685_v17 = vpop.f32.mrb[32].mxu0  ;;  %v3687_v18 = vpop.f32.mrb[32].mxu1 }
 0x193   : > { %4346 = vst [vmem:[#allocation11_spill] sm:$0xff] %v3685_v17  ;;  %4347 = vst [vmem:[#allocation12_spill] sm:$0xff] %v3687_v18  ;;  %vm1749_vm14 = vcmp.lt.s32.totalorder %v1494_v22, 127  ;;  %vm1877_vm15 = vcmp.lt.s32.totalorder %v1622_v60, 127  ;;  %v2780_v50 = vtrunc.f32 %v3533_v13  ;;  %v2908_v51 = vtrunc.f32 %v3535_v14  ;;  %v3691_v1 = vpop.f32.mrb[33].mxu0  ;;  %v3693_v35 = vpop.f32.mrb[33].mxu1 }
 0x194   : > { %4348 = vst [vmem:[#allocation13_spill] sm:$0xff] %v3693_v35  ;;  %v1750_v5 = vsel %vm1749_vm14, %v1494_v22, 127  ;;  %v1878_v25 = vsel %vm1877_vm15, %v1622_v60, 127  ;;  %v1224_v26 = vadd.s32 %v3475_v52, %v1092_v63  ;;  %v1288_v6 = vadd.s32 %v3475_v52, %v1156_v0  ;;  %v3697_v9 = vpop.f32.mrb[34].mxu0  ;;  %v3699_v17 = vpop.f32.mrb[34].mxu1 }
 0x195   : > { %vm2005_vm0 = vcmp.gt.s32.totalorder %v1750_v5, 0  ;;  %vm2133_vm1 = vcmp.gt.s32.totalorder %v1878_v25, 0  ;;  %v2781_v10 = vcvt.f32.s32 %v2780_v50  ;;  %v2909_v15 = vcvt.f32.s32 %v2908_v51  ;;  %v3705_v0 = vpop.f32.mrb[35].mxu0 }
 0x196   : > { %v2006_v16 = vsel %vm2005_vm0, %v1750_v5, 0  ;;  %v2134_v13 = vsel %vm2133_vm1, %v1878_v25, 0  ;;  %v1352_v18 = vshra.s32 %v1224_v26, 8  ;;  %v1416_v14 = vshra.s32 %v1288_v6, 8  ;;  %4349 = vst [vmem:[#allocation14_spill] sm:$0xff] %v3705_v0  ;;  %v3711_v6 = vpop.f32.mrb[35].mxu1 }
 0x197   : > { %v2246_v35 = vpack.c.b16 %v2006_v16, %v3663_v41  ;;  %v2294_v22 = vpack.c.b16 %v2134_v13, %v3665_v53  ;;  %v1097_v60 = vmul.u32 %v2781_v10, %v3473_v48  ;;  %v1161_v63 = vmul.u32 %v2909_v15, %v3473_v48 }
 0x198   : > { %vm1489_vm2 = vcmp.gt.s32.totalorder %v1352_v18, 4294967169  ;;  %vm1617_vm3 = vcmp.gt.s32.totalorder %v1416_v14, 4294967169  ;;  %v2776_v50 = vtrunc.f32 %v3539_v19  ;;  %v2904_v51 = vtrunc.f32 %v3541_v20 }
 0x199   : > { %v1490_v5 = vsel %vm1489_vm2, %v1352_v18, 4294967169  ;;  %v1618_v25 = vsel %vm1617_vm3, %v1416_v14, 4294967169  ;;  %v1229_v26 = vadd.s32 %v3475_v52, %v1097_v60  ;;  %v1293_v41 = vadd.s32 %v3475_v52, %v1161_v63 }
 0x19a   : > { %vm1745_vm4 = vcmp.lt.s32.totalorder %v1490_v5, 127  ;;  %vm1873_vm5 = vcmp.lt.s32.totalorder %v1618_v25, 127  ;;  %v2777_v53 = vcvt.f32.s32 %v2776_v50  ;;  %v2905_v10 = vcvt.f32.s32 %v2904_v51 }
 0x19b   : > { %v1746_v15 = vsel %vm1745_vm4, %v1490_v5, 127  ;;  %v1874_v16 = vsel %vm1873_vm5, %v1618_v25, 127  ;;  %v1357_v13 = vshra.s32 %v1229_v26, 8  ;;  %v1421_v0 = vshra.s32 %v1293_v41, 8  ;;  %v3717_v5 = vpop.f32.mrb[36].mxu0 }
 0x19c   : > { %vm2001_vm6 = vcmp.gt.s32.totalorder %v1746_v15, 0  ;;  %vm2129_vm7 = vcmp.gt.s32.totalorder %v1874_v16, 0  ;;  %v1095_v19 = vmul.u32 %v2777_v53, %v3473_v48  ;;  %v1159_v20 = vmul.u32 %v2905_v10, %v3473_v48 }
 0x19d   : > { %v2002_v18 = vsel %vm2001_vm6, %v1746_v15, 0  ;;  %v2130_v14 = vsel %vm2129_vm7, %v1874_v16, 0  ;;  %vm1499_vm8 = vcmp.gt.s32.totalorder %v1357_v13, 4294967169  ;;  %vm1627_vm9 = vcmp.gt.s32.totalorder %v1421_v0, 4294967169  ;;  %v3721_v16 = vpop.f32.mrb[36].mxu1 }
 0x19e   : > { %v2245_v60 = vpack.c.b16 %v2002_v18, %v3679_v21  ;;  %v2293_v63 = vpack.c.b16 %v2130_v14, %v3681_v59  ;;  %v1500_v50 = vsel %vm1499_vm8, %v1357_v13, 4294967169  ;;  %v1628_v51 = vsel %vm1627_vm9, %v1421_v0, 4294967169 }
 0x19f   : > { %vm1755_vm10 = vcmp.lt.s32.totalorder %v1500_v50, 127  ;;  %vm1883_vm11 = vcmp.lt.s32.totalorder %v1628_v51, 127  ;;  %v1227_v25 = vadd.s32 %v3475_v52, %v1095_v19  ;;  %v1291_v26 = vadd.s32 %v3475_v52, %v1159_v20 }
 0x1a0   : > { %v2247_v41 = vpack.c.b8 %v2246_v35, %v2245_v60  ;;  %v2295_v53 = vpack.c.b8 %v2294_v22, %v2293_v63  ;;  %v1756_v10 = vsel %vm1755_vm10, %v1500_v50, 127  ;;  %v1884_v15 = vsel %vm1883_vm11, %v1628_v51, 127  ;;  %v3731_v35 = vpop.f32.mrb[37].mxu0  ;;  %v3735_v51 = vpop.f32.mrb[37].mxu1 }
 0x1a1   : > { %vm2011_vm12 = vcmp.gt.s32.totalorder %v1756_v10, 0  ;;  %vm2139_vm13 = vcmp.gt.s32.totalorder %v1884_v15, 0  ;;  %v1355_v21 = vshra.s32 %v1227_v25, 8  ;;  %v1419_v59 = vshra.s32 %v1291_v26, 8  ;;  %v3737_v26 = vpop.f32.mrb[38].mxu0 }
 0x1a2   : > { %2337 = vst [vmem:[%s3561_s24 + $0x10] sm:$0xff] %v2247_v41  ;;  %2353 = vst [vmem:[%s3561_s24 + $0x90] sm:$0xff] %v2295_v53  ;;  %v3725_v0 = vsel %vm2011_vm12, %v1756_v10, 0  ;;  %v3727_v13 = vsel %vm2139_vm13, %v1884_v15, 0  ;;  %v2782_v19 = vtrunc.f32 %v3545_v27  ;;  %v2910_v20 = vtrunc.f32 %v3547_v28 }
 0x1a3   : > { %vm1495_vm14 = vcmp.gt.s32.totalorder %v1355_v21, 4294967169  ;;  %vm1623_vm15 = vcmp.gt.s32.totalorder %v1419_v59, 4294967169  ;;  %v2778_v22 = vtrunc.f32 %v3551_v33  ;;  %v2906_v18 = vtrunc.f32 %v3553_v34  ;;  %4350 = vst [vmem:[#allocation15_spill] sm:$0xff] %v3737_v26 }
 0x1a4   : > { %v1496_v14 = vsel %vm1495_vm14, %v1355_v21, 4294967169  ;;  %v1624_v60 = vsel %vm1623_vm15, %v1419_v59, 4294967169  ;;  %v2783_v63 = vcvt.f32.s32 %v2782_v19  ;;  %v2911_v50 = vcvt.f32.s32 %v2910_v20 }
 0x1a5   : > { %vm1751_vm0 = vcmp.lt.s32.totalorder %v1496_v14, 127  ;;  %vm1879_vm1 = vcmp.lt.s32.totalorder %v1624_v60, 127  ;;  %v2779_v25 = vcvt.f32.s32 %v2778_v22  ;;  %v2907_v27 = vcvt.f32.s32 %v2906_v18 }
 0x1a6   : > { %v1752_v28 = vsel %vm1751_vm0, %v1496_v14, 127  ;;  %v1880_v41 = vsel %vm1879_vm1, %v1624_v60, 127  ;;  %v1098_v53 = vmul.u32 %v2783_v63, %v3473_v48  ;;  %v1162_v33 = vmul.u32 %v2911_v50, %v3473_v48 }
 0x1a7   : > { %vm2007_vm2 = vcmp.gt.s32.totalorder %v1752_v28, 0  ;;  %vm2135_vm3 = vcmp.gt.s32.totalorder %v1880_v41, 0  ;;  %v1096_v34 = vmul.u32 %v2779_v25, %v3473_v48  ;;  %v1160_v10 = vmul.u32 %v2907_v27, %v3473_v48 }
 0x1a8   : > { %v2008_v15 = vsel %vm2007_vm2, %v1752_v28, 0  ;;  %v2136_v21 = vsel %vm2135_vm3, %v1880_v41, 0  ;;  %v1230_v59 = vadd.s32 %v3475_v52, %v1098_v53  ;;  %v1294_v19 = vadd.s32 %v3475_v52, %v1162_v33 }
 0x1a9   : > { %v1228_v20 = vadd.s32 %v3475_v52, %v1096_v34  ;;  %v1292_v22 = vadd.s32 %v3475_v52, %v1160_v10  ;;  %v2788_v18 = vtrunc.f32 %v3571_v61  ;;  %v2916_v14 = vtrunc.f32 %v3573_v62  ;;  %v3751_v61 = vpop.f32.mrb[38].mxu1 }
 0x1aa   : > { %v1358_v60 = vshra.s32 %v1230_v59, 8  ;;  %v1422_v63 = vshra.s32 %v1294_v19, 8  ;;  %v2784_v50 = vtrunc.f32 %v3575_v3  ;;  %v2912_v25 = vtrunc.f32 %v3577_v4  ;;  %v3753_v59 = vpop.f32.mrb[39].mxu0 }
 0x1ab   : > { %v1356_v27 = vshra.s32 %v1228_v20, 8  ;;  %v1420_v28 = vshra.s32 %v1292_v22, 8  ;;  %v2789_v41 = vcvt.f32.s32 %v2788_v18  ;;  %v2917_v53 = vcvt.f32.s32 %v2916_v14 }
 0x1ac   : > { %vm1501_vm4 = vcmp.gt.s32.totalorder %v1358_v60, 4294967169  ;;  %vm1629_vm5 = vcmp.gt.s32.totalorder %v1422_v63, 4294967169  ;;  %v2785_v33 = vcvt.f32.s32 %v2784_v50  ;;  %v2913_v34 = vcvt.f32.s32 %v2912_v25 }
 0x1ad   : > { %v1502_v26 = vsel %vm1501_vm4, %v1358_v60, 4294967169  ;;  %v1630_v10 = vsel %vm1629_vm5, %v1422_v63, 4294967169  ;;  %vm1497_vm6 = vcmp.gt.s32.totalorder %v1356_v27, 4294967169  ;;  %vm1625_vm7 = vcmp.gt.s32.totalorder %v1420_v28, 4294967169 }
 0x1ae   : > { %vm1757_vm8 = vcmp.lt.s32.totalorder %v1502_v26, 127  ;;  %vm1885_vm9 = vcmp.lt.s32.totalorder %v1630_v10, 127  ;;  %v1498_v62 = vsel %vm1497_vm6, %v1356_v27, 4294967169  ;;  %v1626_v3 = vsel %vm1625_vm7, %v1420_v28, 4294967169  ;;  %v3757_v27 = vpop.f32.mrb[39].mxu1 }
 0x1af   : > { %v1758_v4 = vsel %vm1757_vm8, %v1502_v26, 127  ;;  %v1886_v19 = vsel %vm1885_vm9, %v1630_v10, 127  ;;  %vm1753_vm10 = vcmp.lt.s32.totalorder %v1498_v62, 127  ;;  %vm1881_vm11 = vcmp.lt.s32.totalorder %v1626_v3, 127 }
 0x1b0   : > { %vm2013_vm12 = vcmp.gt.s32.totalorder %v1758_v4, 0  ;;  %vm2141_vm13 = vcmp.gt.s32.totalorder %v1886_v19, 0  ;;  %v1754_v20 = vsel %vm1753_vm10, %v1498_v62, 127  ;;  %v1882_v22 = vsel %vm1881_vm11, %v1626_v3, 127 }
 0x1b1   : > { %v2014_v18 = vsel %vm2013_vm12, %v1758_v4, 0  ;;  %v2142_v14 = vsel %vm2141_vm13, %v1886_v19, 0  ;;  %vm2009_vm14 = vcmp.gt.s32.totalorder %v1754_v20, 0  ;;  %vm2137_vm15 = vcmp.gt.s32.totalorder %v1882_v22, 0 }
 0x1b2   : > { %v2249_v60 = vpack.c.b16 %v2014_v18, %v3725_v0  ;;  %v2297_v63 = vpack.c.b16 %v2142_v14, %v3727_v13  ;;  %v2010_v50 = vsel %vm2009_vm14, %v1754_v20, 0  ;;  %v2138_v25 = vsel %vm2137_vm15, %v1882_v22, 0  ;;  %v3773_v14 = vpop.f32.mrb[40].mxu0 }
 0x1b3   : > { %v2248_v26 = vpack.c.b16 %v2010_v50, %v2008_v15  ;;  %v2296_v28 = vpack.c.b16 %v2138_v25, %v2136_v21  ;;  %v1101_v10 = vmul.u32 %v2789_v41, %v3473_v48  ;;  %v1165_v62 = vmul.u32 %v2917_v53, %v3473_v48 }
 0x1b4   : > { %v1099_v3 = vmul.u32 %v2785_v33, %v3473_v48  ;;  %v1163_v4 = vmul.u32 %v2913_v34, %v3473_v48  ;;  %v2790_v0 = vtrunc.f32 %v3581_v7  ;;  %v2918_v13 = vtrunc.f32 %v3583_v8 }
 0x1b5   : > { %v2250_v19 = vpack.c.b8 %v2249_v60, %v2248_v26  ;;  %v2298_v20 = vpack.c.b8 %v2297_v63, %v2296_v28  ;;  %v1233_v22 = vadd.s32 %v3475_v52, %v1101_v10  ;;  %v1297_v15 = vadd.s32 %v3475_v52, %v1165_v62  ;;  %v3775_v60 = vpop.f32.mrb[40].mxu1  ;;  %v3779_v28 = vpop.f32.mrb[41].mxu0 }
 0x1b6   : > { %v1231_v21 = vadd.s32 %v3475_v52, %v1099_v3  ;;  %v1295_v41 = vadd.s32 %v3475_v52, %v1163_v4  ;;  %v2791_v18 = vcvt.f32.s32 %v2790_v0  ;;  %v2919_v53 = vcvt.f32.s32 %v2918_v13 }
 0x1b7   : > { %2338 = vst [vmem:[%s3561_s24 + $0x18] sm:$0xff] %v2250_v19  ;;  %2354 = vst [vmem:[%s3561_s24 + $0x98] sm:$0xff] %v2298_v20  ;;  %v1361_v33 = vshra.s32 %v1233_v22, 8  ;;  %v1425_v34 = vshra.s32 %v1297_v15, 8  ;;  %v2786_v7 = vtrunc.f32 %v3585_v11  ;;  %v2914_v8 = vtrunc.f32 %v3587_v12  ;;  %v3781_v22 = vpop.f32.mrb[41].mxu1 }
 0x1b8   : > { %v1359_v63 = vshra.s32 %v1231_v21, 8  ;;  %v1423_v50 = vshra.s32 %v1295_v41, 8  ;;  %v1102_v25 = vmul.u32 %v2791_v18, %v3473_v48  ;;  %v1166_v26 = vmul.u32 %v2919_v53, %v3473_v48  ;;  %v3787_v41 = vpop.f32.mrb[42].mxu0 }
 0x1b9   : > { %vm1507_vm0 = vcmp.gt.s32.totalorder %v1361_v33, 4294967169  ;;  %vm1635_vm1 = vcmp.gt.s32.totalorder %v1425_v34, 4294967169  ;;  %v2787_v10 = vcvt.f32.s32 %v2786_v7  ;;  %v2915_v62 = vcvt.f32.s32 %v2914_v8 }
 0x1ba   : > { %v1508_v3 = vsel %vm1507_vm0, %v1361_v33, 4294967169  ;;  %v1636_v11 = vsel %vm1635_vm1, %v1425_v34, 4294967169  ;;  %vm1503_vm2 = vcmp.gt.s32.totalorder %v1359_v63, 4294967169  ;;  %vm1631_vm3 = vcmp.gt.s32.totalorder %v1423_v50, 4294967169 }
 0x1bb   : > { %vm1763_vm4 = vcmp.lt.s32.totalorder %v1508_v3, 127  ;;  %vm1891_vm5 = vcmp.lt.s32.totalorder %v1636_v11, 127  ;;  %v1504_v12 = vsel %vm1503_vm2, %v1359_v63, 4294967169  ;;  %v1632_v4 = vsel %vm1631_vm3, %v1423_v50, 4294967169 }
 0x1bc   : > { %v1764_v0 = vsel %vm1763_vm4, %v1508_v3, 127  ;;  %v1892_v13 = vsel %vm1891_vm5, %v1636_v11, 127  ;;  %vm1759_vm6 = vcmp.lt.s32.totalorder %v1504_v12, 127  ;;  %vm1887_vm7 = vcmp.lt.s32.totalorder %v1632_v4, 127 }
 0x1bd   : > { %vm2019_vm8 = vcmp.gt.s32.totalorder %v1764_v0, 0  ;;  %vm2147_vm9 = vcmp.gt.s32.totalorder %v1892_v13, 0  ;;  %v1760_v19 = vsel %vm1759_vm6, %v1504_v12, 127  ;;  %v1888_v20 = vsel %vm1887_vm7, %v1632_v4, 127 }
 0x1be   : > { %v3783_v15 = vsel %vm2019_vm8, %v1764_v0, 0  ;;  %v3785_v21 = vsel %vm2147_vm9, %v1892_v13, 0  ;;  %vm2015_vm10 = vcmp.gt.s32.totalorder %v1760_v19, 0  ;;  %vm2143_vm11 = vcmp.gt.s32.totalorder %v1888_v20, 0 }
 0x1bf   : > { %v3789_v18 = vsel %vm2015_vm10, %v1760_v19, 0  ;;  %v3791_v53 = vsel %vm2143_vm11, %v1888_v20, 0  ;;  %v1234_v33 = vadd.s32 %v3475_v52, %v1102_v25  ;;  %v1298_v34 = vadd.s32 %v3475_v52, %v1166_v26 }
 0x1c0   : > { %v1100_v7 = vmul.u32 %v2787_v10, %v3473_v48  ;;  %v1164_v8 = vmul.u32 %v2915_v62, %v3473_v48  ;;  %v2796_v63 = vtrunc.f32 %v3599_v37  ;;  %v2924_v50 = vtrunc.f32 %v3601_v38 }
 0x1c1   : > { %v1362_v3 = vshra.s32 %v1234_v33, 8  ;;  %v1426_v11 = vshra.s32 %v1298_v34, 8  ;;  %v2792_v12 = vtrunc.f32 %v3605_v43  ;;  %v2920_v4 = vtrunc.f32 %v3607_v44 }
 0x1c2   : > { %v1232_v0 = vadd.s32 %v3475_v52, %v1100_v7  ;;  %v1296_v25 = vadd.s32 %v3475_v52, %v1164_v8  ;;  %v2797_v13 = vcvt.f32.s32 %v2796_v63  ;;  %v2925_v26 = vcvt.f32.s32 %v2924_v50  ;;  %v3805_v7 = vpop.f32.mrb[42].mxu1  ;;  %v3807_v50 = vpop.f32.mrb[43].mxu0 }
 0x1c3   : > { %vm1509_vm12 = vcmp.gt.s32.totalorder %v1362_v3, 4294967169  ;;  %vm1637_vm13 = vcmp.gt.s32.totalorder %v1426_v11, 4294967169  ;;  %v2793_v10 = vcvt.f32.s32 %v2792_v12  ;;  %v2921_v62 = vcvt.f32.s32 %v2920_v4 }
 0x1c4   : > { %v1510_v19 = vsel %vm1509_vm12, %v1362_v3, 4294967169  ;;  %v1638_v37 = vsel %vm1637_vm13, %v1426_v11, 4294967169  ;;  %v1360_v20 = vshra.s32 %v1232_v0, 8  ;;  %v1424_v38 = vshra.s32 %v1296_v25, 8  ;;  %v3809_v3 = vpop.f32.mrb[43].mxu1 }
 0x1c5   : > { %vm1765_vm14 = vcmp.lt.s32.totalorder %v1510_v19, 127  ;;  %vm1893_vm15 = vcmp.lt.s32.totalorder %v1638_v37, 127  ;;  %v1105_v43 = vmul.u32 %v2797_v13, %v3473_v48  ;;  %v1169_v44 = vmul.u32 %v2925_v26, %v3473_v48 }
 0x1c6   : > { %v1766_v33 = vsel %vm1765_vm14, %v1510_v19, 127  ;;  %v1894_v34 = vsel %vm1893_vm15, %v1638_v37, 127  ;;  %vm1505_vm0 = vcmp.gt.s32.totalorder %v1360_v20, 4294967169  ;;  %vm1633_vm1 = vcmp.gt.s32.totalorder %v1424_v38, 4294967169 }
 0x1c7   : > { %vm2021_vm2 = vcmp.gt.s32.totalorder %v1766_v33, 0  ;;  %vm2149_vm3 = vcmp.gt.s32.totalorder %v1894_v34, 0  ;;  %v1506_v8 = vsel %vm1505_vm0, %v1360_v20, 4294967169  ;;  %v1634_v63 = vsel %vm1633_vm1, %v1424_v38, 4294967169 }
 0x1c8   : > { %v2022_v11 = vsel %vm2021_vm2, %v1766_v33, 0  ;;  %v2150_v12 = vsel %vm2149_vm3, %v1894_v34, 0  ;;  %vm1761_vm4 = vcmp.lt.s32.totalorder %v1506_v8, 127  ;;  %vm1889_vm5 = vcmp.lt.s32.totalorder %v1634_v63, 127 }
 0x1c9   : > { %v2252_v4 = vpack.c.b16 %v2022_v11, %v3783_v15  ;;  %v2300_v0 = vpack.c.b16 %v2150_v12, %v3785_v21  ;;  %v1762_v25 = vsel %vm1761_vm4, %v1506_v8, 127  ;;  %v1890_v13 = vsel %vm1889_vm5, %v1634_v63, 127  ;;  %v3819_v63 = vpop.f32.mrb[44].mxu0 }
 0x1ca   : > { %vm2017_vm6 = vcmp.gt.s32.totalorder %v1762_v25, 0  ;;  %vm2145_vm7 = vcmp.gt.s32.totalorder %v1890_v13, 0  ;;  %v1237_v26 = vadd.s32 %v3475_v52, %v1105_v43  ;;  %v1301_v19 = vadd.s32 %v3475_v52, %v1169_v44 }
 0x1cb   : > { %v2018_v37 = vsel %vm2017_vm6, %v1762_v25, 0  ;;  %v2146_v20 = vsel %vm2145_vm7, %v1890_v13, 0  ;;  %v1103_v38 = vmul.u32 %v2793_v10, %v3473_v48  ;;  %v1167_v33 = vmul.u32 %v2921_v62, %v3473_v48 }
 0x1cc   : > { %v2251_v34 = vpack.c.b16 %v2018_v37, %v3789_v18  ;;  %v2299_v15 = vpack.c.b16 %v2146_v20, %v3791_v53  ;;  %v1365_v21 = vshra.s32 %v1237_v26, 8  ;;  %v1429_v8 = vshra.s32 %v1301_v19, 8 }
 0x1cd   : > { %v1235_v43 = vadd.s32 %v3475_v52, %v1103_v38  ;;  %v1299_v44 = vadd.s32 %v3475_v52, %v1167_v33  ;;  %v2798_v11 = vtrunc.f32 %v3611_v45  ;;  %v2926_v10 = vtrunc.f32 %v3613_v46  ;;  %v3827_v45 = vpop.f32.mrb[44].mxu1 }
 0x1ce   : > { %v2253_v12 = vpack.c.b8 %v2252_v4, %v2251_v34  ;;  %v2301_v62 = vpack.c.b8 %v2300_v0, %v2299_v15  ;;  %vm1515_vm8 = vcmp.gt.s32.totalorder %v1365_v21, 4294967169  ;;  %vm1643_vm9 = vcmp.gt.s32.totalorder %v1429_v8, 4294967169  ;;  %v3829_v0 = vpop.f32.mrb[45].mxu0 }
 0x1cf   : > { %v1516_v18 = vsel %vm1515_vm8, %v1365_v21, 4294967169  ;;  %v1644_v53 = vsel %vm1643_vm9, %v1429_v8, 4294967169  ;;  %v1363_v25 = vshra.s32 %v1235_v43, 8  ;;  %v1427_v13 = vshra.s32 %v1299_v44, 8  ;;  %v3837_v43 = vpop.f32.mrb[45].mxu1 }
 0x1d0   : > { %2339 = vst [vmem:[%s3561_s24 + $0x20] sm:$0xff] %v2253_v12  ;;  %2355 = vst [vmem:[%s3561_s24 + $0xa0] sm:$0xff] %v2301_v62  ;;  %vm1771_vm10 = vcmp.lt.s32.totalorder %v1516_v18, 127  ;;  %vm1899_vm11 = vcmp.lt.s32.totalorder %v1644_v53, 127  ;;  %v2799_v26 = vcvt.f32.s32 %v2798_v11  ;;  %v2927_v19 = vcvt.f32.s32 %v2926_v10  ;;  %v3841_v10 = vpop.f32.mrb[46].mxu0 }
 0x1d1   : > { %v1772_v37 = vsel %vm1771_vm10, %v1516_v18, 127  ;;  %v1900_v20 = vsel %vm1899_vm11, %v1644_v53, 127  ;;  %vm1511_vm12 = vcmp.gt.s32.totalorder %v1363_v25, 4294967169  ;;  %vm1639_vm13 = vcmp.gt.s32.totalorder %v1427_v13, 4294967169 }
 0x1d2   : > { %vm2027_vm14 = vcmp.gt.s32.totalorder %v1772_v37, 0  ;;  %vm2155_vm15 = vcmp.gt.s32.totalorder %v1900_v20, 0  ;;  %v1512_v46 = vsel %vm1511_vm12, %v1363_v25, 4294967169  ;;  %v1640_v4 = vsel %vm1639_vm13, %v1427_v13, 4294967169 }
 0x1d3   : > { %v3831_v38 = vsel %vm2027_vm14, %v1772_v37, 0  ;;  %v3833_v33 = vsel %vm2155_vm15, %v1900_v20, 0  ;;  %vm1767_vm0 = vcmp.lt.s32.totalorder %v1512_v46, 127  ;;  %vm1895_vm1 = vcmp.lt.s32.totalorder %v1640_v4, 127 }
 0x1d4   : > { %v1768_v34 = vsel %vm1767_vm0, %v1512_v46, 127  ;;  %v1896_v15 = vsel %vm1895_vm1, %v1640_v4, 127  ;;  %v1106_v21 = vmul.u32 %v2799_v26, %v3473_v48  ;;  %v1170_v8 = vmul.u32 %v2927_v19, %v3473_v48 }
 0x1d5   : > { %vm2023_vm2 = vcmp.gt.s32.totalorder %v1768_v34, 0  ;;  %vm2151_vm3 = vcmp.gt.s32.totalorder %v1896_v15, 0  ;;  %v2794_v44 = vtrunc.f32 %v3615_v57  ;;  %v2922_v11 = vtrunc.f32 %v3617_v58 }
 0x1d6   : > { %v3843_v12 = vsel %vm2023_vm2, %v1768_v34, 0  ;;  %v3845_v62 = vsel %vm2151_vm3, %v1896_v15, 0  ;;  %v1238_v18 = vadd.s32 %v3475_v52, %v1106_v21  ;;  %v1302_v53 = vadd.s32 %v3475_v52, %v1170_v8 }
 0x1d7   : > { %v2795_v25 = vcvt.f32.s32 %v2794_v44  ;;  %v2923_v13 = vcvt.f32.s32 %v2922_v11  ;;  %v2804_v26 = vtrunc.f32 %v3625_v23  ;;  %v2932_v19 = vtrunc.f32 %v3627_v24 }
 0x1d8   : > { %v1366_v37 = vshra.s32 %v1238_v18, 8  ;;  %v1430_v57 = vshra.s32 %v1302_v53, 8  ;;  %v2800_v58 = vtrunc.f32 %v3631_v29  ;;  %v2928_v20 = vtrunc.f32 %v3633_v30  ;;  %v3857_v18 = vpop.f32.mrb[46].mxu1  ;;  %v3861_v53 = vpop.f32.mrb[47].mxu0 }
 0x1d9   : > { %v1104_v46 = vmul.u32 %v2795_v25, %v3473_v48  ;;  %v1168_v4 = vmul.u32 %v2923_v13, %v3473_v48  ;;  %v2805_v34 = vcvt.f32.s32 %v2804_v26  ;;  %v2933_v15 = vcvt.f32.s32 %v2932_v19 }
 0x1da   : > { %vm1517_vm4 = vcmp.gt.s32.totalorder %v1366_v37, 4294967169  ;;  %vm1645_vm5 = vcmp.gt.s32.totalorder %v1430_v57, 4294967169  ;;  %v2801_v21 = vcvt.f32.s32 %v2800_v58  ;;  %v2929_v8 = vcvt.f32.s32 %v2928_v20 }
 0x1db   : > { %v1518_v44 = vsel %vm1517_vm4, %v1366_v37, 4294967169  ;;  %v1646_v23 = vsel %vm1645_vm5, %v1430_v57, 4294967169  ;;  %v1236_v24 = vadd.s32 %v3475_v52, %v1104_v46  ;;  %v1300_v11 = vadd.s32 %v3475_v52, %v1168_v4 }
 0x1dc   : > { %vm1773_vm6 = vcmp.lt.s32.totalorder %v1518_v44, 127  ;;  %vm1901_vm7 = vcmp.lt.s32.totalorder %v1646_v23, 127  ;;  %v1109_v29 = vmul.u32 %v2805_v34, %v3473_v48  ;;  %v1173_v30 = vmul.u32 %v2933_v15, %v3473_v48 }
 0x1dd   : > { %v1774_v25 = vsel %vm1773_vm6, %v1518_v44, 127  ;;  %v1902_v13 = vsel %vm1901_vm7, %v1646_v23, 127  ;;  %v1364_v26 = vshra.s32 %v1236_v24, 8  ;;  %v1428_v19 = vshra.s32 %v1300_v11, 8  ;;  %v3867_v44 = vpop.f32.mrb[47].mxu1 }
 0x1de   : > { %vm2029_vm8 = vcmp.gt.s32.totalorder %v1774_v25, 0  ;;  %vm2157_vm9 = vcmp.gt.s32.totalorder %v1902_v13, 0  ;;  %v1241_v37 = vadd.s32 %v3475_v52, %v1109_v29  ;;  %v1305_v57 = vadd.s32 %v3475_v52, %v1173_v30 }
 0x1df   : > { %v2030_v58 = vsel %vm2029_vm8, %v1774_v25, 0  ;;  %v2158_v20 = vsel %vm2157_vm9, %v1902_v13, 0  ;;  %vm1513_vm10 = vcmp.gt.s32.totalorder %v1364_v26, 4294967169  ;;  %vm1641_vm11 = vcmp.gt.s32.totalorder %v1428_v19, 4294967169 }
 0x1e0   : > { %v2255_v46 = vpack.c.b16 %v2030_v58, %v3831_v38  ;;  %v2303_v4 = vpack.c.b16 %v2158_v20, %v3833_v33  ;;  %v1514_v34 = vsel %vm1513_vm10, %v1364_v26, 4294967169  ;;  %v1642_v15 = vsel %vm1641_vm11, %v1428_v19, 4294967169 }
 0x1e1   : > { %vm1769_vm12 = vcmp.lt.s32.totalorder %v1514_v34, 127  ;;  %vm1897_vm13 = vcmp.lt.s32.totalorder %v1642_v15, 127  ;;  %v1369_v23 = vshra.s32 %v1241_v37, 8  ;;  %v1433_v24 = vshra.s32 %v1305_v57, 8  ;;  %v3873_v37 = vpop.f32.mrb[48].mxu0 }
 0x1e2   : > { %v1770_v11 = vsel %vm1769_vm12, %v1514_v34, 127  ;;  %v1898_v29 = vsel %vm1897_vm13, %v1642_v15, 127  ;;  %v1107_v30 = vmul.u32 %v2801_v21, %v3473_v48  ;;  %v1171_v25 = vmul.u32 %v2929_v8, %v3473_v48  ;;  %v3877_v34 = vpop.f32.mrb[48].mxu1 }
 0x1e3   : > { %vm2025_vm14 = vcmp.gt.s32.totalorder %v1770_v11, 0  ;;  %vm2153_vm15 = vcmp.gt.s32.totalorder %v1898_v29, 0  ;;  %vm1523_vm0 = vcmp.gt.s32.totalorder %v1369_v23, 4294967169  ;;  %vm1651_vm1 = vcmp.gt.s32.totalorder %v1433_v24, 4294967169 }
 0x1e4   : > { %v2026_v38 = vsel %vm2025_vm14, %v1770_v11, 0  ;;  %v2154_v33 = vsel %vm2153_vm15, %v1898_v29, 0  ;;  %v1524_v13 = vsel %vm1523_vm0, %v1369_v23, 4294967169  ;;  %v1652_v26 = vsel %vm1651_vm1, %v1433_v24, 4294967169 }
 0x1e5   : > { %v2254_v19 = vpack.c.b16 %v2026_v38, %v3843_v12  ;;  %v2302_v58 = vpack.c.b16 %v2154_v33, %v3845_v62  ;;  %vm1779_vm2 = vcmp.lt.s32.totalorder %v1524_v13, 127  ;;  %vm1907_vm3 = vcmp.lt.s32.totalorder %v1652_v26, 127  ;;  %v3879_v12 = vpop.f32.mrb[49].mxu0 }
 0x1e6   : > { %v1780_v21 = vsel %vm1779_vm2, %v1524_v13, 127  ;;  %v1908_v8 = vsel %vm1907_vm3, %v1652_v26, 127  ;;  %v1239_v57 = vadd.s32 %v3475_v52, %v1107_v30  ;;  %v1303_v20 = vadd.s32 %v3475_v52, %v1171_v25 }
 0x1e7   : > { %v2256_v15 = vpack.c.b8 %v2255_v46, %v2254_v19  ;;  %v2304_v23 = vpack.c.b8 %v2303_v4, %v2302_v58  ;;  %vm2035_vm4 = vcmp.gt.s32.totalorder %v1780_v21, 0  ;;  %vm2163_vm5 = vcmp.gt.s32.totalorder %v1908_v8, 0 }
 0x1e8   : > { %v3881_v62 = vsel %vm2035_vm4, %v1780_v21, 0  ;;  %v3883_v24 = vsel %vm2163_vm5, %v1908_v8, 0  ;;  %v1367_v11 = vshra.s32 %v1239_v57, 8  ;;  %v1431_v29 = vshra.s32 %v1303_v20, 8  ;;  %v3893_v21 = vpop.f32.mrb[49].mxu1  ;;  %v3895_v8 = vpop.f32.mrb[50].mxu0 }
 0x1e9   : > { %2340 = vst [vmem:[%s3561_s24 + $0x28] sm:$0xff] %v2256_v15  ;;  %2356 = vst [vmem:[%s3561_s24 + $0xa8] sm:$0xff] %v2304_v23  ;;  %v2806_v30 = vtrunc.f32 %v3635_v42  ;;  %v2934_v25 = vtrunc.f32 %v3637_v54  ;;  %v2802_v38 = vtrunc.f32 %v3641_v55  ;;  %v2930_v46 = vtrunc.f32 %v3643_v56 }
 0x1ea   : > { %vm1519_vm6 = vcmp.gt.s32.totalorder %v1367_v11, 4294967169  ;;  %vm1647_vm7 = vcmp.gt.s32.totalorder %v1431_v29, 4294967169  ;;  %v2812_v4 = vtrunc.f32 %v3653_v49  ;;  %v2940_v33 = vtrunc.f32 %v3655_v36 }
 0x1eb   : > { %v1520_v13 = vsel %vm1519_vm6, %v1367_v11, 4294967169  ;;  %v1648_v26 = vsel %vm1647_vm7, %v1431_v29, 4294967169  ;;  %v2807_v19 = vcvt.f32.s32 %v2806_v30  ;;  %v2935_v58 = vcvt.f32.s32 %v2934_v25 }
 0x1ec   : > { %vm1775_vm8 = vcmp.lt.s32.totalorder %v1520_v13, 127  ;;  %vm1903_vm9 = vcmp.lt.s32.totalorder %v1648_v26, 127  ;;  %v2803_v42 = vcvt.f32.s32 %v2802_v38  ;;  %v2931_v54 = vcvt.f32.s32 %v2930_v46 }
 0x1ed   : > { %v1776_v55 = vsel %vm1775_vm8, %v1520_v13, 127  ;;  %v1904_v56 = vsel %vm1903_vm9, %v1648_v26, 127  ;;  %v1110_v57 = vmul.u32 %v2807_v19, %v3473_v48  ;;  %v1174_v49 = vmul.u32 %v2935_v58, %v3473_v48 }
 0x1ee   : > { %vm2031_vm10 = vcmp.gt.s32.totalorder %v1776_v55, 0  ;;  %vm2159_vm11 = vcmp.gt.s32.totalorder %v1904_v56, 0  ;;  %v1108_v36 = vmul.u32 %v2803_v42, %v3473_v48  ;;  %v1172_v20 = vmul.u32 %v2931_v54, %v3473_v48 }
 0x1ef   : > { %v2032_v15 = vsel %vm2031_vm10, %v1776_v55, 0  ;;  %v2160_v23 = vsel %vm2159_vm11, %v1904_v56, 0  ;;  %v1242_v11 = vadd.s32 %v3475_v52, %v1110_v57  ;;  %v1306_v29 = vadd.s32 %v3475_v52, %v1174_v49 }
 0x1f0   : > { %v1240_v30 = vadd.s32 %v3475_v52, %v1108_v36  ;;  %v1304_v25 = vadd.s32 %v3475_v52, %v1172_v20  ;;  %v2813_v38 = vcvt.f32.s32 %v2812_v4  ;;  %v2941_v46 = vcvt.f32.s32 %v2940_v33  ;;  %v3909_v4 = vpop.f32.mrb[50].mxu1  ;;  %v3911_v33 = vpop.f32.mrb[51].mxu0 }
 0x1f1   : > { %v1370_v13 = vshra.s32 %v1242_v11, 8  ;;  %v1434_v26 = vshra.s32 %v1306_v29, 8  ;;  %v2808_v19 = vtrunc.f32 %v3659_v39  ;;  %v2936_v58 = vtrunc.f32 %v3661_v40 }
 0x1f2   : > { %v1368_v42 = vshra.s32 %v1240_v30, 8  ;;  %v1432_v54 = vshra.s32 %v1304_v25, 8  ;;  %v1113_v55 = vmul.u32 %v2813_v38, %v3473_v48  ;;  %v1177_v56 = vmul.u32 %v2941_v46, %v3473_v48  ;;  %v3913_v38 = vpop.f32.mrb[51].mxu1 }
 0x1f3   : > { %vm1525_vm12 = vcmp.gt.s32.totalorder %v1370_v13, 4294967169  ;;  %vm1653_vm13 = vcmp.gt.s32.totalorder %v1434_v26, 4294967169  ;;  %v2809_v57 = vcvt.f32.s32 %v2808_v19  ;;  %v2937_v49 = vcvt.f32.s32 %v2936_v58 }
 0x1f4   : > { %v1526_v36 = vsel %vm1525_vm12, %v1370_v13, 4294967169  ;;  %v1654_v20 = vsel %vm1653_vm13, %v1434_v26, 4294967169  ;;  %vm1521_vm14 = vcmp.gt.s32.totalorder %v1368_v42, 4294967169  ;;  %vm1649_vm15 = vcmp.gt.s32.totalorder %v1432_v54, 4294967169 }
 0x1f5   : > { %vm1781_vm0 = vcmp.lt.s32.totalorder %v1526_v36, 127  ;;  %vm1909_vm1 = vcmp.lt.s32.totalorder %v1654_v20, 127  ;;  %v1522_v39 = vsel %vm1521_vm14, %v1368_v42, 4294967169  ;;  %v1650_v40 = vsel %vm1649_vm15, %v1432_v54, 4294967169 }
 0x1f6   : > { %v1782_v11 = vsel %vm1781_vm0, %v1526_v36, 127  ;;  %v1910_v29 = vsel %vm1909_vm1, %v1654_v20, 127  ;;  %vm1777_vm2 = vcmp.lt.s32.totalorder %v1522_v39, 127  ;;  %vm1905_vm3 = vcmp.lt.s32.totalorder %v1650_v40, 127 }
 0x1f7   : > { %vm2037_vm4 = vcmp.gt.s32.totalorder %v1782_v11, 0  ;;  %vm2165_vm5 = vcmp.gt.s32.totalorder %v1910_v29, 0  ;;  %v1778_v30 = vsel %vm1777_vm2, %v1522_v39, 127  ;;  %v1906_v25 = vsel %vm1905_vm3, %v1650_v40, 127 }
 0x1f8   : > { %v2038_v46 = vsel %vm2037_vm4, %v1782_v11, 0  ;;  %v2166_v13 = vsel %vm2165_vm5, %v1910_v29, 0  ;;  %vm2033_vm6 = vcmp.gt.s32.totalorder %v1778_v30, 0  ;;  %vm2161_vm7 = vcmp.gt.s32.totalorder %v1906_v25, 0 }
 0x1f9   : > { %v2258_v26 = vpack.c.b16 %v2038_v46, %v3881_v62  ;;  %v2306_v19 = vpack.c.b16 %v2166_v13, %v3883_v24  ;;  %v2034_v58 = vsel %vm2033_vm6, %v1778_v30, 0  ;;  %v2162_v42 = vsel %vm2161_vm7, %v1906_v25, 0 }
 0x1fa   : > { %v2257_v54 = vpack.c.b16 %v2034_v58, %v2032_v15  ;;  %v2305_v36 = vpack.c.b16 %v2162_v42, %v2160_v23  ;;  %v1245_v20 = vadd.s32 %v3475_v52, %v1113_v55  ;;  %v1309_v39 = vadd.s32 %v3475_v52, %v1177_v56  ;;  %v3923_v15 = vpop.f32.mrb[52].mxu0  ;;  %v3931_v58 = vpop.f32.mrb[52].mxu1 }
 0x1fb   : > { %v1111_v40 = vmul.u32 %v2809_v57, %v3473_v48  ;;  %v1175_v11 = vmul.u32 %v2937_v49, %v3473_v48  ;;  %v2814_v29 = vtrunc.f32 %v3667_v31  ;;  %v2942_v62 = vtrunc.f32 %v3669_v32 }
 0x1fc   : > { %v2259_v46 = vpack.c.b8 %v2258_v26, %v2257_v54  ;;  %v2307_v24 = vpack.c.b8 %v2306_v19, %v2305_v36  ;;  %v1373_v30 = vshra.s32 %v1245_v20, 8  ;;  %v1437_v25 = vshra.s32 %v1309_v39, 8  ;;  %v3935_v36 = vpop.f32.mrb[53].mxu0 }
 0x1fd   : > { %v1243_v23 = vadd.s32 %v3475_v52, %v1111_v40  ;;  %v1307_v55 = vadd.s32 %v3475_v52, %v1175_v11  ;;  %v2815_v13 = vcvt.f32.s32 %v2814_v29  ;;  %v2943_v56 = vcvt.f32.s32 %v2942_v62  ;;  %v3937_v40 = vpop.f32.mrb[53].mxu1  ;;  %v3943_v62 = vpop.f32.mrb[54].mxu0 }
 0x1fe   : > { %2341 = vst [vmem:[%s3561_s24 + $0x30] sm:$0xff] %v2259_v46  ;;  %2357 = vst [vmem:[%s3561_s24 + $0xb0] sm:$0xff] %v2307_v24  ;;  %vm1531_vm8 = vcmp.gt.s32.totalorder %v1373_v30, 4294967169  ;;  %vm1659_vm9 = vcmp.gt.s32.totalorder %v1437_v25, 4294967169  ;;  %v2810_v31 = vtrunc.f32 %v3673_v2  ;;  %v2938_v32 = vtrunc.f32 %v3675_v47 }
 0x1ff   : > { %v1532_v57 = vsel %vm1531_vm8, %v1373_v30, 4294967169  ;;  %v1660_v49 = vsel %vm1659_vm9, %v1437_v25, 4294967169  ;;  %v1371_v26 = vshra.s32 %v1243_v23, 8  ;;  %v1435_v19 = vshra.s32 %v1307_v55, 8  ;;  %4351 = vst [vmem:[#allocation16_spill] sm:$0xff] %v3937_v40  ;;  %4352 = vst [vmem:[#allocation17_spill] sm:$0xff] %v3943_v62 }
 0x200   : > { %vm1787_vm10 = vcmp.lt.s32.totalorder %v1532_v57, 127  ;;  %vm1915_vm11 = vcmp.lt.s32.totalorder %v1660_v49, 127  ;;  %v1114_v42 = vmul.u32 %v2815_v13, %v3473_v48  ;;  %v1178_v54 = vmul.u32 %v2943_v56, %v3473_v48  ;;  %v3959_v40 = vpop.f32.mrb[54].mxu1 }
 0x201   : > { %v1788_v20 = vsel %vm1787_vm10, %v1532_v57, 127  ;;  %v1916_v39 = vsel %vm1915_vm11, %v1660_v49, 127  ;;  %vm1527_vm12 = vcmp.gt.s32.totalorder %v1371_v26, 4294967169  ;;  %vm1655_vm13 = vcmp.gt.s32.totalorder %v1435_v19, 4294967169 }
 0x202   : > { %vm2043_vm14 = vcmp.gt.s32.totalorder %v1788_v20, 0  ;;  %vm2171_vm15 = vcmp.gt.s32.totalorder %v1916_v39, 0  ;;  %v1528_v2 = vsel %vm1527_vm12, %v1371_v26, 4294967169  ;;  %v1656_v47 = vsel %vm1655_vm13, %v1435_v19, 4294967169 }
 0x203   : > { %v3939_v11 = vsel %vm2043_vm14, %v1788_v20, 0  ;;  %v3941_v29 = vsel %vm2171_vm15, %v1916_v39, 0  ;;  %vm1783_vm0 = vcmp.lt.s32.totalorder %v1528_v2, 127  ;;  %vm1911_vm1 = vcmp.lt.s32.totalorder %v1656_v47, 127  ;;  %v4353_v20 = vld [vmem:[#allocation11_spill] sm:$0xff] }
 0x204   : > { %v1784_v46 = vsel %vm1783_vm0, %v1528_v2, 127  ;;  %v1912_v24 = vsel %vm1911_vm1, %v1656_v47, 127  ;;  %v1246_v30 = vadd.s32 %v3475_v52, %v1114_v42  ;;  %v1310_v25 = vadd.s32 %v3475_v52, %v1178_v54  ;;  %v4354_v2 = vld [vmem:[#allocation12_spill] sm:$0xff] }
 0x205   : > { %vm2039_vm2 = vcmp.gt.s32.totalorder %v1784_v46, 0  ;;  %vm2167_vm3 = vcmp.gt.s32.totalorder %v1912_v24, 0  ;;  %v2811_v23 = vcvt.f32.s32 %v2810_v31  ;;  %v2939_v55 = vcvt.f32.s32 %v2938_v32  ;;  %v4355_v31 = vld [vmem:[#allocation13_spill] sm:$0xff] }
 0x206   : > { %v3947_v13 = vsel %vm2039_vm2, %v1784_v46, 0  ;;  %v3949_v56 = vsel %vm2167_vm3, %v1912_v24, 0  ;;  %v1374_v57 = vshra.s32 %v1246_v30, 8  ;;  %v1438_v49 = vshra.s32 %v1310_v25, 8 }
 0x207   : > { %v1112_v26 = vmul.u32 %v2811_v23, %v3473_v48  ;;  %v1176_v19 = vmul.u32 %v2939_v55, %v3473_v48  ;;  %v2820_v39 = vtrunc.f32 %v4353_v20  ;;  %v2948_v42 = vtrunc.f32 %v4354_v2 }
 0x208   : > { %vm1533_vm4 = vcmp.gt.s32.totalorder %v1374_v57, 4294967169  ;;  %vm1661_vm5 = vcmp.gt.s32.totalorder %v1438_v49, 4294967169  ;;  %v2816_v54 = vtrunc.f32 %v3691_v1  ;;  %v2944_v32 = vtrunc.f32 %v4355_v31 }
 0x209   : > { %v1534_v47 = vsel %vm1533_vm4, %v1374_v57, 4294967169  ;;  %v1662_v46 = vsel %vm1661_vm5, %v1438_v49, 4294967169  ;;  %v1244_v24 = vadd.s32 %v3475_v52, %v1112_v26  ;;  %v1308_v30 = vadd.s32 %v3475_v52, %v1176_v19  ;;  %v3963_v49 = vpop.f32.mrb[55].mxu0 }
 0x20a   : > { %vm1789_vm6 = vcmp.lt.s32.totalorder %v1534_v47, 127  ;;  %vm1917_vm7 = vcmp.lt.s32.totalorder %v1662_v46, 127  ;;  %v2821_v25 = vcvt.f32.s32 %v2820_v39  ;;  %v2949_v23 = vcvt.f32.s32 %v2948_v42  ;;  %4356 = vst [vmem:[#allocation11_spill] sm:$0xff] %v3963_v49 }
 0x20b   : > { %v1790_v55 = vsel %vm1789_vm6, %v1534_v47, 127  ;;  %v1918_v20 = vsel %vm1917_vm7, %v1662_v46, 127  ;;  %v1372_v62 = vshra.s32 %v1244_v24, 8  ;;  %v1436_v2 = vshra.s32 %v1308_v30, 8 }
 0x20c   : > { %vm2045_vm8 = vcmp.gt.s32.totalorder %v1790_v55, 0  ;;  %vm2173_vm9 = vcmp.gt.s32.totalorder %v1918_v20, 0  ;;  %v1117_v1 = vmul.u32 %v2821_v25, %v3473_v48  ;;  %v1181_v57 = vmul.u32 %v2949_v23, %v3473_v48 }
 0x20d   : > { %v2046_v26 = vsel %vm2045_vm8, %v1790_v55, 0  ;;  %v2174_v19 = vsel %vm2173_vm9, %v1918_v20, 0  ;;  %vm1529_vm10 = vcmp.gt.s32.totalorder %v1372_v62, 4294967169  ;;  %vm1657_vm11 = vcmp.gt.s32.totalorder %v1436_v2, 4294967169  ;;  %v3969_v55 = vpop.f32.mrb[55].mxu1 }
 0x20e   : > { %v2261_v39 = vpack.c.b16 %v2046_v26, %v3939_v11  ;;  %v2309_v42 = vpack.c.b16 %v2174_v19, %v3941_v29  ;;  %v1530_v31 = vsel %vm1529_vm10, %v1372_v62, 4294967169  ;;  %v1658_v47 = vsel %vm1657_vm11, %v1436_v2, 4294967169 }
 0x20f   : > { %vm1785_vm12 = vcmp.lt.s32.totalorder %v1530_v31, 127  ;;  %vm1913_vm13 = vcmp.lt.s32.totalorder %v1658_v47, 127  ;;  %v1249_v46 = vadd.s32 %v3475_v52, %v1117_v1  ;;  %v1313_v24 = vadd.s32 %v3475_v52, %v1181_v57 }
 0x210   : > { %v1786_v30 = vsel %vm1785_vm12, %v1530_v31, 127  ;;  %v1914_v25 = vsel %vm1913_vm13, %v1658_v47, 127  ;;  %v2817_v23 = vcvt.f32.s32 %v2816_v54  ;;  %v2945_v49 = vcvt.f32.s32 %v2944_v32 }
 0x211   : > { %vm2041_vm14 = vcmp.gt.s32.totalorder %v1786_v30, 0  ;;  %vm2169_vm15 = vcmp.gt.s32.totalorder %v1914_v25, 0  ;;  %v1377_v20 = vshra.s32 %v1249_v46, 8  ;;  %v1441_v11 = vshra.s32 %v1313_v24, 8  ;;  %v3977_v24 = vpop.f32.mrb[56].mxu0 }
 0x212   : > { %v2042_v26 = vsel %vm2041_vm14, %v1786_v30, 0  ;;  %v2170_v29 = vsel %vm2169_vm15, %v1914_v25, 0  ;;  %v1115_v62 = vmul.u32 %v2817_v23, %v3473_v48  ;;  %v1179_v2 = vmul.u32 %v2945_v49, %v3473_v48  ;;  %v3979_v49 = vpop.f32.mrb[56].mxu1  ;;  %v3981_v23 = vpop.f32.mrb[57].mxu0 }
 0x213   : > { %v2260_v1 = vpack.c.b16 %v2042_v26, %v3947_v13  ;;  %v2308_v57 = vpack.c.b16 %v2170_v29, %v3949_v56  ;;  %vm1539_vm0 = vcmp.gt.s32.totalorder %v1377_v20, 4294967169  ;;  %vm1667_vm1 = vcmp.gt.s32.totalorder %v1441_v11, 4294967169 }
 0x214   : > { %v1540_v54 = vsel %vm1539_vm0, %v1377_v20, 4294967169  ;;  %v1668_v32 = vsel %vm1667_vm1, %v1441_v11, 4294967169  ;;  %v1247_v19 = vadd.s32 %v3475_v52, %v1115_v62  ;;  %v1311_v31 = vadd.s32 %v3475_v52, %v1179_v2 }
 0x215   : > { %v2262_v47 = vpack.c.b8 %v2261_v39, %v2260_v1  ;;  %v2310_v46 = vpack.c.b8 %v2309_v42, %v2308_v57  ;;  %vm1795_vm2 = vcmp.lt.s32.totalorder %v1540_v54, 127  ;;  %vm1923_vm3 = vcmp.lt.s32.totalorder %v1668_v32, 127  ;;  %v4357_v1 = vld [vmem:[#allocation14_spill] sm:$0xff] }
 0x216   : > { %v1796_v13 = vsel %vm1795_vm2, %v1540_v54, 127  ;;  %v1924_v56 = vsel %vm1923_vm3, %v1668_v32, 127  ;;  %v1375_v30 = vshra.s32 %v1247_v19, 8  ;;  %v1439_v25 = vshra.s32 %v1311_v31, 8  ;;  %v3995_v31 = vpop.f32.mrb[57].mxu1 }
 0x217   : > { %2342 = vst [vmem:[%s3561_s24 + $0x38] sm:$0xff] %v2262_v47  ;;  %2358 = vst [vmem:[%s3561_s24 + $0xb8] sm:$0xff] %v2310_v46  ;;  %vm2051_vm4 = vcmp.gt.s32.totalorder %v1796_v13, 0  ;;  %vm2179_vm5 = vcmp.gt.s32.totalorder %v1924_v56, 0  ;;  %v2822_v20 = vtrunc.f32 %v3697_v9  ;;  %v2950_v39 = vtrunc.f32 %v3699_v17 }
 0x218   : > { %v3987_v42 = vsel %vm2051_vm4, %v1796_v13, 0  ;;  %v3989_v11 = vsel %vm2179_vm5, %v1924_v56, 0  ;;  %vm1535_vm6 = vcmp.gt.s32.totalorder %v1375_v30, 4294967169  ;;  %vm1663_vm7 = vcmp.gt.s32.totalorder %v1439_v25, 4294967169  ;;  %v3997_v13 = vpop.f32.mrb[58].mxu0 }
 0x219   : > { %v1536_v26 = vsel %vm1535_vm6, %v1375_v30, 4294967169  ;;  %v1664_v29 = vsel %vm1663_vm7, %v1439_v25, 4294967169  ;;  %v2823_v62 = vcvt.f32.s32 %v2822_v20  ;;  %v2951_v2 = vcvt.f32.s32 %v2950_v39  ;;  %4358 = vst [vmem:[#allocation12_spill] sm:$0xff] %v3997_v13 }
 0x21a   : > { %vm1791_vm8 = vcmp.lt.s32.totalorder %v1536_v26, 127  ;;  %vm1919_vm9 = vcmp.lt.s32.totalorder %v1664_v29, 127  ;;  %v2818_v57 = vtrunc.f32 %v4357_v1  ;;  %v2946_v54 = vtrunc.f32 %v3711_v6 }
 0x21b   : > { %v1792_v32 = vsel %vm1791_vm8, %v1536_v26, 127  ;;  %v1920_v9 = vsel %vm1919_vm9, %v1664_v29, 127  ;;  %v1118_v17 = vmul.u32 %v2823_v62, %v3473_v48  ;;  %v1182_v19 = vmul.u32 %v2951_v2, %v3473_v48 }
 0x21c   : > { %vm2047_vm10 = vcmp.gt.s32.totalorder %v1792_v32, 0  ;;  %vm2175_vm11 = vcmp.gt.s32.totalorder %v1920_v9, 0  ;;  %v2819_v47 = vcvt.f32.s32 %v2818_v57  ;;  %v2947_v46 = vcvt.f32.s32 %v2946_v54 }
 0x21d   : > { %v3999_v56 = vsel %vm2047_vm10, %v1792_v32, 0  ;;  %v4001_v30 = vsel %vm2175_vm11, %v1920_v9, 0  ;;  %v1250_v6 = vadd.s32 %v3475_v52, %v1118_v17  ;;  %v1314_v25 = vadd.s32 %v3475_v52, %v1182_v19 }
 0x21e   : > { %v1116_v20 = vmul.u32 %v2819_v47, %v3473_v48  ;;  %v1180_v39 = vmul.u32 %v2947_v46, %v3473_v48  ;;  %v2828_v26 = vtrunc.f32 %v3717_v5  ;;  %v2956_v29 = vtrunc.f32 %v3721_v16 }
 0x21f   : > { %v1378_v62 = vshra.s32 %v1250_v6, 8  ;;  %v1442_v2 = vshra.s32 %v1314_v25, 8  ;;  %v2824_v1 = vtrunc.f32 %v3731_v35  ;;  %v2952_v57 = vtrunc.f32 %v3735_v51 }
 0x220   : > { %v1248_v54 = vadd.s32 %v3475_v52, %v1116_v20  ;;  %v1312_v32 = vadd.s32 %v3475_v52, %v1180_v39  ;;  %v2829_v9 = vcvt.f32.s32 %v2828_v26  ;;  %v2957_v17 = vcvt.f32.s32 %v2956_v29  ;;  %v4015_v20 = vpop.f32.mrb[58].mxu1  ;;  %v4017_v29 = vpop.f32.mrb[59].mxu0 }
 0x221   : > { %vm1541_vm12 = vcmp.gt.s32.totalorder %v1378_v62, 4294967169  ;;  %vm1669_vm13 = vcmp.gt.s32.totalorder %v1442_v2, 4294967169  ;;  %v2825_v19 = vcvt.f32.s32 %v2824_v1  ;;  %v2953_v47 = vcvt.f32.s32 %v2952_v57 }
 0x222   : > { %v1542_v46 = vsel %vm1541_vm12, %v1378_v62, 4294967169  ;;  %v1670_v5 = vsel %vm1669_vm13, %v1442_v2, 4294967169  ;;  %v1376_v13 = vshra.s32 %v1248_v54, 8  ;;  %v1440_v16 = vshra.s32 %v1312_v32, 8  ;;  %v4019_v62 = vpop.f32.mrb[59].mxu1 }
 0x223   : > { %vm1797_vm14 = vcmp.lt.s32.totalorder %v1542_v46, 127  ;;  %vm1925_vm15 = vcmp.lt.s32.totalorder %v1670_v5, 127  ;;  %v1121_v35 = vmul.u32 %v2829_v9, %v3473_v48  ;;  %v1185_v51 = vmul.u32 %v2957_v17, %v3473_v48 }
 0x224   : > { %v1798_v6 = vsel %vm1797_vm14, %v1542_v46, 127  ;;  %v1926_v25 = vsel %vm1925_vm15, %v1670_v5, 127  ;;  %vm1537_vm0 = vcmp.gt.s32.totalorder %v1376_v13, 4294967169  ;;  %vm1665_vm1 = vcmp.gt.s32.totalorder %v1440_v16, 4294967169 }
 0x225   : > { %vm2053_vm2 = vcmp.gt.s32.totalorder %v1798_v6, 0  ;;  %vm2181_vm3 = vcmp.gt.s32.totalorder %v1926_v25, 0  ;;  %v1538_v39 = vsel %vm1537_vm0, %v1376_v13, 4294967169  ;;  %v1666_v26 = vsel %vm1665_vm1, %v1440_v16, 4294967169 }
 0x226   : > { %v2054_v2 = vsel %vm2053_vm2, %v1798_v6, 0  ;;  %v2182_v1 = vsel %vm2181_vm3, %v1926_v25, 0  ;;  %vm1793_vm4 = vcmp.lt.s32.totalorder %v1538_v39, 127  ;;  %vm1921_vm5 = vcmp.lt.s32.totalorder %v1666_v26, 127 }
 0x227   : > { %v2264_v57 = vpack.c.b16 %v2054_v2, %v3987_v42  ;;  %v2312_v54 = vpack.c.b16 %v2182_v1, %v3989_v11  ;;  %v1794_v32 = vsel %vm1793_vm4, %v1538_v39, 127  ;;  %v1922_v9 = vsel %vm1921_vm5, %v1666_v26, 127  ;;  %v4029_v26 = vpop.f32.mrb[60].mxu0  ;;  %v4359_v2 = vld [vmem:[#allocation15_spill] sm:$0xff] }
 0x228   : > { %vm2049_vm6 = vcmp.gt.s32.totalorder %v1794_v32, 0  ;;  %vm2177_vm7 = vcmp.gt.s32.totalorder %v1922_v9, 0  ;;  %v1253_v17 = vadd.s32 %v3475_v52, %v1121_v35  ;;  %v1317_v13 = vadd.s32 %v3475_v52, %v1185_v51 }
 0x229   : > { %v2050_v46 = vsel %vm2049_vm6, %v1794_v32, 0  ;;  %v2178_v5 = vsel %vm2177_vm7, %v1922_v9, 0  ;;  %v1119_v16 = vmul.u32 %v2825_v19, %v3473_v48  ;;  %v1183_v6 = vmul.u32 %v2953_v47, %v3473_v48 }
 0x22a   : > { %v2263_v25 = vpack.c.b16 %v2050_v46, %v3999_v56  ;;  %v2311_v42 = vpack.c.b16 %v2178_v5, %v4001_v30  ;;  %v1381_v11 = vshra.s32 %v1253_v17, 8  ;;  %v1445_v39 = vshra.s32 %v1317_v13, 8 }
 0x22b   : > { %v1251_v35 = vadd.s32 %v3475_v52, %v1119_v16  ;;  %v1315_v51 = vadd.s32 %v3475_v52, %v1183_v6  ;;  %v2830_v1 = vtrunc.f32 %v4359_v2  ;;  %v2958_v19 = vtrunc.f32 %v3751_v61  ;;  %v4037_v6 = vpop.f32.mrb[60].mxu1 }
 0x22c   : > { %v2265_v32 = vpack.c.b8 %v2264_v57, %v2263_v25  ;;  %v2313_v47 = vpack.c.b8 %v2312_v54, %v2311_v42  ;;  %vm1547_vm8 = vcmp.gt.s32.totalorder %v1381_v11, 4294967169  ;;  %vm1675_vm9 = vcmp.gt.s32.totalorder %v1445_v39, 4294967169  ;;  %v4039_v54 = vpop.f32.mrb[61].mxu0  ;;  %v4047_v2 = vpop.f32.mrb[61].mxu1 }
 0x22d   : > { %v1548_v56 = vsel %vm1547_vm8, %v1381_v11, 4294967169  ;;  %v1676_v30 = vsel %vm1675_vm9, %v1445_v39, 4294967169  ;;  %v1379_v9 = vshra.s32 %v1251_v35, 8  ;;  %v1443_v17 = vshra.s32 %v1315_v51, 8 }
 0x22e   : > { %2343 = vst [vmem:[%s3561_s24 + $0x40] sm:$0xff] %v2265_v32  ;;  %2359 = vst [vmem:[%s3561_s24 + $0xc0] sm:$0xff] %v2313_v47  ;;  %vm1803_vm10 = vcmp.lt.s32.totalorder %v1548_v56, 127  ;;  %vm1931_vm11 = vcmp.lt.s32.totalorder %v1676_v30, 127  ;;  %v2831_v13 = vcvt.f32.s32 %v2830_v1  ;;  %v2959_v46 = vcvt.f32.s32 %v2958_v19  ;;  %v4051_v32 = vpop.f32.mrb[62].mxu0 }
 0x22f   : > { %v1804_v5 = vsel %vm1803_vm10, %v1548_v56, 127  ;;  %v1932_v16 = vsel %vm1931_vm11, %v1676_v30, 127  ;;  %vm1543_vm12 = vcmp.gt.s32.totalorder %v1379_v9, 4294967169  ;;  %vm1671_vm13 = vcmp.gt.s32.totalorder %v1443_v17, 4294967169 }
 0x230   : > { %vm2059_vm14 = vcmp.gt.s32.totalorder %v1804_v5, 0  ;;  %vm2187_vm15 = vcmp.gt.s32.totalorder %v1932_v16, 0  ;;  %v1544_v61 = vsel %vm1543_vm12, %v1379_v9, 4294967169  ;;  %v1672_v57 = vsel %vm1671_vm13, %v1443_v17, 4294967169 }
 0x231   : > { %v4041_v25 = vsel %vm2059_vm14, %v1804_v5, 0  ;;  %v4043_v42 = vsel %vm2187_vm15, %v1932_v16, 0  ;;  %vm1799_vm0 = vcmp.lt.s32.totalorder %v1544_v61, 127  ;;  %vm1927_vm1 = vcmp.lt.s32.totalorder %v1672_v57, 127 }
 0x232   : > { %v1800_v11 = vsel %vm1799_vm0, %v1544_v61, 127  ;;  %v1928_v39 = vsel %vm1927_vm1, %v1672_v57, 127  ;;  %v1122_v35 = vmul.u32 %v2831_v13, %v3473_v48  ;;  %v1186_v51 = vmul.u32 %v2959_v46, %v3473_v48 }
 0x233   : > { %vm2055_vm2 = vcmp.gt.s32.totalorder %v1800_v11, 0  ;;  %vm2183_vm3 = vcmp.gt.s32.totalorder %v1928_v39, 0  ;;  %v2826_v1 = vtrunc.f32 %v3753_v59  ;;  %v2954_v19 = vtrunc.f32 %v3757_v27 }
 0x234   : > { %v4053_v47 = vsel %vm2055_vm2, %v1800_v11, 0  ;;  %v4055_v56 = vsel %vm2183_vm3, %v1928_v39, 0  ;;  %v1254_v30 = vadd.s32 %v3475_v52, %v1122_v35  ;;  %v1318_v9 = vadd.s32 %v3475_v52, %v1186_v51 }
 0x235   : > { %v2827_v17 = vcvt.f32.s32 %v2826_v1  ;;  %v2955_v13 = vcvt.f32.s32 %v2954_v19  ;;  %v2836_v46 = vtrunc.f32 %v3773_v14  ;;  %v2964_v5 = vtrunc.f32 %v3775_v60 }
 0x236   : > { %v1382_v16 = vshra.s32 %v1254_v30, 8  ;;  %v1446_v59 = vshra.s32 %v1318_v9, 8  ;;  %v2832_v27 = vtrunc.f32 %v3779_v28  ;;  %v2960_v61 = vtrunc.f32 %v3781_v22  ;;  %v4067_v9 = vpop.f32.mrb[62].mxu1 }
 0x237   : > { %v1120_v57 = vmul.u32 %v2827_v17, %v3473_v48  ;;  %v1184_v11 = vmul.u32 %v2955_v13, %v3473_v48  ;;  %v2837_v39 = vcvt.f32.s32 %v2836_v46  ;;  %v2965_v35 = vcvt.f32.s32 %v2964_v5  ;;  %v4071_v17 = vpop.f32.mrb[63].mxu0 }
 0x238   : > { %vm1549_vm4 = vcmp.gt.s32.totalorder %v1382_v16, 4294967169  ;;  %vm1677_vm5 = vcmp.gt.s32.totalorder %v1446_v59, 4294967169  ;;  %v2833_v51 = vcvt.f32.s32 %v2832_v27  ;;  %v2961_v1 = vcvt.f32.s32 %v2960_v61  ;;  %4360 = vst [vmem:[#allocation13_spill] sm:$0xff] %v4071_v17 }
 0x239   : > { %v1550_v19 = vsel %vm1549_vm4, %v1382_v16, 4294967169  ;;  %v1678_v14 = vsel %vm1677_vm5, %v1446_v59, 4294967169  ;;  %v1252_v60 = vadd.s32 %v3475_v52, %v1120_v57  ;;  %v1316_v30 = vadd.s32 %v3475_v52, %v1184_v11 }
 0x23a   : > { %vm1805_vm6 = vcmp.lt.s32.totalorder %v1550_v19, 127  ;;  %vm1933_vm7 = vcmp.lt.s32.totalorder %v1678_v14, 127  ;;  %v1125_v28 = vmul.u32 %v2837_v39, %v3473_v48  ;;  %v1189_v22 = vmul.u32 %v2965_v35, %v3473_v48 }
 0x23b   : > { %v1806_v13 = vsel %vm1805_vm6, %v1550_v19, 127  ;;  %v1934_v46 = vsel %vm1933_vm7, %v1678_v14, 127  ;;  %v1380_v5 = vshra.s32 %v1252_v60, 8  ;;  %v1444_v27 = vshra.s32 %v1316_v30, 8  ;;  %v4077_v19 = vpop.f32.mrb[63].mxu1 }
 0x23c   : > { %vm2061_vm8 = vcmp.gt.s32.totalorder %v1806_v13, 0  ;;  %vm2189_vm9 = vcmp.gt.s32.totalorder %v1934_v46, 0  ;;  %v1257_v16 = vadd.s32 %v3475_v52, %v1125_v28  ;;  %v1321_v59 = vadd.s32 %v3475_v52, %v1189_v22 }
 0x23d   : > { %v2062_v61 = vsel %vm2061_vm8, %v1806_v13, 0  ;;  %v2190_v57 = vsel %vm2189_vm9, %v1934_v46, 0  ;;  %vm1545_vm10 = vcmp.gt.s32.totalorder %v1380_v5, 4294967169  ;;  %vm1673_vm11 = vcmp.gt.s32.totalorder %v1444_v27, 4294967169 }
 0x23e   : > { %v2267_v11 = vpack.c.b16 %v2062_v61, %v4041_v25  ;;  %v2315_v39 = vpack.c.b16 %v2190_v57, %v4043_v42  ;;  %v1546_v35 = vsel %vm1545_vm10, %v1380_v5, 4294967169  ;;  %v1674_v17 = vsel %vm1673_vm11, %v1444_v27, 4294967169 }
 0x23f   : > { %vm1801_vm12 = vcmp.lt.s32.totalorder %v1546_v35, 127  ;;  %vm1929_vm13 = vcmp.lt.s32.totalorder %v1674_v17, 127  ;;  %v1385_v14 = vshra.s32 %v1257_v16, 8  ;;  %v1449_v60 = vshra.s32 %v1321_v59, 8 }
 0x240   : > { %v1802_v30 = vsel %vm1801_vm12, %v1546_v35, 127  ;;  %v1930_v28 = vsel %vm1929_vm13, %v1674_v17, 127  ;;  %v1123_v22 = vmul.u32 %v2833_v51, %v3473_v48  ;;  %v1187_v13 = vmul.u32 %v2961_v1, %v3473_v48 }
 0x241   : > { %vm2057_vm14 = vcmp.gt.s32.totalorder %v1802_v30, 0  ;;  %vm2185_vm15 = vcmp.gt.s32.totalorder %v1930_v28, 0  ;;  %vm1555_vm0 = vcmp.gt.s32.totalorder %v1385_v14, 4294967169  ;;  %vm1683_vm1 = vcmp.gt.s32.totalorder %v1449_v60, 4294967169 }
 0x242   : > { %v2058_v25 = vsel %vm2057_vm14, %v1802_v30, 0  ;;  %v2186_v42 = vsel %vm2185_vm15, %v1930_v28, 0  ;;  %v1556_v46 = vsel %vm1555_vm0, %v1385_v14, 4294967169  ;;  %v1684_v5 = vsel %vm1683_vm1, %v1449_v60, 4294967169 }
 0x243   : > { %v2266_v27 = vpack.c.b16 %v2058_v25, %v4053_v47  ;;  %v2314_v16 = vpack.c.b16 %v2186_v42, %v4055_v56  ;;  %vm1811_vm2 = vcmp.lt.s32.totalorder %v1556_v46, 127  ;;  %vm1939_vm3 = vcmp.lt.s32.totalorder %v1684_v5, 127 }
 0x244   : > { %v1812_v17 = vsel %vm1811_vm2, %v1556_v46, 127  ;;  %v1940_v51 = vsel %vm1939_vm3, %v1684_v5, 127  ;;  %v1255_v1 = vadd.s32 %v3475_v52, %v1123_v22  ;;  %v1319_v59 = vadd.s32 %v3475_v52, %v1187_v13 }
 0x245   : > { %v2268_v61 = vpack.c.b8 %v2267_v11, %v2266_v27  ;;  %v2316_v57 = vpack.c.b8 %v2315_v39, %v2314_v16  ;;  %vm2067_vm4 = vcmp.gt.s32.totalorder %v1812_v17, 0  ;;  %vm2195_vm5 = vcmp.gt.s32.totalorder %v1940_v51, 0 }
 0x246   : > { %v4085_v35 = vsel %vm2067_vm4, %v1812_v17, 0  ;;  %v4087_v14 = vsel %vm2195_vm5, %v1940_v51, 0  ;;  %v1383_v47 = vshra.s32 %v1255_v1, 8  ;;  %v1447_v60 = vshra.s32 %v1319_v59, 8 }
 0x247   : > { %2344 = vst [vmem:[%s3561_s24 + $0x48] sm:$0xff] %v2268_v61  ;;  %2360 = vst [vmem:[%s3561_s24 + $0xc8] sm:$0xff] %v2316_v57  ;;  %v2838_v56 = vtrunc.f32 %v3787_v41  ;;  %v2966_v30 = vtrunc.f32 %v3805_v7  ;;  %v2834_v28 = vtrunc.f32 %v3807_v50  ;;  %v2962_v22 = vtrunc.f32 %v3809_v3 }
 0x248   : > { %vm1551_vm6 = vcmp.gt.s32.totalorder %v1383_v47, 4294967169  ;;  %vm1679_vm7 = vcmp.gt.s32.totalorder %v1447_v60, 4294967169  ;;  %v2844_v11 = vtrunc.f32 %v3819_v63  ;;  %v2972_v39 = vtrunc.f32 %v3827_v45 }
 0x249   : > { %v1552_v13 = vsel %vm1551_vm6, %v1383_v47, 4294967169  ;;  %v1680_v25 = vsel %vm1679_vm7, %v1447_v60, 4294967169  ;;  %v2839_v42 = vcvt.f32.s32 %v2838_v56  ;;  %v2967_v46 = vcvt.f32.s32 %v2966_v30 }
 0x24a   : > { %vm1807_vm8 = vcmp.lt.s32.totalorder %v1552_v13, 127  ;;  %vm1935_vm9 = vcmp.lt.s32.totalorder %v1680_v25, 127  ;;  %v2835_v5 = vcvt.f32.s32 %v2834_v28  ;;  %v2963_v41 = vcvt.f32.s32 %v2962_v22 }
 0x24b   : > { %v1808_v27 = vsel %vm1807_vm8, %v1552_v13, 127  ;;  %v1936_v7 = vsel %vm1935_vm9, %v1680_v25, 127  ;;  %v1126_v50 = vmul.u32 %v2839_v42, %v3473_v48  ;;  %v1190_v3 = vmul.u32 %v2967_v46, %v3473_v48 }
 0x24c   : > { %vm2063_vm10 = vcmp.gt.s32.totalorder %v1808_v27, 0  ;;  %vm2191_vm11 = vcmp.gt.s32.totalorder %v1936_v7, 0  ;;  %v1124_v63 = vmul.u32 %v2835_v5, %v3473_v48  ;;  %v1188_v45 = vmul.u32 %v2963_v41, %v3473_v48 }
 0x24d   : > { %v2064_v16 = vsel %vm2063_vm10, %v1808_v27, 0  ;;  %v2192_v17 = vsel %vm2191_vm11, %v1936_v7, 0  ;;  %v1258_v51 = vadd.s32 %v3475_v52, %v1126_v50  ;;  %v1322_v1 = vadd.s32 %v3475_v52, %v1190_v3 }
 0x24e   : > { %v1256_v59 = vadd.s32 %v3475_v52, %v1124_v63  ;;  %v1320_v61 = vadd.s32 %v3475_v52, %v1188_v45  ;;  %v2845_v57 = vcvt.f32.s32 %v2844_v11  ;;  %v2973_v47 = vcvt.f32.s32 %v2972_v39 }
 0x24f   : > { %v1386_v60 = vshra.s32 %v1258_v51, 8  ;;  %v1450_v56 = vshra.s32 %v1322_v1, 8  ;;  %v2840_v30 = vtrunc.f32 %v3829_v0  ;;  %v2968_v28 = vtrunc.f32 %v3837_v43 }
 0x250   : > { %v1384_v22 = vshra.s32 %v1256_v59, 8  ;;  %v1448_v13 = vshra.s32 %v1320_v61, 8  ;;  %v1129_v25 = vmul.u32 %v2845_v57, %v3473_v48  ;;  %v1193_v42 = vmul.u32 %v2973_v47, %v3473_v48 }
 0x251   : > { %vm1557_vm12 = vcmp.gt.s32.totalorder %v1386_v60, 4294967169  ;;  %vm1685_vm13 = vcmp.gt.s32.totalorder %v1450_v56, 4294967169  ;;  %v2841_v46 = vcvt.f32.s32 %v2840_v30  ;;  %v2969_v5 = vcvt.f32.s32 %v2968_v28 }
 0x252   : > { %v1558_v41 = vsel %vm1557_vm12, %v1386_v60, 4294967169  ;;  %v1686_v27 = vsel %vm1685_vm13, %v1450_v56, 4294967169  ;;  %vm1553_vm14 = vcmp.gt.s32.totalorder %v1384_v22, 4294967169  ;;  %vm1681_vm15 = vcmp.gt.s32.totalorder %v1448_v13, 4294967169 }
 0x253   : > { %vm1813_vm0 = vcmp.lt.s32.totalorder %v1558_v41, 127  ;;  %vm1941_vm1 = vcmp.lt.s32.totalorder %v1686_v27, 127  ;;  %v1554_v11 = vsel %vm1553_vm14, %v1384_v22, 4294967169  ;;  %v1682_v0 = vsel %vm1681_vm15, %v1448_v13, 4294967169 }
 0x254   : > { %v1814_v39 = vsel %vm1813_vm0, %v1558_v41, 127  ;;  %v1942_v43 = vsel %vm1941_vm1, %v1686_v27, 127  ;;  %vm1809_vm2 = vcmp.lt.s32.totalorder %v1554_v11, 127  ;;  %vm1937_vm3 = vcmp.lt.s32.totalorder %v1682_v0, 127 }
 0x255   : > { %vm2069_vm4 = vcmp.gt.s32.totalorder %v1814_v39, 0  ;;  %vm2197_vm5 = vcmp.gt.s32.totalorder %v1942_v43, 0  ;;  %v1810_v7 = vsel %vm1809_vm2, %v1554_v11, 127  ;;  %v1938_v50 = vsel %vm1937_vm3, %v1682_v0, 127 }
 0x256   : > { %v2070_v3 = vsel %vm2069_vm4, %v1814_v39, 0  ;;  %v2198_v63 = vsel %vm2197_vm5, %v1942_v43, 0  ;;  %vm2065_vm6 = vcmp.gt.s32.totalorder %v1810_v7, 0  ;;  %vm2193_vm7 = vcmp.gt.s32.totalorder %v1938_v50, 0 }
 0x257   : > { %v2270_v45 = vpack.c.b16 %v2070_v3, %v4085_v35  ;;  %v2318_v51 = vpack.c.b16 %v2198_v63, %v4087_v14  ;;  %v2066_v1 = vsel %vm2065_vm6, %v1810_v7, 0  ;;  %v2194_v59 = vsel %vm2193_vm7, %v1938_v50, 0 }
 0x258   : > { %v2269_v61 = vpack.c.b16 %v2066_v1, %v2064_v16  ;;  %v2317_v57 = vpack.c.b16 %v2194_v59, %v2192_v17  ;;  %v1261_v47 = vadd.s32 %v3475_v52, %v1129_v25  ;;  %v1325_v60 = vadd.s32 %v3475_v52, %v1193_v42 }
 0x259   : > { %v1127_v56 = vmul.u32 %v2841_v46, %v3473_v48  ;;  %v1191_v30 = vmul.u32 %v2969_v5, %v3473_v48  ;;  %v2846_v28 = vtrunc.f32 %v3841_v10  ;;  %v2974_v35 = vtrunc.f32 %v3857_v18 }
 0x25a   : > { %v2271_v22 = vpack.c.b8 %v2270_v45, %v2269_v61  ;;  %v2319_v14 = vpack.c.b8 %v2318_v51, %v2317_v57  ;;  %v1389_v13 = vshra.s32 %v1261_v47, 8  ;;  %v1453_v41 = vshra.s32 %v1325_v60, 8 }
 0x25b   : > { %v1259_v16 = vadd.s32 %v3475_v52, %v1127_v56  ;;  %v1323_v17 = vadd.s32 %v3475_v52, %v1191_v30  ;;  %v2847_v27 = vcvt.f32.s32 %v2846_v28  ;;  %v2975_v25 = vcvt.f32.s32 %v2974_v35 }
 0x25c   : > { %2345 = vst [vmem:[%s3561_s24 + $0x50] sm:$0xff] %v2271_v22  ;;  %2361 = vst [vmem:[%s3561_s24 + $0xd0] sm:$0xff] %v2319_v14  ;;  %vm1563_vm8 = vcmp.gt.s32.totalorder %v1389_v13, 4294967169  ;;  %vm1691_vm9 = vcmp.gt.s32.totalorder %v1453_v41, 4294967169  ;;  %v2842_v42 = vtrunc.f32 %v3861_v53  ;;  %v2970_v10 = vtrunc.f32 %v3867_v44 }
 0x25d   : > { %v1564_v46 = vsel %vm1563_vm8, %v1389_v13, 4294967169  ;;  %v1692_v18 = vsel %vm1691_vm9, %v1453_v41, 4294967169  ;;  %v1387_v5 = vshra.s32 %v1259_v16, 8  ;;  %v1451_v11 = vshra.s32 %v1323_v17, 8 }
 0x25e   : > { %vm1819_vm10 = vcmp.lt.s32.totalorder %v1564_v46, 127  ;;  %vm1947_vm11 = vcmp.lt.s32.totalorder %v1692_v18, 127  ;;  %v1130_v0 = vmul.u32 %v2847_v27, %v3473_v48  ;;  %v1194_v39 = vmul.u32 %v2975_v25, %v3473_v48 }
 0x25f   : > { %v1820_v43 = vsel %vm1819_vm10, %v1564_v46, 127  ;;  %v1948_v7 = vsel %vm1947_vm11, %v1692_v18, 127  ;;  %vm1559_vm12 = vcmp.gt.s32.totalorder %v1387_v5, 4294967169  ;;  %vm1687_vm13 = vcmp.gt.s32.totalorder %v1451_v11, 4294967169 }
 0x260   : > { %vm2075_vm14 = vcmp.gt.s32.totalorder %v1820_v43, 0  ;;  %vm2203_vm15 = vcmp.gt.s32.totalorder %v1948_v7, 0  ;;  %v1560_v50 = vsel %vm1559_vm12, %v1387_v5, 4294967169  ;;  %v1688_v53 = vsel %vm1687_vm13, %v1451_v11, 4294967169 }
 0x261   : > { %v4125_v3 = vsel %vm2075_vm14, %v1820_v43, 0  ;;  %v4127_v44 = vsel %vm2203_vm15, %v1948_v7, 0  ;;  %vm1815_vm0 = vcmp.lt.s32.totalorder %v1560_v50, 127  ;;  %vm1943_vm1 = vcmp.lt.s32.totalorder %v1688_v53, 127 }
 0x262   : > { %v1816_v63 = vsel %vm1815_vm0, %v1560_v50, 127  ;;  %v1944_v45 = vsel %vm1943_vm1, %v1688_v53, 127  ;;  %v1262_v51 = vadd.s32 %v3475_v52, %v1130_v0  ;;  %v1326_v1 = vadd.s32 %v3475_v52, %v1194_v39 }
 0x263   : > { %vm2071_vm2 = vcmp.gt.s32.totalorder %v1816_v63, 0  ;;  %vm2199_vm3 = vcmp.gt.s32.totalorder %v1944_v45, 0  ;;  %v2843_v59 = vcvt.f32.s32 %v2842_v42  ;;  %v2971_v61 = vcvt.f32.s32 %v2970_v10 }
 0x264   : > { %v2072_v57 = vsel %vm2071_vm2, %v1816_v63, 0  ;;  %v2200_v47 = vsel %vm2199_vm3, %v1944_v45, 0  ;;  %v1390_v60 = vshra.s32 %v1262_v51, 8  ;;  %v1454_v56 = vshra.s32 %v1326_v1, 8 }
 0x265   : > { %v1128_v30 = vmul.u32 %v2843_v59, %v3473_v48  ;;  %v1192_v28 = vmul.u32 %v2971_v61, %v3473_v48  ;;  %v2852_v35 = vtrunc.f32 %v3873_v37  ;;  %v2980_v22 = vtrunc.f32 %v3877_v34 }
 0x266   : > { %vm1565_vm4 = vcmp.gt.s32.totalorder %v1390_v60, 4294967169  ;;  %vm1693_vm5 = vcmp.gt.s32.totalorder %v1454_v56, 4294967169  ;;  %v2848_v14 = vtrunc.f32 %v3879_v12  ;;  %v2976_v13 = vtrunc.f32 %v3893_v21 }
 0x267   : > { %v1566_v41 = vsel %vm1565_vm4, %v1390_v60, 4294967169  ;;  %v1694_v16 = vsel %vm1693_vm5, %v1454_v56, 4294967169  ;;  %v1260_v17 = vadd.s32 %v3475_v52, %v1128_v30  ;;  %v1324_v27 = vadd.s32 %v3475_v52, %v1192_v28 }
 0x268   : > { %vm1821_vm6 = vcmp.lt.s32.totalorder %v1566_v41, 127  ;;  %vm1949_vm7 = vcmp.lt.s32.totalorder %v1694_v16, 127  ;;  %v2853_v25 = vcvt.f32.s32 %v2852_v35  ;;  %v2981_v42 = vcvt.f32.s32 %v2980_v22 }
 0x269   : > { %v1822_v10 = vsel %vm1821_vm6, %v1566_v41, 127  ;;  %v1950_v37 = vsel %vm1949_vm7, %v1694_v16, 127  ;;  %v1388_v46 = vshra.s32 %v1260_v17, 8  ;;  %v1452_v34 = vshra.s32 %v1324_v27, 8 }
 0x26a   : > { %vm2077_vm8 = vcmp.gt.s32.totalorder %v1822_v10, 0  ;;  %vm2205_vm9 = vcmp.gt.s32.totalorder %v1950_v37, 0  ;;  %v1133_v12 = vmul.u32 %v2853_v25, %v3473_v48  ;;  %v1197_v21 = vmul.u32 %v2981_v42, %v3473_v48 }
 0x26b   : > { %v2078_v18 = vsel %vm2077_vm8, %v1822_v10, 0  ;;  %v2206_v5 = vsel %vm2205_vm9, %v1950_v37, 0  ;;  %vm1561_vm10 = vcmp.gt.s32.totalorder %v1388_v46, 4294967169  ;;  %vm1689_vm11 = vcmp.gt.s32.totalorder %v1452_v34, 4294967169 }
 0x26c   : > { %v2273_v11 = vpack.c.b16 %v2078_v18, %v4125_v3  ;;  %v2321_v0 = vpack.c.b16 %v2206_v5, %v4127_v44  ;;  %v1562_v39 = vsel %vm1561_vm10, %v1388_v46, 4294967169  ;;  %v1690_v43 = vsel %vm1689_vm11, %v1452_v34, 4294967169 }
 0x26d   : > { %vm1817_vm12 = vcmp.lt.s32.totalorder %v1562_v39, 127  ;;  %vm1945_vm13 = vcmp.lt.s32.totalorder %v1690_v43, 127  ;;  %v1265_v7 = vadd.s32 %v3475_v52, %v1133_v12  ;;  %v1329_v50 = vadd.s32 %v3475_v52, %v1197_v21 }
 0x26e   : > { %v1818_v53 = vsel %vm1817_vm12, %v1562_v39, 127  ;;  %v1946_v63 = vsel %vm1945_vm13, %v1690_v43, 127  ;;  %v2849_v45 = vcvt.f32.s32 %v2848_v14  ;;  %v2977_v51 = vcvt.f32.s32 %v2976_v13 }
 0x26f   : > { %vm2073_vm14 = vcmp.gt.s32.totalorder %v1818_v53, 0  ;;  %vm2201_vm15 = vcmp.gt.s32.totalorder %v1946_v63, 0  ;;  %v1393_v1 = vshra.s32 %v1265_v7, 8  ;;  %v1457_v59 = vshra.s32 %v1329_v50, 8 }
 0x270   : > { %v2074_v61 = vsel %vm2073_vm14, %v1818_v53, 0  ;;  %v2202_v3 = vsel %vm2201_vm15, %v1946_v63, 0  ;;  %v1131_v44 = vmul.u32 %v2849_v45, %v3473_v48  ;;  %v1195_v60 = vmul.u32 %v2977_v51, %v3473_v48 }
 0x271   : > { %v2272_v56 = vpack.c.b16 %v2074_v61, %v2072_v57  ;;  %v2320_v30 = vpack.c.b16 %v2202_v3, %v2200_v47  ;;  %vm1571_vm0 = vcmp.gt.s32.totalorder %v1393_v1, 4294967169  ;;  %vm1699_vm1 = vcmp.gt.s32.totalorder %v1457_v59, 4294967169  ;;  %v4361_v61 = vld [vmem:[#allocation16_spill] sm:$0xff] }
 0x272   : > { %v1572_v28 = vsel %vm1571_vm0, %v1393_v1, 4294967169  ;;  %v1700_v35 = vsel %vm1699_vm1, %v1457_v59, 4294967169  ;;  %v1263_v22 = vadd.s32 %v3475_v52, %v1131_v44  ;;  %v1327_v14 = vadd.s32 %v3475_v52, %v1195_v60 }
 0x273   : > { %v2274_v13 = vpack.c.b8 %v2273_v11, %v2272_v56  ;;  %v2322_v41 = vpack.c.b8 %v2321_v0, %v2320_v30  ;;  %vm1827_vm2 = vcmp.lt.s32.totalorder %v1572_v28, 127  ;;  %vm1955_vm3 = vcmp.lt.s32.totalorder %v1700_v35, 127 }
 0x274   : > { %v1828_v16 = vsel %vm1827_vm2, %v1572_v28, 127  ;;  %v1956_v17 = vsel %vm1955_vm3, %v1700_v35, 127  ;;  %v1391_v27 = vshra.s32 %v1263_v22, 8  ;;  %v1455_v25 = vshra.s32 %v1327_v14, 8 }
 0x275   : > { %2346 = vst [vmem:[%s3561_s24 + $0x58] sm:$0xff] %v2274_v13  ;;  %2362 = vst [vmem:[%s3561_s24 + $0xd8] sm:$0xff] %v2322_v41  ;;  %vm2083_vm4 = vcmp.gt.s32.totalorder %v1828_v16, 0  ;;  %vm2211_vm5 = vcmp.gt.s32.totalorder %v1956_v17, 0  ;;  %v2854_v57 = vtrunc.f32 %v3895_v8  ;;  %v2982_v47 = vtrunc.f32 %v3909_v4 }
 0x276   : > { %v4153_v42 = vsel %vm2083_vm4, %v1828_v16, 0  ;;  %v4155_v10 = vsel %vm2211_vm5, %v1956_v17, 0  ;;  %vm1567_vm6 = vcmp.gt.s32.totalorder %v1391_v27, 4294967169  ;;  %vm1695_vm7 = vcmp.gt.s32.totalorder %v1455_v25, 4294967169 }
 0x277   : > { %v1568_v37 = vsel %vm1567_vm6, %v1391_v27, 4294967169  ;;  %v1696_v46 = vsel %vm1695_vm7, %v1455_v25, 4294967169  ;;  %v2855_v34 = vcvt.f32.s32 %v2854_v57  ;;  %v2983_v12 = vcvt.f32.s32 %v2982_v47 }
 0x278   : > { %vm1823_vm8 = vcmp.lt.s32.totalorder %v1568_v37, 127  ;;  %vm1951_vm9 = vcmp.lt.s32.totalorder %v1696_v46, 127  ;;  %v2850_v21 = vtrunc.f32 %v3911_v33  ;;  %v2978_v18 = vtrunc.f32 %v3913_v38 }
 0x279   : > { %v1824_v5 = vsel %vm1823_vm8, %v1568_v37, 127  ;;  %v1952_v8 = vsel %vm1951_vm9, %v1696_v46, 127  ;;  %v1134_v4 = vmul.u32 %v2855_v34, %v3473_v48  ;;  %v1198_v11 = vmul.u32 %v2983_v12, %v3473_v48 }
 0x27a   : > { %vm2079_vm10 = vcmp.gt.s32.totalorder %v1824_v5, 0  ;;  %vm2207_vm11 = vcmp.gt.s32.totalorder %v1952_v8, 0  ;;  %v2851_v0 = vcvt.f32.s32 %v2850_v21  ;;  %v2979_v39 = vcvt.f32.s32 %v2978_v18 }
 0x27b   : > { %v2080_v43 = vsel %vm2079_vm10, %v1824_v5, 0  ;;  %v2208_v7 = vsel %vm2207_vm11, %v1952_v8, 0  ;;  %v1266_v50 = vadd.s32 %v3475_v52, %v1134_v4  ;;  %v1330_v53 = vadd.s32 %v3475_v52, %v1198_v11 }
 0x27c   : > { %v1132_v33 = vmul.u32 %v2851_v0, %v3473_v48  ;;  %v1196_v38 = vmul.u32 %v2979_v39, %v3473_v48  ;;  %v2860_v63 = vtrunc.f32 %v3923_v15  ;;  %v2988_v45 = vtrunc.f32 %v3931_v58 }
 0x27d   : > { %v1394_v51 = vshra.s32 %v1266_v50, 8  ;;  %v1458_v1 = vshra.s32 %v1330_v53, 8  ;;  %v2856_v59 = vtrunc.f32 %v3935_v36  ;;  %v2984_v3 = vtrunc.f32 %v4361_v61  ;;  %v4362_v53 = vld [vmem:[#allocation17_spill] sm:$0xff] }
 0x27e   : > { %v1264_v44 = vadd.s32 %v3475_v52, %v1132_v33  ;;  %v1328_v60 = vadd.s32 %v3475_v52, %v1196_v38  ;;  %v2861_v56 = vcvt.f32.s32 %v2860_v63  ;;  %v2989_v30 = vcvt.f32.s32 %v2988_v45 }
 0x27f   : > { %vm1573_vm12 = vcmp.gt.s32.totalorder %v1394_v51, 4294967169  ;;  %vm1701_vm13 = vcmp.gt.s32.totalorder %v1458_v1, 4294967169  ;;  %v2857_v28 = vcvt.f32.s32 %v2856_v59  ;;  %v2985_v35 = vcvt.f32.s32 %v2984_v3 }
 0x280   : > { %v1574_v22 = vsel %vm1573_vm12, %v1394_v51, 4294967169  ;;  %v1702_v15 = vsel %vm1701_vm13, %v1458_v1, 4294967169  ;;  %v1392_v14 = vshra.s32 %v1264_v44, 8  ;;  %v1456_v58 = vshra.s32 %v1328_v60, 8 }
 0x281   : > { %vm1829_vm14 = vcmp.lt.s32.totalorder %v1574_v22, 127  ;;  %vm1957_vm15 = vcmp.lt.s32.totalorder %v1702_v15, 127  ;;  %v1137_v36 = vmul.u32 %v2861_v56, %v3473_v48  ;;  %v1201_v13 = vmul.u32 %v2989_v30, %v3473_v48 }
 0x282   : > { %v1830_v41 = vsel %vm1829_vm14, %v1574_v22, 127  ;;  %v1958_v16 = vsel %vm1957_vm15, %v1702_v15, 127  ;;  %vm1569_vm0 = vcmp.gt.s32.totalorder %v1392_v14, 4294967169  ;;  %vm1697_vm1 = vcmp.gt.s32.totalorder %v1456_v58, 4294967169 }
 0x283   : > { %vm2085_vm2 = vcmp.gt.s32.totalorder %v1830_v41, 0  ;;  %vm2213_vm3 = vcmp.gt.s32.totalorder %v1958_v16, 0  ;;  %v1570_v17 = vsel %vm1569_vm0, %v1392_v14, 4294967169  ;;  %v1698_v27 = vsel %vm1697_vm1, %v1456_v58, 4294967169  ;;  %v4363_v14 = vld [vmem:[#allocation11_spill] sm:$0xff] }
 0x284   : > { %v2086_v25 = vsel %vm2085_vm2, %v1830_v41, 0  ;;  %v2214_v57 = vsel %vm2213_vm3, %v1958_v16, 0  ;;  %vm1825_vm4 = vcmp.lt.s32.totalorder %v1570_v17, 127  ;;  %vm1953_vm5 = vcmp.lt.s32.totalorder %v1698_v27, 127 }
 0x285   : > { %v2276_v47 = vpack.c.b16 %v2086_v25, %v4153_v42  ;;  %v2324_v37 = vpack.c.b16 %v2214_v57, %v4155_v10  ;;  %v1826_v46 = vsel %vm1825_vm4, %v1570_v17, 127  ;;  %v1954_v34 = vsel %vm1953_vm5, %v1698_v27, 127 }
 0x286   : > { %vm2081_vm6 = vcmp.gt.s32.totalorder %v1826_v46, 0  ;;  %vm2209_vm7 = vcmp.gt.s32.totalorder %v1954_v34, 0  ;;  %v1269_v12 = vadd.s32 %v3475_v52, %v1137_v36  ;;  %v1333_v21 = vadd.s32 %v3475_v52, %v1201_v13 }
 0x287   : > { %v2082_v18 = vsel %vm2081_vm6, %v1826_v46, 0  ;;  %v2210_v5 = vsel %vm2209_vm7, %v1954_v34, 0  ;;  %v1135_v8 = vmul.u32 %v2857_v28, %v3473_v48  ;;  %v1199_v4 = vmul.u32 %v2985_v35, %v3473_v48 }
 0x288   : > { %v2275_v11 = vpack.c.b16 %v2082_v18, %v2080_v43  ;;  %v2323_v0 = vpack.c.b16 %v2210_v5, %v2208_v7  ;;  %v1397_v42 = vshra.s32 %v1269_v12, 8  ;;  %v1461_v10 = vshra.s32 %v1333_v21, 8 }
 0x289   : > { %v1267_v39 = vadd.s32 %v3475_v52, %v1135_v8  ;;  %v1331_v50 = vadd.s32 %v3475_v52, %v1199_v4  ;;  %v2862_v33 = vtrunc.f32 %v4362_v53  ;;  %v2990_v38 = vtrunc.f32 %v3959_v40 }
 0x28a   : > { %v2277_v63 = vpack.c.b8 %v2276_v47, %v2275_v11  ;;  %v2325_v45 = vpack.c.b8 %v2324_v37, %v2323_v0  ;;  %vm1579_vm8 = vcmp.gt.s32.totalorder %v1397_v42, 4294967169  ;;  %vm1707_vm9 = vcmp.gt.s32.totalorder %v1461_v10, 4294967169 }
 0x28b   : > { %v1580_v51 = vsel %vm1579_vm8, %v1397_v42, 4294967169  ;;  %v1708_v1 = vsel %vm1707_vm9, %v1461_v10, 4294967169  ;;  %v1395_v43 = vshra.s32 %v1267_v39, 8  ;;  %v1459_v59 = vshra.s32 %v1331_v50, 8 }
 0x28c   : > { %2347 = vst [vmem:[%s3561_s24 + $0x60] sm:$0xff] %v2277_v63  ;;  %2363 = vst [vmem:[%s3561_s24 + $0xe0] sm:$0xff] %v2325_v45  ;;  %vm1835_vm10 = vcmp.lt.s32.totalorder %v1580_v51, 127  ;;  %vm1963_vm11 = vcmp.lt.s32.totalorder %v1708_v1, 127  ;;  %v2863_v7 = vcvt.f32.s32 %v2862_v33  ;;  %v2991_v61 = vcvt.f32.s32 %v2990_v38 }
 0x28d   : > { %v1836_v3 = vsel %vm1835_vm10, %v1580_v51, 127  ;;  %v1964_v44 = vsel %vm1963_vm11, %v1708_v1, 127  ;;  %vm1575_vm12 = vcmp.gt.s32.totalorder %v1395_v43, 4294967169  ;;  %vm1703_vm13 = vcmp.gt.s32.totalorder %v1459_v59, 4294967169 }
 0x28e   : > { %vm2091_vm14 = vcmp.gt.s32.totalorder %v1836_v3, 0  ;;  %vm2219_vm15 = vcmp.gt.s32.totalorder %v1964_v44, 0  ;;  %v1576_v40 = vsel %vm1575_vm12, %v1395_v43, 4294967169  ;;  %v1704_v60 = vsel %vm1703_vm13, %v1459_v59, 4294967169 }
 0x28f   : > { %v4185_v56 = vsel %vm2091_vm14, %v1836_v3, 0  ;;  %v4187_v30 = vsel %vm2219_vm15, %v1964_v44, 0  ;;  %vm1831_vm0 = vcmp.lt.s32.totalorder %v1576_v40, 127  ;;  %vm1959_vm1 = vcmp.lt.s32.totalorder %v1704_v60, 127 }
 0x290   : > { %v1832_v28 = vsel %vm1831_vm0, %v1576_v40, 127  ;;  %v1960_v35 = vsel %vm1959_vm1, %v1704_v60, 127  ;;  %v1138_v22 = vmul.u32 %v2863_v7, %v3473_v48  ;;  %v1202_v15 = vmul.u32 %v2991_v61, %v3473_v48 }
 0x291   : > { %vm2087_vm2 = vcmp.gt.s32.totalorder %v1832_v28, 0  ;;  %vm2215_vm3 = vcmp.gt.s32.totalorder %v1960_v35, 0  ;;  %v2858_v58 = vtrunc.f32 %v4363_v14  ;;  %v2986_v36 = vtrunc.f32 %v3969_v55 }
 0x292   : > { %v4193_v13 = vsel %vm2087_vm2, %v1832_v28, 0  ;;  %v4195_v41 = vsel %vm2215_vm3, %v1960_v35, 0  ;;  %v1270_v16 = vadd.s32 %v3475_v52, %v1138_v22  ;;  %v1334_v17 = vadd.s32 %v3475_v52, %v1202_v15 }
 0x293   : > { %v2859_v27 = vcvt.f32.s32 %v2858_v58  ;;  %v2987_v25 = vcvt.f32.s32 %v2986_v36  ;;  %v2868_v57 = vtrunc.f32 %v3977_v24  ;;  %v2996_v47 = vtrunc.f32 %v3979_v49 }
 0x294   : > { %v1398_v37 = vshra.s32 %v1270_v16, 8  ;;  %v1462_v46 = vshra.s32 %v1334_v17, 8  ;;  %v2864_v34 = vtrunc.f32 %v3981_v23  ;;  %v2992_v55 = vtrunc.f32 %v3995_v31 }
 0x295   : > { %v1136_v12 = vmul.u32 %v2859_v27, %v3473_v48  ;;  %v1200_v21 = vmul.u32 %v2987_v25, %v3473_v48  ;;  %v2869_v18 = vcvt.f32.s32 %v2868_v57  ;;  %v2997_v5 = vcvt.f32.s32 %v2996_v47 }
 0x296   : > { %vm1581_vm4 = vcmp.gt.s32.totalorder %v1398_v37, 4294967169  ;;  %vm1709_vm5 = vcmp.gt.s32.totalorder %v1462_v46, 4294967169  ;;  %v2865_v8 = vcvt.f32.s32 %v2864_v34  ;;  %v2993_v4 = vcvt.f32.s32 %v2992_v55 }
 0x297   : > { %v1582_v11 = vsel %vm1581_vm4, %v1398_v37, 4294967169  ;;  %v1710_v24 = vsel %vm1709_vm5, %v1462_v46, 4294967169  ;;  %v1268_v49 = vadd.s32 %v3475_v52, %v1136_v12  ;;  %v1332_v0 = vadd.s32 %v3475_v52, %v1200_v21 }
 0x298   : > { %vm1837_vm6 = vcmp.lt.s32.totalorder %v1582_v11, 127  ;;  %vm1965_vm7 = vcmp.lt.s32.totalorder %v1710_v24, 127  ;;  %v1141_v23 = vmul.u32 %v2869_v18, %v3473_v48  ;;  %v1205_v31 = vmul.u32 %v2997_v5, %v3473_v48 }
 0x299   : > { %v1838_v42 = vsel %vm1837_vm6, %v1582_v11, 127  ;;  %v1966_v10 = vsel %vm1965_vm7, %v1710_v24, 127  ;;  %v1396_v39 = vshra.s32 %v1268_v49, 8  ;;  %v1460_v50 = vshra.s32 %v1332_v0, 8 }
 0x29a   : > { %vm2093_vm8 = vcmp.gt.s32.totalorder %v1838_v42, 0  ;;  %vm2221_vm9 = vcmp.gt.s32.totalorder %v1966_v10, 0  ;;  %v1273_v53 = vadd.s32 %v3475_v52, %v1141_v23  ;;  %v1337_v33 = vadd.s32 %v3475_v52, %v1205_v31 }
 0x29b   : > { %v2094_v38 = vsel %vm2093_vm8, %v1838_v42, 0  ;;  %v2222_v63 = vsel %vm2221_vm9, %v1966_v10, 0  ;;  %vm1577_vm10 = vcmp.gt.s32.totalorder %v1396_v39, 4294967169  ;;  %vm1705_vm11 = vcmp.gt.s32.totalorder %v1460_v50, 4294967169 }
 0x29c   : > { %v2279_v45 = vpack.c.b16 %v2094_v38, %v4185_v56  ;;  %v2327_v51 = vpack.c.b16 %v2222_v63, %v4187_v30  ;;  %v1578_v1 = vsel %vm1577_vm10, %v1396_v39, 4294967169  ;;  %v1706_v43 = vsel %vm1705_vm11, %v1460_v50, 4294967169 }
 0x29d   : > { %vm1833_vm12 = vcmp.lt.s32.totalorder %v1578_v1, 127  ;;  %vm1961_vm13 = vcmp.lt.s32.totalorder %v1706_v43, 127  ;;  %v1401_v59 = vshra.s32 %v1273_v53, 8  ;;  %v1465_v7 = vshra.s32 %v1337_v33, 8 }
 0x29e   : > { %v1834_v61 = vsel %vm1833_vm12, %v1578_v1, 127  ;;  %v1962_v3 = vsel %vm1961_vm13, %v1706_v43, 127  ;;  %v1139_v44 = vmul.u32 %v2865_v8, %v3473_v48  ;;  %v1203_v40 = vmul.u32 %v2993_v4, %v3473_v48 }
 0x29f   : > { %vm2089_vm14 = vcmp.gt.s32.totalorder %v1834_v61, 0  ;;  %vm2217_vm15 = vcmp.gt.s32.totalorder %v1962_v3, 0  ;;  %vm1587_vm0 = vcmp.gt.s32.totalorder %v1401_v59, 4294967169  ;;  %vm1715_vm1 = vcmp.gt.s32.totalorder %v1465_v7, 4294967169 }
 0x2a0   : > { %v2090_v60 = vsel %vm2089_vm14, %v1834_v61, 0  ;;  %v2218_v56 = vsel %vm2217_vm15, %v1962_v3, 0  ;;  %v1588_v28 = vsel %vm1587_vm0, %v1401_v59, 4294967169  ;;  %v1716_v30 = vsel %vm1715_vm1, %v1465_v7, 4294967169 }
 0x2a1   : > { %v2278_v35 = vpack.c.b16 %v2090_v60, %v4193_v13  ;;  %v2326_v22 = vpack.c.b16 %v2218_v56, %v4195_v41  ;;  %vm1843_vm2 = vcmp.lt.s32.totalorder %v1588_v28, 127  ;;  %vm1971_vm3 = vcmp.lt.s32.totalorder %v1716_v30, 127  ;;  %v4364_v41 = vld [vmem:[#allocation12_spill] sm:$0xff] }
 0x2a2   : > { %v1844_v15 = vsel %vm1843_vm2, %v1588_v28, 127  ;;  %v1972_v14 = vsel %vm1971_vm3, %v1716_v30, 127  ;;  %v1271_v58 = vadd.s32 %v3475_v52, %v1139_v44  ;;  %v1335_v36 = vadd.s32 %v3475_v52, %v1203_v40 }
 0x2a3   : > { %v2280_v16 = vpack.c.b8 %v2279_v45, %v2278_v35  ;;  %v2328_v17 = vpack.c.b8 %v2327_v51, %v2326_v22  ;;  %vm2099_vm4 = vcmp.gt.s32.totalorder %v1844_v15, 0  ;;  %vm2227_vm5 = vcmp.gt.s32.totalorder %v1972_v14, 0 }
 0x2a4   : > { %v4219_v27 = vsel %vm2099_vm4, %v1844_v15, 0  ;;  %v4221_v25 = vsel %vm2227_vm5, %v1972_v14, 0  ;;  %v1399_v13 = vshra.s32 %v1271_v58, 8  ;;  %v1463_v57 = vshra.s32 %v1335_v36, 8 }
 0x2a5   : > { %2348 = vst [vmem:[%s3561_s24 + $0x68] sm:$0xff] %v2280_v16  ;;  %2364 = vst [vmem:[%s3561_s24 + $0xe8] sm:$0xff] %v2328_v17  ;;  %v2870_v47 = vtrunc.f32 %v4364_v41  ;;  %v2998_v37 = vtrunc.f32 %v4015_v20  ;;  %v2866_v46 = vtrunc.f32 %v4017_v29  ;;  %v2994_v34 = vtrunc.f32 %v4019_v62 }
 0x2a6   : > { %vm1583_vm6 = vcmp.gt.s32.totalorder %v1399_v13, 4294967169  ;;  %vm1711_vm7 = vcmp.gt.s32.totalorder %v1463_v57, 4294967169  ;;  %v2876_v55 = vtrunc.f32 %v4029_v26  ;;  %v3004_v12 = vtrunc.f32 %v4037_v6 }
 0x2a7   : > { %v1584_v21 = vsel %vm1583_vm6, %v1399_v13, 4294967169  ;;  %v1712_v18 = vsel %vm1711_vm7, %v1463_v57, 4294967169  ;;  %v2871_v5 = vcvt.f32.s32 %v2870_v47  ;;  %v2999_v8 = vcvt.f32.s32 %v2998_v37 }
 0x2a8   : > { %vm1839_vm8 = vcmp.lt.s32.totalorder %v1584_v21, 127  ;;  %vm1967_vm9 = vcmp.lt.s32.totalorder %v1712_v18, 127  ;;  %v2867_v4 = vcvt.f32.s32 %v2866_v46  ;;  %v2995_v11 = vcvt.f32.s32 %v2994_v34 }
 0x2a9   : > { %v1840_v24 = vsel %vm1839_vm8, %v1584_v21, 127  ;;  %v1968_v20 = vsel %vm1967_vm9, %v1712_v18, 127  ;;  %v1142_v29 = vmul.u32 %v2871_v5, %v3473_v48  ;;  %v1206_v62 = vmul.u32 %v2999_v8, %v3473_v48 }
 0x2aa   : > { %vm2095_vm10 = vcmp.gt.s32.totalorder %v1840_v24, 0  ;;  %vm2223_vm11 = vcmp.gt.s32.totalorder %v1968_v20, 0  ;;  %v1140_v26 = vmul.u32 %v2867_v4, %v3473_v48  ;;  %v1204_v6 = vmul.u32 %v2995_v11, %v3473_v48  ;;  %v4365_v11 = vld [vmem:[#allocation13_spill] sm:$0xff] }
 0x2ab   : > { %v2096_v49 = vsel %vm2095_vm10, %v1840_v24, 0  ;;  %v2224_v0 = vsel %vm2223_vm11, %v1968_v20, 0  ;;  %v1274_v23 = vadd.s32 %v3475_v52, %v1142_v29  ;;  %v1338_v31 = vadd.s32 %v3475_v52, %v1206_v62 }
 0x2ac   : > { %v1272_v42 = vadd.s32 %v3475_v52, %v1140_v26  ;;  %v1336_v10 = vadd.s32 %v3475_v52, %v1204_v6  ;;  %v2877_v39 = vcvt.f32.s32 %v2876_v55  ;;  %v3005_v50 = vcvt.f32.s32 %v3004_v12 }
 0x2ad   : > { %v1402_v53 = vshra.s32 %v1274_v23, 8  ;;  %v1466_v33 = vshra.s32 %v1338_v31, 8  ;;  %v2872_v38 = vtrunc.f32 %v4039_v54  ;;  %v3000_v63 = vtrunc.f32 %v4047_v2 }
 0x2ae   : > { %v1400_v45 = vshra.s32 %v1272_v42, 8  ;;  %v1464_v51 = vshra.s32 %v1336_v10, 8  ;;  %v1145_v1 = vmul.u32 %v2877_v39, %v3473_v48  ;;  %v1209_v43 = vmul.u32 %v3005_v50, %v3473_v48 }
 0x2af   : > { %vm1589_vm12 = vcmp.gt.s32.totalorder %v1402_v53, 4294967169  ;;  %vm1717_vm13 = vcmp.gt.s32.totalorder %v1466_v33, 4294967169  ;;  %v2873_v59 = vcvt.f32.s32 %v2872_v38  ;;  %v3001_v7 = vcvt.f32.s32 %v3000_v63 }
 0x2b0   : > { %v1590_v61 = vsel %vm1589_vm12, %v1402_v53, 4294967169  ;;  %v1718_v3 = vsel %vm1717_vm13, %v1466_v33, 4294967169  ;;  %vm1585_vm14 = vcmp.gt.s32.totalorder %v1400_v45, 4294967169  ;;  %vm1713_vm15 = vcmp.gt.s32.totalorder %v1464_v51, 4294967169 }
 0x2b1   : > { %vm1845_vm0 = vcmp.lt.s32.totalorder %v1590_v61, 127  ;;  %vm1973_vm1 = vcmp.lt.s32.totalorder %v1718_v3, 127  ;;  %v1586_v44 = vsel %vm1585_vm14, %v1400_v45, 4294967169  ;;  %v1714_v54 = vsel %vm1713_vm15, %v1464_v51, 4294967169 }
 0x2b2   : > { %v1846_v40 = vsel %vm1845_vm0, %v1590_v61, 127  ;;  %v1974_v2 = vsel %vm1973_vm1, %v1718_v3, 127  ;;  %vm1841_vm2 = vcmp.lt.s32.totalorder %v1586_v44, 127  ;;  %vm1969_vm3 = vcmp.lt.s32.totalorder %v1714_v54, 127 }
 0x2b3   : > { %vm2101_vm4 = vcmp.gt.s32.totalorder %v1846_v40, 0  ;;  %vm2229_vm5 = vcmp.gt.s32.totalorder %v1974_v2, 0  ;;  %v1842_v60 = vsel %vm1841_vm2, %v1586_v44, 127  ;;  %v1970_v56 = vsel %vm1969_vm3, %v1714_v54, 127 }
 0x2b4   : > { %v2102_v28 = vsel %vm2101_vm4, %v1846_v40, 0  ;;  %v2230_v30 = vsel %vm2229_vm5, %v1974_v2, 0  ;;  %vm2097_vm6 = vcmp.gt.s32.totalorder %v1842_v60, 0  ;;  %vm2225_vm7 = vcmp.gt.s32.totalorder %v1970_v56, 0 }
 0x2b5   : > { %v2282_v35 = vpack.c.b16 %v2102_v28, %v4219_v27  ;;  %v2330_v22 = vpack.c.b16 %v2230_v30, %v4221_v25  ;;  %v2098_v15 = vsel %vm2097_vm6, %v1842_v60, 0  ;;  %v2226_v14 = vsel %vm2225_vm7, %v1970_v56, 0 }
 0x2b6   : > { %v2281_v58 = vpack.c.b16 %v2098_v15, %v2096_v49  ;;  %v2329_v36 = vpack.c.b16 %v2226_v14, %v2224_v0  ;;  %v1277_v16 = vadd.s32 %v3475_v52, %v1145_v1  ;;  %v1341_v17 = vadd.s32 %v3475_v52, %v1209_v43 }
 0x2b7   : > { %v1143_v13 = vmul.u32 %v2873_v59, %v3473_v48  ;;  %v1207_v57 = vmul.u32 %v3001_v7, %v3473_v48  ;;  %v2878_v41 = vtrunc.f32 %v4051_v32  ;;  %v3006_v27 = vtrunc.f32 %v4067_v9 }
 0x2b8   : > { %v2283_v47 = vpack.c.b8 %v2282_v35, %v2281_v58  ;;  %v2331_v25 = vpack.c.b8 %v2330_v22, %v2329_v36  ;;  %v1405_v37 = vshra.s32 %v1277_v16, 8  ;;  %v1469_v46 = vshra.s32 %v1341_v17, 8 }
 0x2b9   : > { %v1275_v34 = vadd.s32 %v3475_v52, %v1143_v13  ;;  %v1339_v55 = vadd.s32 %v3475_v52, %v1207_v57  ;;  %v2879_v12 = vcvt.f32.s32 %v2878_v41  ;;  %v3007_v21 = vcvt.f32.s32 %v3006_v27 }
 0x2ba   : > { %2349 = vst [vmem:[%s3561_s24 + $0x70] sm:$0xff] %v2283_v47  ;;  %2365 = vst [vmem:[%s3561_s24 + $0xf0] sm:$0xff] %v2331_v25  ;;  %vm1595_vm8 = vcmp.gt.s32.totalorder %v1405_v37, 4294967169  ;;  %vm1723_vm9 = vcmp.gt.s32.totalorder %v1469_v46, 4294967169  ;;  %v2874_v24 = vtrunc.f32 %v4365_v11  ;;  %v3002_v20 = vtrunc.f32 %v4077_v19 }
 0x2bb   : > { %v1596_v18 = vsel %vm1595_vm8, %v1405_v37, 4294967169  ;;  %v1724_v5 = vsel %vm1723_vm9, %v1469_v46, 4294967169  ;;  %v1403_v8 = vshra.s32 %v1275_v34, 8  ;;  %v1467_v32 = vshra.s32 %v1339_v55, 8 }
 0x2bc   : > { %v1146_v9 = vmul.u32 %v2879_v12, %v3473_v48  ;;  %v1210_v4 = vmul.u32 %v3007_v21, %v3473_v48  ;;  %vm1851_vm10 = vcmp.lt.s32.totalorder %v1596_v18, 127  ;;  %vm1979_vm11 = vcmp.lt.s32.totalorder %v1724_v5, 127 }
 0x2bd   : > { %vm1591_vm12 = vcmp.gt.s32.totalorder %v1403_v8, 4294967169  ;;  %vm1719_vm13 = vcmp.gt.s32.totalorder %v1467_v32, 4294967169  ;;  %v1852_v29 = vsel %vm1851_vm10, %v1596_v18, 127  ;;  %v1980_v62 = vsel %vm1979_vm11, %v1724_v5, 127 }
 0x2be   : > { %v1278_v26 = vadd.s32 %v3475_v52, %v1146_v9  ;;  %v1342_v6 = vadd.s32 %v3475_v52, %v1210_v4  ;;  %v1592_v49 = vsel %vm1591_vm12, %v1403_v8, 4294967169  ;;  %v1720_v0 = vsel %vm1719_vm13, %v1467_v32, 4294967169 }
 0x2bf   : > { %v2875_v23 = vcvt.f32.s32 %v2874_v24  ;;  %v3003_v31 = vcvt.f32.s32 %v3002_v20  ;;  %vm2107_vm14 = vcmp.gt.s32.totalorder %v1852_v29, 0  ;;  %vm2235_vm15 = vcmp.gt.s32.totalorder %v1980_v62, 0 }
 0x2c0   : > { %v1406_v42 = vshra.s32 %v1278_v26, 8  ;;  %v1470_v10 = vshra.s32 %v1342_v6, 8  ;;  %vm1847_vm0 = vcmp.lt.s32.totalorder %v1592_v49, 127  ;;  %vm1975_vm1 = vcmp.lt.s32.totalorder %v1720_v0, 127 }
 0x2c1   : > { %v1144_v39 = vmul.u32 %v2875_v23, %v3473_v48  ;;  %v1208_v19 = vmul.u32 %v3003_v31, %v3473_v48  ;;  %v2108_v63 = vsel %vm2107_vm14, %v1852_v29, 0  ;;  %v2236_v45 = vsel %vm2235_vm15, %v1980_v62, 0 }
 0x2c2   : > { %vm1597_vm2 = vcmp.gt.s32.totalorder %v1406_v42, 4294967169  ;;  %vm1725_vm3 = vcmp.gt.s32.totalorder %v1470_v10, 4294967169  ;;  %v1848_v48 = vsel %vm1847_vm0, %v1592_v49, 127  ;;  %v1976_v7 = vsel %vm1975_vm1, %v1720_v0, 127 }
 0x2c3   : > { %v1598_v50 = vsel %vm1597_vm2, %v1406_v42, 4294967169  ;;  %v1726_v53 = vsel %vm1725_vm3, %v1470_v10, 4294967169  ;;  %v1276_v33 = vadd.s32 %v3475_v52, %v1144_v39  ;;  %v1340_v38 = vadd.s32 %v3475_v52, %v1208_v19 }
 0x2c4   : > { %vm1853_vm4 = vcmp.lt.s32.totalorder %v1598_v50, 127  ;;  %vm1981_vm5 = vcmp.lt.s32.totalorder %v1726_v53, 127  ;;  %vm2103_vm10 = vcmp.gt.s32.totalorder %v1848_v48, 0  ;;  %vm2231_vm11 = vcmp.gt.s32.totalorder %v1976_v7, 0 }
 0x2c5   : > { %v1854_v51 = vsel %vm1853_vm4, %v1598_v50, 127  ;;  %v1982_v1 = vsel %vm1981_vm5, %v1726_v53, 127  ;;  %v1404_v43 = vshra.s32 %v1276_v33, 8  ;;  %v1468_v59 = vshra.s32 %v1340_v38, 8 }
 0x2c6   : > { %vm2109_vm6 = vcmp.gt.s32.totalorder %v1854_v51, 0  ;;  %vm2237_vm7 = vcmp.gt.s32.totalorder %v1982_v1, 0  ;;  %v2104_v56 = vsel %vm2103_vm10, %v1848_v48, 0  ;;  %v2232_v28 = vsel %vm2231_vm11, %v1976_v7, 0 }
 0x2c7   : > { %v2110_v61 = vsel %vm2109_vm6, %v1854_v51, 0  ;;  %v2238_v3 = vsel %vm2237_vm7, %v1982_v1, 0  ;;  %vm1593_vm8 = vcmp.gt.s32.totalorder %v1404_v43, 4294967169  ;;  %vm1721_vm9 = vcmp.gt.s32.totalorder %v1468_v59, 4294967169 }
 0x2c8   : > { %v2285_v52 = vpack.c.b16 %v2110_v61, %v2108_v63  ;;  %v2333_v44 = vpack.c.b16 %v2238_v3, %v2236_v45  ;;  %v1594_v54 = vsel %vm1593_vm8, %v1404_v43, 4294967169  ;;  %v1722_v40 = vsel %vm1721_vm9, %v1468_v59, 4294967169 }
 0x2c9   : > { %vm1849_vm12 = vcmp.lt.s32.totalorder %v1594_v54, 127  ;;  %vm1977_vm13 = vcmp.lt.s32.totalorder %v1722_v40, 127 }
 0x2ca   : > { %v1850_v2 = vsel %vm1849_vm12, %v1594_v54, 127  ;;  %v1978_v60 = vsel %vm1977_vm13, %v1722_v40, 127 }
 0x2cb   : > { %vm2105_vm14 = vcmp.gt.s32.totalorder %v1850_v2, 0  ;;  %vm2233_vm15 = vcmp.gt.s32.totalorder %v1978_v60, 0 }
 0x2cc   : > { %v2106_v30 = vsel %vm2105_vm14, %v1850_v2, 0  ;;  %v2234_v35 = vsel %vm2233_vm15, %v1978_v60, 0 }
 0x2cd   : > { %v2284_v22 = vpack.c.b16 %v2106_v30, %v2104_v56  ;;  %v2332_v15 = vpack.c.b16 %v2234_v35, %v2232_v28 }
 0x2cf   : > { %v2286_v14 = vpack.c.b8 %v2285_v52, %v2284_v22  ;;  %v2334_v58 = vpack.c.b8 %v2333_v44, %v2332_v15 }
 0x2d1   : > { %2350 = vst [vmem:[%s3561_s24 + $0x78] sm:$0xff] %v2286_v14  ;;  %2366 = vst [vmem:[%s3561_s24 + $0xf8] sm:$0xff] %v2334_v58 }
 0x2d2   : > { %3166 = shalt.err (!%p3163_p5)
}
 0x2d3   : > { %s3167_s25 = scalar_lea.hbm %s4272_s26, 4096  ;;  %s3171_s6 = scalar_lea.hbm %s4328_s3, 8192 }
 0x2d4   : > { %p3168_p9 = scmp.ne.s32.totalorder %s4272_s26, %s3167_s25  ;;  %p3172_p3 = scmp.lt.u32.totalorder %s4272_s26, %s4328_s3 }
 0x2d5   : > { %p3173_p7 = scmp.lt.u32.totalorder %s3171_s6, %s3167_s25  ;;  %p3175_p4 = scmp.lt.u32.totalorder %s3167_s25, %s4272_s26 }
 0x2d6   : > { %p3169_p1 = pnand %p3168_p9, %p3366_p10 }
 0x2d7   : > { %p3174_p13 = por %p3173_p7, %p3172_p3 }
 0x2d8   : > { %p3170_p2 = pneg %p3169_p1 }
 0x2d9   : > { %p3176_p6 = por %p3175_p4, %p3174_p13 }
 0x2db   : > { %p3177_p8 = pnand %p3176_p6, %p3170_p2 }
 0x2dd   : > { %3180 = shalt.err (!%p3177_p8)
}
 0x2de   : > { %s3248_s24 = smov 128   ;;  %s3249_s9 = smov 8  }
 0x2df   : > { %3014 = dma.vmem_to_hbm [thread:$0]  (%p3366_p10), %s4274_s10, 4096, %s4272_s26, %s2368_s15, %s3248_s24, %s3248_s24, %s3249_s9  }
 0x2e0 PF: > { %s2397_s11 = sand.u32 1, %s3219_s12   ;;  %p4366_p12 = scmp.ne.s32.totalorder %s4336_s23, 0 }
 0x2e1   : > { %p4367_p11 = scmp.ge.s32.totalorder %s3239_s17, 2  ;;  %s2398_s18 = scalar_lea.sflag [#allocation4], %s2397_s11 }
 0x2e3   : > { %p3025_p0 = pnand %p4367_p11, %p4366_p12 }
 0x2e5   : > { %3214 = dma.done.wait (!%p3025_p0), %s2398_s18, 4096  }
 0x2e6   : > { %3216 = vsyncadd (!%p3025_p0), %s2398_s18, 4294963200  ;;  %s20_s17 = sadd.s32 1, %s3239_s17   ;;  %s4368_s12 = smov %s3223_s13 }
 0x2e7   : > { %p17_p5 = scmp.ge.s32.totalorder %s20_s17, 4   ;;  %s4369_s13 = smov %s3227_s14 }
 0x2e8   : > { %s4370_s14 = smov %s3375_s5  ;;  %s4371_s15 = smov %s3235_s16 }
 0x2e9   : > { %s4372_s16 = smov %s4374_s28  ;;  %19 = sbr.rel (!%p17_p5) target bundleno = 7 (0x7), region = 85 }
 0x2f0   :  { %2403 = vsyncpa [#allocation3], 1 }
 0x2f1   :  { %2405 = vsyncpa [#allocation3 + $0x1], 1 }
 0x2f2   :  { %2406 = vsyncpa [#allocation6], 1 }
 0x2f3   :  { %2407 = vsyncpa [#allocation4], 1 }
 0x2f4   :  { %2409 = vsyncpa [#allocation4 + $0x1], 1 }

</bundles_post_ra>
